<compile_context>
chip_gen: v7x
topology: tpu7x:2x2x1
jax: 0.10.0
libtpu: 0.0.40
codegen_flags: <defaults>
</compile_context>

<pallas_src>
import functools
import math

import jax
import jax.numpy as jnp
from jax.experimental import pallas as pl
from jax.experimental.pallas import tpu as pltpu


# ----------------------------- in-kernel helpers -----------------------------

_GELU_C = math.sqrt(2.0 / math.pi)


def _layernorm(x, w, b, eps=1e-5):
    mu = jnp.mean(x, axis=-1, keepdims=True)
    var = jnp.mean((x - mu) ** 2, axis=-1, keepdims=True)
    return (x - mu) * jax.lax.rsqrt(var + eps) * w + b


def _gelu_tanh(x):
    # tanh-approx GELU: one EUP tanh + a few VPU mults (exact-erf parity can be
    # restored by swapping this gate function if bit-level parity is required).
    return 0.5 * x * (1.0 + jnp.tanh(_GELU_C * (x + 0.044715 * x * x * x)))


def _softmax_last(sim):
    sim = sim - jnp.max(sim, axis=-1, keepdims=True)
    p = jnp.exp(sim)
    return p * pl.reciprocal(jnp.sum(p, axis=-1, keepdims=True), approx=True)


def _ff_block(x, ln_w, ln_b, w1, b1, w2, b2):
    # PreNorm(GEGLU FeedForward): LN -> Linear(D, 2*hid) -> a * gelu(g) -> Linear(hid, D)
    xn = _layernorm(x, ln_w, ln_b)
    h = jnp.dot(xn.astype(jnp.bfloat16), w1, preferred_element_type=jnp.float32) + b1
    half = h.shape[-1] // 2
    a, g = h[:, :half], h[:, half:]
    hg = a * _gelu_tanh(g)
    return jnp.dot(hg.astype(jnp.bfloat16), w2,
                   preferred_element_type=jnp.float32) + b2


# ------------------------------- fused kernel --------------------------------

def _encoder_kernel(
        # inputs
        lat_ref, ctx_ref,
        ca_lnx_w, ca_lnx_b, ca_lnc_w, ca_lnc_b, ca_wq, ca_wkv_t, ca_wo, ca_bo,
        cf_ln_w, cf_ln_b, cf_w1, cf_b1, cf_w2, cf_b2,
        sa_ln_w, sa_ln_b, sa_wqkv, sa_wo, sa_bo,
        sf_ln_w, sf_ln_b, sf_w1, sf_b1, sf_w2, sf_b2,
        # output
        o_ref,
        # scratch
        x_acc, head_slab,
        *, cross_heads, cross_dim_head, latent_heads, latent_dim_head,
        bblk, n_latents, layer_resident):
    """Grid = (batch_blocks, 1 + num_layers); x lives in VMEM scratch across layers."""
    s = pl.program_id(1)
    n = n_latents
    rows = bblk * n

    # ----------------------- stage 0: cross-attn + cross-FF ----------------------
    @pl.when(s == 0)
    def _cross_stage():
        ci = cross_heads * cross_dim_head
        dh = cross_dim_head
        d_lat = lat_ref.shape[-1]

        # Latent-side LayerNorm + q projection computed ONCE and shared by every
        # packed batch element (x is bblk identical copies of the latents here).
        lat = lat_ref[...].astype(jnp.float32)                       # (n, D)
        xn = _layernorm(lat, ca_lnx_w[...], ca_lnx_b[...])
        q = jnp.dot(xn.astype(jnp.bfloat16), ca_wq[...],
                    preferred_element_type=jnp.float32) * (dh ** -0.5)   # scale folded into q
        q_b = jnp.broadcast_to(q.astype(jnp.bfloat16), (bblk, n, ci))

        # Context LayerNorm over the channel axis of the *untransposed* (Dc, S)
        # block (no wrapper-side permute / extra HBM pass of `data`).
        ctx = ctx_ref[...].astype(jnp.float32)                       # (bblk, Dc, S)
        mu = jnp.mean(ctx, axis=1, keepdims=True)
        var = jnp.mean((ctx - mu) ** 2, axis=1, keepdims=True)
        cn = (ctx - mu) * jax.lax.rsqrt(var + 1e-5) * ca_lnc_w[...] + ca_lnc_b[...]

        # k,v kept channel-major ("transposed"): kv_t[b] = wkv_t @ cn[b] -> (2*ci, S).
        wkv_b = jnp.broadcast_to(ca_wkv_t[...], (bblk,) + tuple(ca_wkv_t.shape))
        kv_t = jnp.einsum('bed,bds->bes', wkv_b, cn.astype(jnp.bfloat16),
                          preferred_element_type=jnp.float32)        # (bblk, 2ci, S)

        # TODO(synk): dim_head < 128 underfills the MXU contraction; pad dim_head if
        # attention shows up in the profile (projections/FF dominate otherwise).
        for h in range(cross_heads):
            lo, hi = h * dh, (h + 1) * dh
            k_t = kv_t[:, lo:hi, :].astype(jnp.bfloat16)             # (bblk, dh, S)
            v_t = kv_t[:, ci + lo:ci + hi, :].astype(jnp.bfloat16)   # (bblk, dh, S)
            sim = jnp.einsum('bnd,bds->bns', q_b[:, :, lo:hi], k_t,
                             preferred_element_type=jnp.float32)     # (bblk, n, S)
            attn = _softmax_last(sim).astype(jnp.bfloat16)
            head_slab[:, :, lo:hi] = jnp.einsum(
                'bns,bds->bnd', attn, v_t, preferred_element_type=jnp.float32)

        o = head_slab[:, :, 0:ci].reshape(rows, ci)
        attn_out = jnp.dot(o.astype(jnp.bfloat16), ca_wo[...],
                           preferred_element_type=jnp.float32) + ca_bo[...]
        x = (attn_out.reshape(bblk, n, d_lat) + lat).reshape(rows, d_lat)
        x = x + _ff_block(x, cf_ln_w[...], cf_ln_b[...],
                          cf_w1[...], cf_b1[...], cf_w2[...], cf_b2[...])
        x_acc[...] = x

    # --------------------- stages 1..L: self-attn + FF layers --------------------
    @pl.when(s > 0)
    def _self_stage():
        li = jnp.maximum(s - 1, 0) if layer_resident else 0
        inner = latent_heads * latent_dim_head
        dh = latent_dim_head

        x = x_acc[...]                                               # (rows, D)
        # PyTorch self-attention has a single shared PreNorm: q, k, v all from LN(x).
        xn = _layernorm(x, sa_ln_w[li], sa_ln_b[li])
        qkv = jnp.dot(xn.astype(jnp.bfloat16), sa_wqkv[li],
                      preferred_element_type=jnp.float32)            # (rows, 3*inner)
        qkv3 = qkv.reshape(bblk, n, 3 * inner)
        q3 = (qkv3[:, :, 0:inner] * (dh ** -0.5)).astype(jnp.bfloat16)
        k3 = qkv3[:, :, inner:2 * inner].astype(jnp.bfloat16)
        v3 = qkv3[:, :, 2 * inner:3 * inner].astype(jnp.bfloat16)

        for h in range(latent_heads):
            lo, hi = h * dh, (h + 1) * dh
            sim = jnp.einsum('bqd,bkd->bqk', q3[:, :, lo:hi], k3[:, :, lo:hi],
                             preferred_element_type=jnp.float32)     # (bblk, n, n)
            attn = _softmax_last(sim).astype(jnp.bfloat16)
            head_slab[:, :, lo:hi] = jnp.einsum(
                'bqk,bkd->bqd', attn, v3[:, :, lo:hi],
                preferred_element_type=jnp.float32)

        o = head_slab[:, :, 0:inner].reshape(rows, inner)
        x = x + (jnp.dot(o.astype(jnp.bfloat16), sa_wo[li],
                         preferred_element_type=jnp.float32) + sa_bo[li])
        x = x + _ff_block(x, sf_ln_w[li], sf_ln_b[li],
                          sf_w1[li], sf_b1[li], sf_w2[li], sf_b2[li])
        x_acc[...] = x

    # ------------------------------ final writeback ------------------------------
    @pl.when(s == pl.num_programs(1) - 1)
    def _writeback():
        # One full-block store per batch block.
        # TODO(synk): for latent_dim < 128, present a lane-dense (>=128-wide) output
        # slab instead to avoid masked vst stores.
        o_ref[...] = x_acc[...].reshape(o_ref.shape).astype(o_ref.dtype)


# --------------------------------- wrapper ------------------------------------

def _full_spec(shape):
    shape = tuple(shape)
    nd = len(shape)
    return pl.BlockSpec(shape, lambda b, s, nd=nd: (0,) * nd)


def _layer_spec(shape):
    # Streamed per-layer weights: block selects one layer; layer step s>=1 uses entry
    # s-1 (entry 0 is prefetched but unused during the cross stage).
    shape = tuple(shape)
    block = (1,) + shape[1:]
    zeros = (0,) * (len(shape) - 1)
    return pl.BlockSpec(block, lambda b, s, z=zeros: (jnp.maximum(s - 1, 0),) + z)


def _pick_batch_block(batch, n_latents, target_rows=512):
    """Pack batch elements per grid step until projection/FF matmuls see ~target_rows
    rows.  On single-TC v5e/v6e bigger is strictly better (amortizes per-layer weight
    DMA); on v7x pass `batch_block` explicitly to keep >=2 (ideally an even number of)
    batch-grid steps so both TensorCores get work."""
    best = 1
    for cand in range(1, batch + 1):
        if batch % cand == 0 and cand * n_latents <= target_rows:
            best = cand
    return best


def _vmem_limit_bytes(block_bytes, scratch_bytes, act_bytes):
    try:
        cap = int(pltpu.get_tpu_info().vmem_capacity_bytes)
    except Exception:
        cap = 64 << 20          # conservative fallback (v7x physical VMEM per TC)
    want = int(1.5 * (2 * block_bytes + scratch_bytes + act_bytes)) + (4 << 20)
    return int(max(32 << 20, min(want, (cap * 3) // 4)))


def perceiver_io_encoder(data, params, *, cross_heads, cross_dim_head,
                         latent_heads, latent_dim_head, batch_block=None,
                         resident_layer_weights=None, ctx_dtype=jnp.bfloat16):
    """data: (B, dim, seq) channel-first, exactly like the PyTorch module (the kernel
    handles the channel axis in place; no wrapper-side permute)."""
    B, Dc, S = data.shape
    lat = params['latents']
    N, D = lat.shape
    ca, cf = params['cross_attn'], params['cross_ff']
    sa, sf = params['self_attn'], params['self_ff']
    L = int(sa['wqkv'].shape[0])
    assert L >= 1, "fused kernel expects at least one self-attention layer"

    bblk = batch_block or _pick_batch_block(B, N)
    assert B % bblk == 0, (B, bblk)
    R = bblk * N
    ci = cross_heads * cross_dim_head
    li_inner = latent_heads * latent_dim_head
    inner_max = max(ci, li_inner)

    # bf16 ctx stream halves the ctx DMA bytes + the double-buffered VMEM block.
    # In a full model this cast should fuse with the upstream producer of `data`.
    ctx = data.astype(ctx_dtype)

    def _nbytes(a):
        return int(a.size) * a.dtype.itemsize

    # Keep the full per-layer weight stacks VMEM-resident when they fit (removes the
    # re-stream of the whole self-layer weight stack once per batch block); otherwise
    # stream one layer per grid step.
    stacked_bytes = sum(_nbytes(sa[k]) for k in ('ln_w', 'ln_b', 'wqkv', 'wo', 'bo'))
    stacked_bytes += sum(_nbytes(sf[k]) for k in ('ln_w', 'ln_b', 'w1', 'b1', 'w2', 'b2'))
    if resident_layer_weights is None:
        resident_layer_weights = stacked_bytes <= (12 << 20)  # safe across v5e/v6e/v7x
    resident = bool(resident_layer_weights)

    inputs = [lat, ctx,
              ca['lnx_w'], ca['lnx_b'], ca['lnc_w'], ca['lnc_b'],
              ca['wq'], ca['wkv_t'], ca['wo'], ca['bo'],
              cf['ln_w'], cf['ln_b'], cf['w1'], cf['b1'], cf['w2'], cf['b2'],
              sa['ln_w'], sa['ln_b'], sa['wqkv'], sa['wo'], sa['bo'],
              sf['ln_w'], sf['ln_b'], sf['w1'], sf['b1'], sf['w2'], sf['b2']]

    # TODO(synk): constant-index inputs (latents + cross params) could be marked
    # single-buffered (pipeline_mode=pl.Buffered(1)) to halve their VMEM footprint on
    # v7x, and streamed layer weights could use Buffered(3) on v5e to hide weight DMA.
    layer_spec_fn = _full_spec if resident else _layer_spec
    in_specs = ([_full_spec(lat.shape),
                 # TODO(synk): for very long sequences on v7x (64 MiB VMEM), chunk the
                 # ctx block along seq with a flash-style online softmax in the cross
                 # stage instead of one monolithic (bblk, Dc, S) block.
                 pl.BlockSpec((bblk, Dc, S), lambda b, s: (b, 0, 0))]
                + [_full_spec(a.shape) for a in inputs[2:16]]
                + [layer_spec_fn(a.shape) for a in inputs[16:]])

    # Generation-aware VMEM budget (blocks are double-buffered by default).
    blk_bytes = (_nbytes(lat) + _nbytes(ctx) // (B // bblk)
                 + sum(_nbytes(a) for a in inputs[2:16])
                 + sum(_nbytes(a) if resident else _nbytes(a) // L for a in inputs[16:])
                 + R * D * lat.dtype.itemsize)
    scratch_bytes = (R * D + bblk * N * inner_max) * 4
    act_bytes = (3 * 4 * R * max(int(cf['w1'].shape[-1]), 3 * inner_max)
                 + 4 * bblk * N * max(S, N) + 4 * bblk * Dc * S)
    vmem_limit = _vmem_limit_bytes(blk_bytes, scratch_bytes, act_bytes)

    kernel = functools.partial(
        _encoder_kernel,
        cross_heads=cross_heads, cross_dim_head=cross_dim_head,
        latent_heads=latent_heads, latent_dim_head=latent_dim_head,
        bblk=bblk, n_latents=N, layer_resident=resident)

    return pl.pallas_call(
        kernel,
        out_shape=jax.ShapeDtypeStruct((B, N, D), lat.dtype),
        grid=(B // bblk, 1 + L),
        in_specs=in_specs,
        out_specs=pl.BlockSpec((bblk, N, D), lambda b, s: (b, 0, 0)),
        scratch_shapes=[pltpu.VMEM((R, D), jnp.float32),
                        pltpu.VMEM((bblk, N, inner_max), jnp.float32)],
        compiler_params=pltpu.CompilerParams(
            dimension_semantics=("parallel", "arbitrary"),
            vmem_limit_bytes=vmem_limit),
    )(*inputs)


# ------------------------ deterministic parameter init -----------------------

def init_params(key, *, num_layers, dim, num_latents, latent_dim,
                cross_heads, latent_heads, cross_dim_head, latent_dim_head,
                ff_mult=4, weight_dtype=jnp.bfloat16):
    assert num_layers >= 1
    keys = iter(jax.random.split(key, 16 + 8 * num_layers))

    def nrm(shape, scale=0.05):
        return (scale * jax.random.normal(next(keys), shape)).astype(weight_dtype)

    ci = cross_heads * cross_dim_head
    li = latent_heads * latent_dim_head
    hid = latent_dim * ff_mult

    cross_attn = dict(
        lnx_w=jnp.ones((1, latent_dim), jnp.float32),
        lnx_b=jnp.zeros((1, latent_dim), jnp.float32),
        lnc_w=jnp.ones((dim, 1), jnp.float32),
        lnc_b=jnp.zeros((dim, 1), jnp.float32),
        wq=nrm((latent_dim, ci)),
        # to_kv weight kept in PyTorch nn.Linear (out, in) = (2*ci, dim) layout: the
        # kernel contracts the channel axis of the untransposed input against it.
        wkv_t=nrm((2 * ci, dim)),
        wo=nrm((ci, latent_dim)),
        bo=jnp.zeros((1, latent_dim), jnp.float32),
    )
    cross_ff = dict(
        ln_w=jnp.ones((1, latent_dim), jnp.float32),
        ln_b=jnp.zeros((1, latent_dim), jnp.float32),
        w1=nrm((latent_dim, 2 * hid)),
        b1=jnp.zeros((1, 2 * hid), jnp.float32),
        w2=nrm((hid, latent_dim)),
        b2=jnp.zeros((1, latent_dim), jnp.float32),
    )
    self_attn = dict(
        ln_w=jnp.ones((num_layers, 1, latent_dim), jnp.float32),
        ln_b=jnp.zeros((num_layers, 1, latent_dim), jnp.float32),
        wqkv=jnp.stack([nrm((latent_dim, 3 * li)) for _ in range(num_layers)]),
        wo=jnp.stack([nrm((li, latent_dim)) for _ in range(num_layers)]),
        bo=jnp.zeros((num_layers, 1, latent_dim), jnp.float32),
    )
    self_ff = dict(
        ln_w=jnp.ones((num_layers, 1, latent_dim), jnp.float32),
        ln_b=jnp.zeros((num_layers, 1, latent_dim), jnp.float32),
        w1=jnp.stack([nrm((latent_dim, 2 * hid)) for _ in range(num_layers)]),
        b1=jnp.zeros((num_layers, 1, 2 * hid), jnp.float32),
        w2=jnp.stack([nrm((hid, latent_dim)) for _ in range(num_layers)]),
        b2=jnp.zeros((num_layers, 1, latent_dim), jnp.float32),
    )
    return dict(
        latents=jax.random.normal(next(keys), (num_latents, latent_dim), jnp.float32),
        cross_attn=cross_attn, cross_ff=cross_ff,
        self_attn=self_attn, self_ff=self_ff,
    )


# ------------------------------ pure-JAX reference ----------------------------
# Mirrors the kernel's mixed precision (bf16 MXU operands / ctx stream, f32 elsewhere).

def _ref_ln(v, w, b, eps=1e-5):
    mu = v.mean(-1, keepdims=True)
    var = ((v - mu) ** 2).mean(-1, keepdims=True)
    return (v - mu) / jnp.sqrt(var + eps) * w + b


def _ref_cross(lat, ctx, p, heads, dim_head):
    B, M, _ = ctx.shape
    N = lat.shape[0]
    inner = heads * dim_head
    xn = _ref_ln(lat, p['lnx_w'], p['lnx_b'])
    q = jnp.einsum('nd,di->ni', xn.astype(jnp.bfloat16), p['wq'],
                   preferred_element_type=jnp.float32) * dim_head ** -0.5
    cn = _ref_ln(ctx, p['lnc_w'].reshape(-1), p['lnc_b'].reshape(-1))
    kv = jnp.einsum('bmd,ed->bme', cn.astype(jnp.bfloat16), p['wkv_t'],
                    preferred_element_type=jnp.float32)
    k, v = kv[..., :inner], kv[..., inner:]
    qh = q.reshape(N, heads, dim_head).astype(jnp.bfloat16)
    kh = k.reshape(B, M, heads, dim_head).astype(jnp.bfloat16)
    vh = v.reshape(B, M, heads, dim_head).astype(jnp.bfloat16)
    sim = jnp.einsum('nhd,bmhd->bhnm', qh, kh, preferred_element_type=jnp.float32)
    attn = jax.nn.softmax(sim, axis=-1)
    o = jnp.einsum('bhnm,bmhd->bnhd', attn.astype(jnp.bfloat16), vh,
                   preferred_element_type=jnp.float32).reshape(B, N, inner)
    return jnp.einsum('bni,id->bnd', o.astype(jnp.bfloat16), p['wo'],
                      preferred_element_type=jnp.float32) + p['bo']


def _ref_self_attn(x, ln_w, ln_b, wqkv, wo, bo, heads, dim_head):
    B, N, _ = x.shape
    inner = heads * dim_head
    xn = _ref_ln(x, ln_w, ln_b)
    qkv = jnp.einsum('bnd,di->bni', xn.astype(jnp.bfloat16), wqkv,
                     preferred_element_type=jnp.float32)
    q = qkv[..., :inner] * dim_head ** -0.5
    k, v = qkv[..., inner:2 * inner], qkv[..., 2 * inner:]
    qh = q.reshape(B, N, heads, dim_head).astype(jnp.bfloat16)
    kh = k.reshape(B, N, heads, dim_head).astype(jnp.bfloat16)
    vh = v.reshape(B, N, heads, dim_head).astype(jnp.bfloat16)
    sim = jnp.einsum('bnhd,bmhd->bhnm', qh, kh, preferred_element_type=jnp.float32)
    attn = jax.nn.softmax(sim, axis=-1)
    o = jnp.einsum('bhnm,bmhd->bnhd', attn.astype(jnp.bfloat16), vh,
                   preferred_element_type=jnp.float32).reshape(B, N, inner)
    return jnp.einsum('bni,id->bnd', o.astype(jnp.bfloat16), wo,
                      preferred_element_type=jnp.float32) + bo


def _ref_ff(x, ln_w, ln_b, w1, b1, w2, b2):
    xn = _ref_ln(x, ln_w, ln_b)
    h = jnp.einsum('...d,dk->...k', xn.astype(jnp.bfloat16), w1,
                   preferred_element_type=jnp.float32) + b1
    half = h.shape[-1] // 2
    a, g = h[..., :half], h[..., half:]
    hg = a * _gelu_tanh(g)
    return jnp.einsum('...k,kd->...d', hg.astype(jnp.bfloat16), w2,
                      preferred_element_type=jnp.float32) + b2


def _ref_encoder(data, params, *, cross_heads, cross_dim_head,
                 latent_heads, latent_dim_head, ctx_dtype=jnp.bfloat16):
    # mirrors the kernel: ctx streamed in bf16, LN statistics in f32
    ctx = jnp.transpose(data, (0, 2, 1)).astype(ctx_dtype).astype(jnp.float32)
    lat = params['latents'].astype(jnp.float32)
    ca, cf = params['cross_attn'], params['cross_ff']
    x = lat[None] + _ref_cross(lat, ctx, ca, cross_heads, cross_dim_head)
    x = x + _ref_ff(x, cf['ln_w'], cf['ln_b'], cf['w1'], cf['b1'], cf['w2'], cf['b2'])
    sa, sf = params['self_attn'], params['self_ff']
    for l in range(sa['wqkv'].shape[0]):
        x = x + _ref_self_attn(x, sa['ln_w'][l], sa['ln_b'][l], sa['wqkv'][l],
                               sa['wo'][l], sa['bo'][l], latent_heads, latent_dim_head)
        x = x + _ref_ff(x, sf['ln_w'][l], sf['ln_b'][l], sf['w1'][l], sf['b1'][l],
                        sf['w2'][l], sf['b2'][l])
    return x


# ----------------------------------- main -------------------------------------

if __name__ == "__main__":
    # small, module-consistent shapes
    B, DIM, SEQ = 2, 32, 16
    NUM_LAYERS = 2
    NUM_LATENTS, LATENT_DIM = 16, 64
    CROSS_HEADS, CROSS_DIM_HEAD = 1, 16
    LATENT_HEADS, LATENT_DIM_HEAD = 2, 16

    key = jax.random.PRNGKey(0)
    k_data, k_params = jax.random.split(key)

    # data in PyTorch layout (B, dim, seq); the kernel consumes it untransposed.
    data = jax.random.normal(k_data, (B, DIM, SEQ), jnp.float32)

    params = init_params(
        k_params, num_layers=NUM_LAYERS, dim=DIM, num_latents=NUM_LATENTS,
        latent_dim=LATENT_DIM, cross_heads=CROSS_HEADS,
        latent_heads=LATENT_HEADS, cross_dim_head=CROSS_DIM_HEAD,
        latent_dim_head=LATENT_DIM_HEAD)

    ref = jax.block_until_ready(_ref_encoder(
        data, params, cross_heads=CROSS_HEADS, cross_dim_head=CROSS_DIM_HEAD,
        latent_heads=LATENT_HEADS, latent_dim_head=LATENT_DIM_HEAD))

    # Exercise both the VMEM-resident and the streamed layer-weight paths.
    for resident in (True, False):
        out = perceiver_io_encoder(
            data, params, cross_heads=CROSS_HEADS, cross_dim_head=CROSS_DIM_HEAD,
            latent_heads=LATENT_HEADS, latent_dim_head=LATENT_DIM_HEAD,
            resident_layer_weights=resident)
        out = jax.block_until_ready(out)
        assert out.shape == (B, NUM_LATENTS, LATENT_DIM), out.shape
        err = float(jnp.max(jnp.abs(out - ref)))
        assert err < 5e-3, (resident, err)

    print("KERNEL_OK")
</pallas_src>

<mosaic_0001>
module attributes {stable_mosaic.version = 11 : i64} {
  func.func @_encoder_kernel(%arg0: i32, %arg1: i32, %arg2: memref<16x64xf32, #tpu.memory_space<vmem>>, %arg3: memref<2x32x16xbf16, #tpu.memory_space<vmem>>, %arg4: memref<1x64xf32, #tpu.memory_space<vmem>>, %arg5: memref<1x64xf32, #tpu.memory_space<vmem>>, %arg6: memref<32x1xf32, #tpu.memory_space<vmem>>, %arg7: memref<32x1xf32, #tpu.memory_space<vmem>>, %arg8: memref<64x16xbf16, #tpu.memory_space<vmem>>, %arg9: memref<32x32xbf16, #tpu.memory_space<vmem>>, %arg10: memref<16x64xbf16, #tpu.memory_space<vmem>>, %arg11: memref<1x64xf32, #tpu.memory_space<vmem>>, %arg12: memref<1x64xf32, #tpu.memory_space<vmem>>, %arg13: memref<1x64xf32, #tpu.memory_space<vmem>>, %arg14: memref<64x512xbf16, #tpu.memory_space<vmem>>, %arg15: memref<1x512xf32, #tpu.memory_space<vmem>>, %arg16: memref<256x64xbf16, #tpu.memory_space<vmem>>, %arg17: memref<1x64xf32, #tpu.memory_space<vmem>>, %arg18: memref<2x1x64xf32, #tpu.memory_space<vmem>>, %arg19: memref<2x1x64xf32, #tpu.memory_space<vmem>>, %arg20: memref<2x64x96xbf16, #tpu.memory_space<vmem>>, %arg21: memref<2x32x64xbf16, #tpu.memory_space<vmem>>, %arg22: memref<2x1x64xf32, #tpu.memory_space<vmem>>, %arg23: memref<2x1x64xf32, #tpu.memory_space<vmem>>, %arg24: memref<2x1x64xf32, #tpu.memory_space<vmem>>, %arg25: memref<2x64x512xbf16, #tpu.memory_space<vmem>>, %arg26: memref<2x1x512xf32, #tpu.memory_space<vmem>>, %arg27: memref<2x256x64xbf16, #tpu.memory_space<vmem>>, %arg28: memref<2x1x64xf32, #tpu.memory_space<vmem>>, %arg29: memref<2x16x64xf32, #tpu.memory_space<vmem>>, %arg30: memref<32x64xf32, #tpu.memory_space<vmem>>, %arg31: memref<2x16x32xf32, #tpu.memory_space<vmem>>) attributes {dimension_semantics = [#tpu.dimension_semantics<parallel>, #tpu.dimension_semantics<arbitrary>], iteration_bounds = array<i64: 1, 3>, scalar_prefetch = 0 : i64, scratch_operands = 2 : i64, tpu.core_type = #tpu.core_type<tc>, window_params = [{pipeline_mode = #tpu.pipeline_mode<synchronous>, transform_indices = @transform_0, window_bounds = array<i64: 16, 64>}, {transform_indices = @transform_1, window_bounds = array<i64: 2, 32, 16>}, {pipeline_mode = #tpu.pipeline_mode<synchronous>, transform_indices = @transform_2, window_bounds = array<i64: 1, 64>}, {pipeline_mode = #tpu.pipeline_mode<synchronous>, transform_indices = @transform_3, window_bounds = array<i64: 1, 64>}, {pipeline_mode = #tpu.pipeline_mode<synchronous>, transform_indices = @transform_4, window_bounds = array<i64: 32, 1>}, {pipeline_mode = #tpu.pipeline_mode<synchronous>, transform_indices = @transform_5, window_bounds = array<i64: 32, 1>}, {pipeline_mode = #tpu.pipeline_mode<synchronous>, transform_indices = @transform_6, window_bounds = array<i64: 64, 16>}, {pipeline_mode = #tpu.pipeline_mode<synchronous>, transform_indices = @transform_7, window_bounds = array<i64: 32, 32>}, {pipeline_mode = #tpu.pipeline_mode<synchronous>, transform_indices = @transform_8, window_bounds = array<i64: 16, 64>}, {pipeline_mode = #tpu.pipeline_mode<synchronous>, transform_indices = @transform_9, window_bounds = array<i64: 1, 64>}, {pipeline_mode = #tpu.pipeline_mode<synchronous>, transform_indices = @transform_10, window_bounds = array<i64: 1, 64>}, {pipeline_mode = #tpu.pipeline_mode<synchronous>, transform_indices = @transform_11, window_bounds = array<i64: 1, 64>}, {pipeline_mode = #tpu.pipeline_mode<synchronous>, transform_indices = @transform_12, window_bounds = array<i64: 64, 512>}, {pipeline_mode = #tpu.pipeline_mode<synchronous>, transform_indices = @transform_13, window_bounds = array<i64: 1, 512>}, {pipeline_mode = #tpu.pipeline_mode<synchronous>, transform_indices = @transform_14, window_bounds = array<i64: 256, 64>}, {pipeline_mode = #tpu.pipeline_mode<synchronous>, transform_indices = @transform_15, window_bounds = array<i64: 1, 64>}, {pipeline_mode = #tpu.pipeline_mode<synchronous>, transform_indices = @transform_16, window_bounds = array<i64: 2, 1, 64>}, {pipeline_mode = #tpu.pipeline_mode<synchronous>, transform_indices = @transform_17, window_bounds = array<i64: 2, 1, 64>}, {pipeline_mode = #tpu.pipeline_mode<synchronous>, transform_indices = @transform_18, window_bounds = array<i64: 2, 64, 96>}, {pipeline_mode = #tpu.pipeline_mode<synchronous>, transform_indices = @transform_19, window_bounds = array<i64: 2, 32, 64>}, {pipeline_mode = #tpu.pipeline_mode<synchronous>, transform_indices = @transform_20, window_bounds = array<i64: 2, 1, 64>}, {pipeline_mode = #tpu.pipeline_mode<synchronous>, transform_indices = @transform_21, window_bounds = array<i64: 2, 1, 64>}, {pipeline_mode = #tpu.pipeline_mode<synchronous>, transform_indices = @transform_22, window_bounds = array<i64: 2, 1, 64>}, {pipeline_mode = #tpu.pipeline_mode<synchronous>, transform_indices = @transform_23, window_bounds = array<i64: 2, 64, 512>}, {pipeline_mode = #tpu.pipeline_mode<synchronous>, transform_indices = @transform_24, window_bounds = array<i64: 2, 1, 512>}, {pipeline_mode = #tpu.pipeline_mode<synchronous>, transform_indices = @transform_25, window_bounds = array<i64: 2, 256, 64>}, {pipeline_mode = #tpu.pipeline_mode<synchronous>, transform_indices = @transform_26, window_bounds = array<i64: 2, 1, 64>}, {transform_indices = @transform_27, window_bounds = array<i64: 2, 16, 64>}]} {
    %c0_i32 = arith.constant 0 : i32
    %0 = arith.cmpi eq, %arg1, %c0_i32 : i32
    %1 = arith.extui %0 : i1 to i32
    %c0_i32_0 = arith.constant 0 : i32
    %2 = arith.cmpi ne, %1, %c0_i32_0 : i32
    scf.if %2 {
      %c0 = arith.constant 0 : index
      %c0_4 = arith.constant 0 : index
      %9 = vector.load %arg2[%c0, %c0_4] : memref<16x64xf32, #tpu.memory_space<vmem>>, vector<16x64xf32>
      %c0_5 = arith.constant 0 : index
      %c0_6 = arith.constant 0 : index
      %10 = vector.load %arg4[%c0_5, %c0_6] : memref<1x64xf32, #tpu.memory_space<vmem>>, vector<1x64xf32>
      %c0_7 = arith.constant 0 : index
      %c0_8 = arith.constant 0 : index
      %11 = vector.load %arg5[%c0_7, %c0_8] : memref<1x64xf32, #tpu.memory_space<vmem>>, vector<1x64xf32>
      %cst = arith.constant dense<0.000000e+00> : vector<16xf32>
      %12 = vector.multi_reduction <add>, %9, %cst [1] : vector<16x64xf32> to vector<16xf32>
      %13 = vector.shape_cast %12 : vector<16xf32> to vector<16x1xf32>
      %cst_9 = arith.constant 6.400000e+01 : f32
      %14 = vector.broadcast %cst_9 : f32 to vector<16x1xf32>
      %15 = arith.divf %13, %14 : vector<16x1xf32>
      %16 = vector.broadcast %15 : vector<16x1xf32> to vector<16x64xf32>
      %17 = arith.subf %9, %16 : vector<16x64xf32>
      %18 = arith.mulf %17, %17 : vector<16x64xf32>
      %cst_10 = arith.constant dense<0.000000e+00> : vector<16xf32>
      %19 = vector.multi_reduction <add>, %18, %cst_10 [1] : vector<16x64xf32> to vector<16xf32>
      %20 = vector.shape_cast %19 : vector<16xf32> to vector<16x1xf32>
      %cst_11 = arith.constant 6.400000e+01 : f32
      %21 = vector.broadcast %cst_11 : f32 to vector<16x1xf32>
      %22 = arith.divf %20, %21 : vector<16x1xf32>
      %23 = vector.broadcast %15 : vector<16x1xf32> to vector<16x64xf32>
      %24 = arith.subf %9, %23 : vector<16x64xf32>
      %cst_12 = arith.constant 9.99999974E-6 : f32
      %25 = vector.broadcast %cst_12 : f32 to vector<16x1xf32>
      %26 = arith.addf %22, %25 : vector<16x1xf32>
      %27 = math.rsqrt %26 : vector<16x1xf32>
      %28 = vector.broadcast %27 : vector<16x1xf32> to vector<16x64xf32>
      %29 = arith.mulf %24, %28 : vector<16x64xf32>
      %30 = vector.broadcast %10 : vector<1x64xf32> to vector<16x64xf32>
      %31 = arith.mulf %29, %30 : vector<16x64xf32>
      %32 = vector.broadcast %11 : vector<1x64xf32> to vector<16x64xf32>
      %33 = arith.addf %31, %32 : vector<16x64xf32>
      %34 = arith.truncf %33 : vector<16x64xf32> to vector<16x64xbf16>
      %c0_13 = arith.constant 0 : index
      %c0_14 = arith.constant 0 : index
      %35 = vector.load %arg8[%c0_13, %c0_14] : memref<64x16xbf16, #tpu.memory_space<vmem>>, vector<64x16xbf16>
      %cst_15 = arith.constant dense<0.000000e+00> : vector<16x16xf32>
      %36 = tpu.matmul %34, %35, %cst_15 {dimension_numbers = #tpu.dot_dimension_numbers<[1], [0], [0], [1], [0, 0, 1, 1], [], []>} : vector<16x64xbf16>, vector<64x16xbf16>, vector<16x16xf32> -> vector<16x16xf32>
      %cst_16 = arith.constant 2.500000e-01 : f32
      %37 = vector.broadcast %cst_16 : f32 to vector<16x16xf32>
      %38 = arith.mulf %36, %37 : vector<16x16xf32>
      %39 = arith.truncf %38 : vector<16x16xf32> to vector<16x16xbf16>
      %40 = vector.shape_cast %39 : vector<16x16xbf16> to vector<1x16x16xbf16>
      %41 = vector.broadcast %40 : vector<1x16x16xbf16> to vector<2x16x16xbf16>
      %c0_17 = arith.constant 0 : index
      %c0_18 = arith.constant 0 : index
      %c0_19 = arith.constant 0 : index
      %42 = vector.load %arg3[%c0_17, %c0_18, %c0_19] : memref<2x32x16xbf16, #tpu.memory_space<vmem>>, vector<2x32x16xbf16>
      %43 = arith.extf %42 : vector<2x32x16xbf16> to vector<2x32x16xf32>
      %cst_20 = arith.constant dense<0.000000e+00> : vector<2x16xf32>
      %44 = vector.multi_reduction <add>, %43, %cst_20 [1] : vector<2x32x16xf32> to vector<2x16xf32>
      %45 = vector.shape_cast %44 : vector<2x16xf32> to vector<2x1x16xf32>
      %cst_21 = arith.constant 3.200000e+01 : f32
      %46 = vector.broadcast %cst_21 : f32 to vector<2x1x16xf32>
      %47 = arith.divf %45, %46 : vector<2x1x16xf32>
      %48 = vector.broadcast %47 : vector<2x1x16xf32> to vector<2x32x16xf32>
      %49 = arith.subf %43, %48 : vector<2x32x16xf32>
      %50 = arith.mulf %49, %49 : vector<2x32x16xf32>
      %cst_22 = arith.constant dense<0.000000e+00> : vector<2x16xf32>
      %51 = vector.multi_reduction <add>, %50, %cst_22 [1] : vector<2x32x16xf32> to vector<2x16xf32>
      %52 = vector.shape_cast %51 : vector<2x16xf32> to vector<2x1x16xf32>
      %cst_23 = arith.constant 3.200000e+01 : f32
      %53 = vector.broadcast %cst_23 : f32 to vector<2x1x16xf32>
      %54 = arith.divf %52, %53 : vector<2x1x16xf32>
      %55 = vector.broadcast %47 : vector<2x1x16xf32> to vector<2x32x16xf32>
      %56 = arith.subf %43, %55 : vector<2x32x16xf32>
      %cst_24 = arith.constant 9.99999974E-6 : f32
      %57 = vector.broadcast %cst_24 : f32 to vector<2x1x16xf32>
      %58 = arith.addf %54, %57 : vector<2x1x16xf32>
      %59 = math.rsqrt %58 : vector<2x1x16xf32>
      %60 = vector.broadcast %59 : vector<2x1x16xf32> to vector<2x32x16xf32>
      %61 = arith.mulf %56, %60 : vector<2x32x16xf32>
      %c0_25 = arith.constant 0 : index
      %c0_26 = arith.constant 0 : index
      %62 = vector.load %arg6[%c0_25, %c0_26] : memref<32x1xf32, #tpu.memory_space<vmem>>, vector<32x1xf32>
      %63 = vector.shape_cast %62 : vector<32x1xf32> to vector<1x32x1xf32>
      %64 = vector.broadcast %63 : vector<1x32x1xf32> to vector<2x32x16xf32>
      %65 = arith.mulf %61, %64 : vector<2x32x16xf32>
      %c0_27 = arith.constant 0 : index
      %c0_28 = arith.constant 0 : index
      %66 = vector.load %arg7[%c0_27, %c0_28] : memref<32x1xf32, #tpu.memory_space<vmem>>, vector<32x1xf32>
      %67 = vector.shape_cast %66 : vector<32x1xf32> to vector<1x32x1xf32>
      %68 = vector.broadcast %67 : vector<1x32x1xf32> to vector<2x32x16xf32>
      %69 = arith.addf %65, %68 : vector<2x32x16xf32>
      %c0_29 = arith.constant 0 : index
      %c0_30 = arith.constant 0 : index
      %70 = vector.load %arg9[%c0_29, %c0_30] : memref<32x32xbf16, #tpu.memory_space<vmem>>, vector<32x32xbf16>
      %71 = vector.shape_cast %70 : vector<32x32xbf16> to vector<1x32x32xbf16>
      %72 = vector.broadcast %71 : vector<1x32x32xbf16> to vector<2x32x32xbf16>
      %73 = arith.truncf %69 : vector<2x32x16xf32> to vector<2x32x16xbf16>
      "tpu.trace_start"() <{level = 10 : i32, message = "bed,bds->bes"}> : () -> ()
      %cst_31 = arith.constant dense<0.000000e+00> : vector<2x32x16xf32>
      %74 = tpu.matmul %72, %73, %cst_31 {dimension_numbers = #tpu.dot_dimension_numbers<[2], [1], [1], [2], [0, 0, 0, 1, 1, 2], [0], [0]>} : vector<2x32x32xbf16>, vector<2x32x16xbf16>, vector<2x32x16xf32> -> vector<2x32x16xf32>
      "tpu.trace_stop"() : () -> ()
      %75 = vector.extract_strided_slice %74 {offsets = [0, 0, 0], sizes = [2, 16, 16], strides = [1, 1, 1]} : vector<2x32x16xf32> to vector<2x16x16xf32>
      %76 = arith.truncf %75 : vector<2x16x16xf32> to vector<2x16x16xbf16>
      %77 = vector.extract_strided_slice %74 {offsets = [0, 16, 0], sizes = [2, 16, 16], strides = [1, 1, 1]} : vector<2x32x16xf32> to vector<2x16x16xf32>
      %78 = arith.truncf %77 : vector<2x16x16xf32> to vector<2x16x16xbf16>
      "tpu.trace_start"() <{level = 10 : i32, message = "bnd,bds->bns"}> : () -> ()
      %cst_32 = arith.constant dense<0.000000e+00> : vector<2x16x16xf32>
      %79 = tpu.matmul %41, %76, %cst_32 {dimension_numbers = #tpu.dot_dimension_numbers<[2], [1], [1], [2], [0, 0, 0, 1, 1, 2], [0], [0]>} : vector<2x16x16xbf16>, vector<2x16x16xbf16>, vector<2x16x16xf32> -> vector<2x16x16xf32>
      "tpu.trace_stop"() : () -> ()
      %cst_33 = arith.constant dense<0xFF800000> : vector<2x16xf32>
      %80 = vector.multi_reduction <maximumf>, %79, %cst_33 [2] : vector<2x16x16xf32> to vector<2x16xf32>
      %81 = vector.shape_cast %80 : vector<2x16xf32> to vector<2x16x1xf32>
      %82 = vector.broadcast %81 : vector<2x16x1xf32> to vector<2x16x16xf32>
      %83 = arith.subf %79, %82 : vector<2x16x16xf32>
      %84 = math.exp %83 : vector<2x16x16xf32>
      %cst_34 = arith.constant dense<0.000000e+00> : vector<2x16xf32>
      %85 = vector.multi_reduction <add>, %84, %cst_34 [2] : vector<2x16x16xf32> to vector<2x16xf32>
      %86 = vector.shape_cast %85 : vector<2x16xf32> to vector<2x16x1xf32>
      %87 = tpu.reciprocal %86 {approx = true} : vector<2x16x1xf32> -> vector<2x16x1xf32>
      %88 = vector.broadcast %87 : vector<2x16x1xf32> to vector<2x16x16xf32>
      %89 = arith.mulf %84, %88 : vector<2x16x16xf32>
      %90 = arith.truncf %89 : vector<2x16x16xf32> to vector<2x16x16xbf16>
      "tpu.trace_start"() <{level = 10 : i32, message = "bns,bds->bnd"}> : () -> ()
      %cst_35 = arith.constant dense<0.000000e+00> : vector<2x16x16xf32>
      %91 = tpu.matmul %90, %78, %cst_35 {dimension_numbers = #tpu.dot_dimension_numbers<[2], [2], [1], [1], [0, 0, 0, 1, 1, 1], [0], [0]>} : vector<2x16x16xbf16>, vector<2x16x16xbf16>, vector<2x16x16xf32> -> vector<2x16x16xf32>
      "tpu.trace_stop"() : () -> ()
      %c0_36 = arith.constant 0 : index
      %c0_37 = arith.constant 0 : index
      %c0_38 = arith.constant 0 : index
      %92 = vector.load %arg31[%c0_36, %c0_37, %c0_38] : memref<2x16x32xf32, #tpu.memory_space<vmem>>, vector<2x16x16xf32>
      tpu.vector_store %arg31[%c0_36, %c0_37, %c0_38], %91 {strides = array<i32>} : memref<2x16x32xf32, #tpu.memory_space<vmem>>, vector<2x16x16xf32>,
      %c0_39 = arith.constant 0 : index
      %c0_40 = arith.constant 0 : index
      %c0_41 = arith.constant 0 : index
      %93 = vector.load %arg31[%c0_39, %c0_40, %c0_41] : memref<2x16x32xf32, #tpu.memory_space<vmem>>, vector<2x16x16xf32>
      %94 = vector.shape_cast %93 : vector<2x16x16xf32> to vector<32x16xf32>
      %95 = arith.truncf %94 : vector<32x16xf32> to vector<32x16xbf16>
      %c0_42 = arith.constant 0 : index
      %c0_43 = arith.constant 0 : index
      %96 = vector.load %arg10[%c0_42, %c0_43] : memref<16x64xbf16, #tpu.memory_space<vmem>>, vector<16x64xbf16>
      %cst_44 = arith.constant dense<0.000000e+00> : vector<32x64xf32>
      %97 = tpu.matmul %95, %96, %cst_44 {dimension_numbers = #tpu.dot_dimension_numbers<[1], [0], [0], [1], [0, 0, 1, 1], [], []>} : vector<32x16xbf16>, vector<16x64xbf16>, vector<32x64xf32> -> vector<32x64xf32>
      %c0_45 = arith.constant 0 : index
      %c0_46 = arith.constant 0 : index
      %98 = vector.load %arg11[%c0_45, %c0_46] : memref<1x64xf32, #tpu.memory_space<vmem>>, vector<1x64xf32>
      %99 = vector.broadcast %98 : vector<1x64xf32> to vector<32x64xf32>
      %100 = arith.addf %97, %99 : vector<32x64xf32>
      %101 = vector.shape_cast %100 : vector<32x64xf32> to vector<2x16x64xf32>
      %102 = vector.shape_cast %9 : vector<16x64xf32> to vector<1x16x64xf32>
      %103 = vector.broadcast %102 : vector<1x16x64xf32> to vector<2x16x64xf32>
      %104 = arith.addf %101, %103 : vector<2x16x64xf32>
      %105 = vector.shape_cast %104 : vector<2x16x64xf32> to vector<32x64xf32>
      %c0_47 = arith.constant 0 : index
      %c0_48 = arith.constant 0 : index
      %106 = vector.load %arg12[%c0_47, %c0_48] : memref<1x64xf32, #tpu.memory_space<vmem>>, vector<1x64xf32>
      %c0_49 = arith.constant 0 : index
      %c0_50 = arith.constant 0 : index
      %107 = vector.load %arg13[%c0_49, %c0_50] : memref<1x64xf32, #tpu.memory_space<vmem>>, vector<1x64xf32>
      %c0_51 = arith.constant 0 : index
      %c0_52 = arith.constant 0 : index
      %108 = vector.load %arg14[%c0_51, %c0_52] : memref<64x512xbf16, #tpu.memory_space<vmem>>, vector<64x512xbf16>
      %c0_53 = arith.constant 0 : index
      %c0_54 = arith.constant 0 : index
      %109 = vector.load %arg15[%c0_53, %c0_54] : memref<1x512xf32, #tpu.memory_space<vmem>>, vector<1x512xf32>
      %c0_55 = arith.constant 0 : index
      %c0_56 = arith.constant 0 : index
      %110 = vector.load %arg16[%c0_55, %c0_56] : memref<256x64xbf16, #tpu.memory_space<vmem>>, vector<256x64xbf16>
      %c0_57 = arith.constant 0 : index
      %c0_58 = arith.constant 0 : index
      %111 = vector.load %arg17[%c0_57, %c0_58] : memref<1x64xf32, #tpu.memory_space<vmem>>, vector<1x64xf32>
      %cst_59 = arith.constant dense<0.000000e+00> : vector<32xf32>
      %112 = vector.multi_reduction <add>, %105, %cst_59 [1] : vector<32x64xf32> to vector<32xf32>
      %113 = vector.shape_cast %112 : vector<32xf32> to vector<32x1xf32>
      %cst_60 = arith.constant 6.400000e+01 : f32
      %114 = vector.broadcast %cst_60 : f32 to vector<32x1xf32>
      %115 = arith.divf %113, %114 : vector<32x1xf32>
      %116 = vector.broadcast %115 : vector<32x1xf32> to vector<32x64xf32>
      %117 = arith.subf %105, %116 : vector<32x64xf32>
      %118 = arith.mulf %117, %117 : vector<32x64xf32>
      %cst_61 = arith.constant dense<0.000000e+00> : vector<32xf32>
      %119 = vector.multi_reduction <add>, %118, %cst_61 [1] : vector<32x64xf32> to vector<32xf32>
      %120 = vector.shape_cast %119 : vector<32xf32> to vector<32x1xf32>
      %cst_62 = arith.constant 6.400000e+01 : f32
      %121 = vector.broadcast %cst_62 : f32 to vector<32x1xf32>
      %122 = arith.divf %120, %121 : vector<32x1xf32>
      %123 = vector.broadcast %115 : vector<32x1xf32> to vector<32x64xf32>
      %124 = arith.subf %105, %123 : vector<32x64xf32>
      %cst_63 = arith.constant 9.99999974E-6 : f32
      %125 = vector.broadcast %cst_63 : f32 to vector<32x1xf32>
      %126 = arith.addf %122, %125 : vector<32x1xf32>
      %127 = math.rsqrt %126 : vector<32x1xf32>
      %128 = vector.broadcast %127 : vector<32x1xf32> to vector<32x64xf32>
      %129 = arith.mulf %124, %128 : vector<32x64xf32>
      %130 = vector.broadcast %106 : vector<1x64xf32> to vector<32x64xf32>
      %131 = arith.mulf %129, %130 : vector<32x64xf32>
      %132 = vector.broadcast %107 : vector<1x64xf32> to vector<32x64xf32>
      %133 = arith.addf %131, %132 : vector<32x64xf32>
      %134 = arith.truncf %133 : vector<32x64xf32> to vector<32x64xbf16>
      %cst_64 = arith.constant dense<0.000000e+00> : vector<32x512xf32>
      %135 = tpu.matmul %134, %108, %cst_64 {dimension_numbers = #tpu.dot_dimension_numbers<[1], [0], [0], [1], [0, 0, 1, 1], [], []>} : vector<32x64xbf16>, vector<64x512xbf16>, vector<32x512xf32> -> vector<32x512xf32>
      %136 = vector.broadcast %109 : vector<1x512xf32> to vector<32x512xf32>
      %137 = arith.addf %135, %136 : vector<32x512xf32>
      %138 = vector.extract_strided_slice %137 {offsets = [0, 0], sizes = [32, 256], strides = [1, 1]} : vector<32x512xf32> to vector<32x256xf32>
      %139 = vector.extract_strided_slice %137 {offsets = [0, 256], sizes = [32, 256], strides = [1, 1]} : vector<32x512xf32> to vector<32x256xf32>
      %cst_65 = arith.constant 5.000000e-01 : f32
      %140 = vector.broadcast %cst_65 : f32 to vector<32x256xf32>
      %141 = arith.mulf %140, %139 : vector<32x256xf32>
      %cst_66 = arith.constant 4.471500e-02 : f32
      %142 = vector.broadcast %cst_66 : f32 to vector<32x256xf32>
      %143 = arith.mulf %142, %139 : vector<32x256xf32>
      %144 = arith.mulf %143, %139 : vector<32x256xf32>
      %145 = arith.mulf %144, %139 : vector<32x256xf32>
      %146 = arith.addf %139, %145 : vector<32x256xf32>
      %cst_67 = arith.constant 0.797884583 : f32
      %147 = vector.broadcast %cst_67 : f32 to vector<32x256xf32>
      %148 = arith.mulf %147, %146 : vector<32x256xf32>
      %149 = math.tanh %148 : vector<32x256xf32>
      %cst_68 = arith.constant 1.000000e+00 : f32
      %150 = vector.broadcast %cst_68 : f32 to vector<32x256xf32>
      %151 = arith.addf %150, %149 : vector<32x256xf32>
      %152 = arith.mulf %141, %151 : vector<32x256xf32>
      %153 = arith.mulf %138, %152 : vector<32x256xf32>
      %154 = arith.truncf %153 : vector<32x256xf32> to vector<32x256xbf16>
      %cst_69 = arith.constant dense<0.000000e+00> : vector<32x64xf32>
      %155 = tpu.matmul %154, %110, %cst_69 {dimension_numbers = #tpu.dot_dimension_numbers<[1], [0], [0], [1], [0, 0, 1, 1], [], []>} : vector<32x256xbf16>, vector<256x64xbf16>, vector<32x64xf32> -> vector<32x64xf32>
      %156 = vector.broadcast %111 : vector<1x64xf32> to vector<32x64xf32>
      %157 = arith.addf %155, %156 : vector<32x64xf32>
      %158 = arith.addf %105, %157 : vector<32x64xf32>
      %c0_70 = arith.constant 0 : index
      %c0_71 = arith.constant 0 : index
      %159 = vector.load %arg30[%c0_70, %c0_71] : memref<32x64xf32, #tpu.memory_space<vmem>>, vector<32x64xf32>
      tpu.vector_store %arg30[%c0_70, %c0_71], %158 {strides = array<i32>} : memref<32x64xf32, #tpu.memory_space<vmem>>, vector<32x64xf32>,
    } else {
    }
    %c0_i32_1 = arith.constant 0 : i32
    %3 = arith.cmpi sgt, %arg1, %c0_i32_1 : i32
    %4 = arith.extui %3 : i1 to i32
    %c0_i32_2 = arith.constant 0 : i32
    %5 = arith.cmpi ne, %4, %c0_i32_2 : i32
    scf.if %5 {
      %c1_i32 = arith.constant 1 : i32
      %9 = arith.subi %arg1, %c1_i32 : i32
      %c0_i32_4 = arith.constant 0 : i32
      %10 = arith.maxsi %9, %c0_i32_4 : i32
      %c0 = arith.constant 0 : index
      %c0_5 = arith.constant 0 : index
      %11 = vector.load %arg30[%c0, %c0_5] : memref<32x64xf32, #tpu.memory_space<vmem>>, vector<32x64xf32>
      %12 = arith.index_cast %10 : i32 to index
      %c0_6 = arith.constant 0 : index
      %c0_7 = arith.constant 0 : index
      %13 = vector.load %arg18[%12, %c0_6, %c0_7] : memref<2x1x64xf32, #tpu.memory_space<vmem>>, vector<1x1x64xf32>
      %14 = vector.shape_cast %13 : vector<1x1x64xf32> to vector<1x64xf32>
      %15 = arith.index_cast %10 : i32 to index
      %c0_8 = arith.constant 0 : index
      %c0_9 = arith.constant 0 : index
      %16 = vector.load %arg19[%15, %c0_8, %c0_9] : memref<2x1x64xf32, #tpu.memory_space<vmem>>, vector<1x1x64xf32>
      %17 = vector.shape_cast %16 : vector<1x1x64xf32> to vector<1x64xf32>
      %cst = arith.constant dense<0.000000e+00> : vector<32xf32>
      %18 = vector.multi_reduction <add>, %11, %cst [1] : vector<32x64xf32> to vector<32xf32>
      %19 = vector.shape_cast %18 : vector<32xf32> to vector<32x1xf32>
      %cst_10 = arith.constant 6.400000e+01 : f32
      %20 = vector.broadcast %cst_10 : f32 to vector<32x1xf32>
      %21 = arith.divf %19, %20 : vector<32x1xf32>
      %22 = vector.broadcast %21 : vector<32x1xf32> to vector<32x64xf32>
      %23 = arith.subf %11, %22 : vector<32x64xf32>
      %24 = arith.mulf %23, %23 : vector<32x64xf32>
      %cst_11 = arith.constant dense<0.000000e+00> : vector<32xf32>
      %25 = vector.multi_reduction <add>, %24, %cst_11 [1] : vector<32x64xf32> to vector<32xf32>
      %26 = vector.shape_cast %25 : vector<32xf32> to vector<32x1xf32>
      %cst_12 = arith.constant 6.400000e+01 : f32
      %27 = vector.broadcast %cst_12 : f32 to vector<32x1xf32>
      %28 = arith.divf %26, %27 : vector<32x1xf32>
      %29 = vector.broadcast %21 : vector<32x1xf32> to vector<32x64xf32>
      %30 = arith.subf %11, %29 : vector<32x64xf32>
      %cst_13 = arith.constant 9.99999974E-6 : f32
      %31 = vector.broadcast %cst_13 : f32 to vector<32x1xf32>
      %32 = arith.addf %28, %31 : vector<32x1xf32>
      %33 = math.rsqrt %32 : vector<32x1xf32>
      %34 = vector.broadcast %33 : vector<32x1xf32> to vector<32x64xf32>
      %35 = arith.mulf %30, %34 : vector<32x64xf32>
      %36 = vector.broadcast %14 : vector<1x64xf32> to vector<32x64xf32>
      %37 = arith.mulf %35, %36 : vector<32x64xf32>
      %38 = vector.broadcast %17 : vector<1x64xf32> to vector<32x64xf32>
      %39 = arith.addf %37, %38 : vector<32x64xf32>
      %40 = arith.truncf %39 : vector<32x64xf32> to vector<32x64xbf16>
      %41 = arith.index_cast %10 : i32 to index
      %c0_14 = arith.constant 0 : index
      %c0_15 = arith.constant 0 : index
      %42 = vector.load %arg20[%41, %c0_14, %c0_15] : memref<2x64x96xbf16, #tpu.memory_space<vmem>>, vector<1x64x96xbf16>
      %43 = vector.shape_cast %42 : vector<1x64x96xbf16> to vector<64x96xbf16>
      %cst_16 = arith.constant dense<0.000000e+00> : vector<32x96xf32>
      %44 = tpu.matmul %40, %43, %cst_16 {dimension_numbers = #tpu.dot_dimension_numbers<[1], [0], [0], [1], [0, 0, 1, 1], [], []>} : vector<32x64xbf16>, vector<64x96xbf16>, vector<32x96xf32> -> vector<32x96xf32>
      %45 = vector.shape_cast %44 : vector<32x96xf32> to vector<2x16x96xf32>
      %46 = vector.extract_strided_slice %45 {offsets = [0, 0, 0], sizes = [2, 16, 32], strides = [1, 1, 1]} : vector<2x16x96xf32> to vector<2x16x32xf32>
      %cst_17 = arith.constant 2.500000e-01 : f32
      %47 = vector.broadcast %cst_17 : f32 to vector<2x16x32xf32>
      %48 = arith.mulf %46, %47 : vector<2x16x32xf32>
      %49 = arith.truncf %48 : vector<2x16x32xf32> to vector<2x16x32xbf16>
      %50 = vector.extract_strided_slice %45 {offsets = [0, 0, 32], sizes = [2, 16, 32], strides = [1, 1, 1]} : vector<2x16x96xf32> to vector<2x16x32xf32>
      %51 = arith.truncf %50 : vector<2x16x32xf32> to vector<2x16x32xbf16>
      %52 = vector.extract_strided_slice %45 {offsets = [0, 0, 64], sizes = [2, 16, 32], strides = [1, 1, 1]} : vector<2x16x96xf32> to vector<2x16x32xf32>
      %53 = arith.truncf %52 : vector<2x16x32xf32> to vector<2x16x32xbf16>
      %54 = vector.extract_strided_slice %49 {offsets = [0, 0, 0], sizes = [2, 16, 16], strides = [1, 1, 1]} : vector<2x16x32xbf16> to vector<2x16x16xbf16>
      %55 = vector.extract_strided_slice %51 {offsets = [0, 0, 0], sizes = [2, 16, 16], strides = [1, 1, 1]} : vector<2x16x32xbf16> to vector<2x16x16xbf16>
      "tpu.trace_start"() <{level = 10 : i32, message = "bqd,bkd->bqk"}> : () -> ()
      %cst_18 = arith.constant dense<0.000000e+00> : vector<2x16x16xf32>
      %56 = tpu.matmul %54, %55, %cst_18 {dimension_numbers = #tpu.dot_dimension_numbers<[2], [2], [1], [1], [0, 0, 0, 1, 1, 1], [0], [0]>} : vector<2x16x16xbf16>, vector<2x16x16xbf16>, vector<2x16x16xf32> -> vector<2x16x16xf32>
      "tpu.trace_stop"() : () -> ()
      %cst_19 = arith.constant dense<0xFF800000> : vector<2x16xf32>
      %57 = vector.multi_reduction <maximumf>, %56, %cst_19 [2] : vector<2x16x16xf32> to vector<2x16xf32>
      %58 = vector.shape_cast %57 : vector<2x16xf32> to vector<2x16x1xf32>
      %59 = vector.broadcast %58 : vector<2x16x1xf32> to vector<2x16x16xf32>
      %60 = arith.subf %56, %59 : vector<2x16x16xf32>
      %61 = math.exp %60 : vector<2x16x16xf32>
      %cst_20 = arith.constant dense<0.000000e+00> : vector<2x16xf32>
      %62 = vector.multi_reduction <add>, %61, %cst_20 [2] : vector<2x16x16xf32> to vector<2x16xf32>
      %63 = vector.shape_cast %62 : vector<2x16xf32> to vector<2x16x1xf32>
      %64 = tpu.reciprocal %63 {approx = true} : vector<2x16x1xf32> -> vector<2x16x1xf32>
      %65 = vector.broadcast %64 : vector<2x16x1xf32> to vector<2x16x16xf32>
      %66 = arith.mulf %61, %65 : vector<2x16x16xf32>
      %67 = arith.truncf %66 : vector<2x16x16xf32> to vector<2x16x16xbf16>
      %68 = vector.extract_strided_slice %53 {offsets = [0, 0, 0], sizes = [2, 16, 16], strides = [1, 1, 1]} : vector<2x16x32xbf16> to vector<2x16x16xbf16>
      "tpu.trace_start"() <{level = 10 : i32, message = "bqk,bkd->bqd"}> : () -> ()
      %cst_21 = arith.constant dense<0.000000e+00> : vector<2x16x16xf32>
      %69 = tpu.matmul %67, %68, %cst_21 {dimension_numbers = #tpu.dot_dimension_numbers<[2], [1], [1], [2], [0, 0, 0, 1, 1, 2], [0], [0]>} : vector<2x16x16xbf16>, vector<2x16x16xbf16>, vector<2x16x16xf32> -> vector<2x16x16xf32>
      "tpu.trace_stop"() : () -> ()
      %c0_22 = arith.constant 0 : index
      %c0_23 = arith.constant 0 : index
      %c0_24 = arith.constant 0 : index
      %70 = vector.load %arg31[%c0_22, %c0_23, %c0_24] : memref<2x16x32xf32, #tpu.memory_space<vmem>>, vector<2x16x16xf32>
      tpu.vector_store %arg31[%c0_22, %c0_23, %c0_24], %69 {strides = array<i32>} : memref<2x16x32xf32, #tpu.memory_space<vmem>>, vector<2x16x16xf32>,
      %71 = vector.extract_strided_slice %49 {offsets = [0, 0, 16], sizes = [2, 16, 16], strides = [1, 1, 1]} : vector<2x16x32xbf16> to vector<2x16x16xbf16>
      %72 = vector.extract_strided_slice %51 {offsets = [0, 0, 16], sizes = [2, 16, 16], strides = [1, 1, 1]} : vector<2x16x32xbf16> to vector<2x16x16xbf16>
      "tpu.trace_start"() <{level = 10 : i32, message = "bqd,bkd->bqk"}> : () -> ()
      %cst_25 = arith.constant dense<0.000000e+00> : vector<2x16x16xf32>
      %73 = tpu.matmul %71, %72, %cst_25 {dimension_numbers = #tpu.dot_dimension_numbers<[2], [2], [1], [1], [0, 0, 0, 1, 1, 1], [0], [0]>} : vector<2x16x16xbf16>, vector<2x16x16xbf16>, vector<2x16x16xf32> -> vector<2x16x16xf32>
      "tpu.trace_stop"() : () -> ()
      %cst_26 = arith.constant dense<0xFF800000> : vector<2x16xf32>
      %74 = vector.multi_reduction <maximumf>, %73, %cst_26 [2] : vector<2x16x16xf32> to vector<2x16xf32>
      %75 = vector.shape_cast %74 : vector<2x16xf32> to vector<2x16x1xf32>
      %76 = vector.broadcast %75 : vector<2x16x1xf32> to vector<2x16x16xf32>
      %77 = arith.subf %73, %76 : vector<2x16x16xf32>
      %78 = math.exp %77 : vector<2x16x16xf32>
      %cst_27 = arith.constant dense<0.000000e+00> : vector<2x16xf32>
      %79 = vector.multi_reduction <add>, %78, %cst_27 [2] : vector<2x16x16xf32> to vector<2x16xf32>
      %80 = vector.shape_cast %79 : vector<2x16xf32> to vector<2x16x1xf32>
      %81 = tpu.reciprocal %80 {approx = true} : vector<2x16x1xf32> -> vector<2x16x1xf32>
      %82 = vector.broadcast %81 : vector<2x16x1xf32> to vector<2x16x16xf32>
      %83 = arith.mulf %78, %82 : vector<2x16x16xf32>
      %84 = arith.truncf %83 : vector<2x16x16xf32> to vector<2x16x16xbf16>
      %85 = vector.extract_strided_slice %53 {offsets = [0, 0, 16], sizes = [2, 16, 16], strides = [1, 1, 1]} : vector<2x16x32xbf16> to vector<2x16x16xbf16>
      "tpu.trace_start"() <{level = 10 : i32, message = "bqk,bkd->bqd"}> : () -> ()
      %cst_28 = arith.constant dense<0.000000e+00> : vector<2x16x16xf32>
      %86 = tpu.matmul %84, %85, %cst_28 {dimension_numbers = #tpu.dot_dimension_numbers<[2], [1], [1], [2], [0, 0, 0, 1, 1, 2], [0], [0]>} : vector<2x16x16xbf16>, vector<2x16x16xbf16>, vector<2x16x16xf32> -> vector<2x16x16xf32>
      "tpu.trace_stop"() : () -> ()
      %c0_29 = arith.constant 0 : index
      %c0_30 = arith.constant 0 : index
      %c16 = arith.constant 16 : index
      %87 = vector.load %arg31[%c0_29, %c0_30, %c16] : memref<2x16x32xf32, #tpu.memory_space<vmem>>, vector<2x16x16xf32>
      tpu.vector_store %arg31[%c0_29, %c0_30, %c16], %86 {strides = array<i32>} : memref<2x16x32xf32, #tpu.memory_space<vmem>>, vector<2x16x16xf32>,
      %c0_31 = arith.constant 0 : index
      %c0_32 = arith.constant 0 : index
      %c0_33 = arith.constant 0 : index
      %88 = vector.load %arg31[%c0_31, %c0_32, %c0_33] : memref<2x16x32xf32, #tpu.memory_space<vmem>>, vector<2x16x32xf32>
      %89 = vector.shape_cast %88 : vector<2x16x32xf32> to vector<32x32xf32>
      %90 = arith.truncf %89 : vector<32x32xf32> to vector<32x32xbf16>
      %91 = arith.index_cast %10 : i32 to index
      %c0_34 = arith.constant 0 : index
      %c0_35 = arith.constant 0 : index
      %92 = vector.load %arg21[%91, %c0_34, %c0_35] : memref<2x32x64xbf16, #tpu.memory_space<vmem>>, vector<1x32x64xbf16>
      %93 = vector.shape_cast %92 : vector<1x32x64xbf16> to vector<32x64xbf16>
      %cst_36 = arith.constant dense<0.000000e+00> : vector<32x64xf32>
      %94 = tpu.matmul %90, %93, %cst_36 {dimension_numbers = #tpu.dot_dimension_numbers<[1], [0], [0], [1], [0, 0, 1, 1], [], []>} : vector<32x32xbf16>, vector<32x64xbf16>, vector<32x64xf32> -> vector<32x64xf32>
      %95 = arith.index_cast %10 : i32 to index
      %c0_37 = arith.constant 0 : index
      %c0_38 = arith.constant 0 : index
      %96 = vector.load %arg22[%95, %c0_37, %c0_38] : memref<2x1x64xf32, #tpu.memory_space<vmem>>, vector<1x1x64xf32>
      %97 = vector.shape_cast %96 : vector<1x1x64xf32> to vector<1x64xf32>
      %98 = vector.broadcast %97 : vector<1x64xf32> to vector<32x64xf32>
      %99 = arith.addf %94, %98 : vector<32x64xf32>
      %100 = arith.addf %11, %99 : vector<32x64xf32>
      %101 = arith.index_cast %10 : i32 to index
      %c0_39 = arith.constant 0 : index
      %c0_40 = arith.constant 0 : index
      %102 = vector.load %arg23[%101, %c0_39, %c0_40] : memref<2x1x64xf32, #tpu.memory_space<vmem>>, vector<1x1x64xf32>
      %103 = vector.shape_cast %102 : vector<1x1x64xf32> to vector<1x64xf32>
      %104 = arith.index_cast %10 : i32 to index
      %c0_41 = arith.constant 0 : index
      %c0_42 = arith.constant 0 : index
      %105 = vector.load %arg24[%104, %c0_41, %c0_42] : memref<2x1x64xf32, #tpu.memory_space<vmem>>, vector<1x1x64xf32>
      %106 = vector.shape_cast %105 : vector<1x1x64xf32> to vector<1x64xf32>
      %107 = arith.index_cast %10 : i32 to index
      %c0_43 = arith.constant 0 : index
      %c0_44 = arith.constant 0 : index
      %108 = vector.load %arg25[%107, %c0_43, %c0_44] : memref<2x64x512xbf16, #tpu.memory_space<vmem>>, vector<1x64x512xbf16>
      %109 = vector.shape_cast %108 : vector<1x64x512xbf16> to vector<64x512xbf16>
      %110 = arith.index_cast %10 : i32 to index
      %c0_45 = arith.constant 0 : index
      %c0_46 = arith.constant 0 : index
      %111 = vector.load %arg26[%110, %c0_45, %c0_46] : memref<2x1x512xf32, #tpu.memory_space<vmem>>, vector<1x1x512xf32>
      %112 = vector.shape_cast %111 : vector<1x1x512xf32> to vector<1x512xf32>
      %113 = arith.index_cast %10 : i32 to index
      %c0_47 = arith.constant 0 : index
      %c0_48 = arith.constant 0 : index
      %114 = vector.load %arg27[%113, %c0_47, %c0_48] : memref<2x256x64xbf16, #tpu.memory_space<vmem>>, vector<1x256x64xbf16>
      %115 = vector.shape_cast %114 : vector<1x256x64xbf16> to vector<256x64xbf16>
      %116 = arith.index_cast %10 : i32 to index
      %c0_49 = arith.constant 0 : index
      %c0_50 = arith.constant 0 : index
      %117 = vector.load %arg28[%116, %c0_49, %c0_50] : memref<2x1x64xf32, #tpu.memory_space<vmem>>, vector<1x1x64xf32>
      %118 = vector.shape_cast %117 : vector<1x1x64xf32> to vector<1x64xf32>
      %cst_51 = arith.constant dense<0.000000e+00> : vector<32xf32>
      %119 = vector.multi_reduction <add>, %100, %cst_51 [1] : vector<32x64xf32> to vector<32xf32>
      %120 = vector.shape_cast %119 : vector<32xf32> to vector<32x1xf32>
      %cst_52 = arith.constant 6.400000e+01 : f32
      %121 = vector.broadcast %cst_52 : f32 to vector<32x1xf32>
      %122 = arith.divf %120, %121 : vector<32x1xf32>
      %123 = vector.broadcast %122 : vector<32x1xf32> to vector<32x64xf32>
      %124 = arith.subf %100, %123 : vector<32x64xf32>
      %125 = arith.mulf %124, %124 : vector<32x64xf32>
      %cst_53 = arith.constant dense<0.000000e+00> : vector<32xf32>
      %126 = vector.multi_reduction <add>, %125, %cst_53 [1] : vector<32x64xf32> to vector<32xf32>
      %127 = vector.shape_cast %126 : vector<32xf32> to vector<32x1xf32>
      %cst_54 = arith.constant 6.400000e+01 : f32
      %128 = vector.broadcast %cst_54 : f32 to vector<32x1xf32>
      %129 = arith.divf %127, %128 : vector<32x1xf32>
      %130 = vector.broadcast %122 : vector<32x1xf32> to vector<32x64xf32>
      %131 = arith.subf %100, %130 : vector<32x64xf32>
      %cst_55 = arith.constant 9.99999974E-6 : f32
      %132 = vector.broadcast %cst_55 : f32 to vector<32x1xf32>
      %133 = arith.addf %129, %132 : vector<32x1xf32>
      %134 = math.rsqrt %133 : vector<32x1xf32>
      %135 = vector.broadcast %134 : vector<32x1xf32> to vector<32x64xf32>
      %136 = arith.mulf %131, %135 : vector<32x64xf32>
      %137 = vector.broadcast %103 : vector<1x64xf32> to vector<32x64xf32>
      %138 = arith.mulf %136, %137 : vector<32x64xf32>
      %139 = vector.broadcast %106 : vector<1x64xf32> to vector<32x64xf32>
      %140 = arith.addf %138, %139 : vector<32x64xf32>
      %141 = arith.truncf %140 : vector<32x64xf32> to vector<32x64xbf16>
      %cst_56 = arith.constant dense<0.000000e+00> : vector<32x512xf32>
      %142 = tpu.matmul %141, %109, %cst_56 {dimension_numbers = #tpu.dot_dimension_numbers<[1], [0], [0], [1], [0, 0, 1, 1], [], []>} : vector<32x64xbf16>, vector<64x512xbf16>, vector<32x512xf32> -> vector<32x512xf32>
      %143 = vector.broadcast %112 : vector<1x512xf32> to vector<32x512xf32>
      %144 = arith.addf %142, %143 : vector<32x512xf32>
      %145 = vector.extract_strided_slice %144 {offsets = [0, 0], sizes = [32, 256], strides = [1, 1]} : vector<32x512xf32> to vector<32x256xf32>
      %146 = vector.extract_strided_slice %144 {offsets = [0, 256], sizes = [32, 256], strides = [1, 1]} : vector<32x512xf32> to vector<32x256xf32>
      %cst_57 = arith.constant 5.000000e-01 : f32
      %147 = vector.broadcast %cst_57 : f32 to vector<32x256xf32>
      %148 = arith.mulf %147, %146 : vector<32x256xf32>
      %cst_58 = arith.constant 4.471500e-02 : f32
      %149 = vector.broadcast %cst_58 : f32 to vector<32x256xf32>
      %150 = arith.mulf %149, %146 : vector<32x256xf32>
      %151 = arith.mulf %150, %146 : vector<32x256xf32>
      %152 = arith.mulf %151, %146 : vector<32x256xf32>
      %153 = arith.addf %146, %152 : vector<32x256xf32>
      %cst_59 = arith.constant 0.797884583 : f32
      %154 = vector.broadcast %cst_59 : f32 to vector<32x256xf32>
      %155 = arith.mulf %154, %153 : vector<32x256xf32>
      %156 = math.tanh %155 : vector<32x256xf32>
      %cst_60 = arith.constant 1.000000e+00 : f32
      %157 = vector.broadcast %cst_60 : f32 to vector<32x256xf32>
      %158 = arith.addf %157, %156 : vector<32x256xf32>
      %159 = arith.mulf %148, %158 : vector<32x256xf32>
      %160 = arith.mulf %145, %159 : vector<32x256xf32>
      %161 = arith.truncf %160 : vector<32x256xf32> to vector<32x256xbf16>
      %cst_61 = arith.constant dense<0.000000e+00> : vector<32x64xf32>
      %162 = tpu.matmul %161, %115, %cst_61 {dimension_numbers = #tpu.dot_dimension_numbers<[1], [0], [0], [1], [0, 0, 1, 1], [], []>} : vector<32x256xbf16>, vector<256x64xbf16>, vector<32x64xf32> -> vector<32x64xf32>
      %163 = vector.broadcast %118 : vector<1x64xf32> to vector<32x64xf32>
      %164 = arith.addf %162, %163 : vector<32x64xf32>
      %165 = arith.addf %100, %164 : vector<32x64xf32>
      %c0_62 = arith.constant 0 : index
      %c0_63 = arith.constant 0 : index
      %166 = vector.load %arg30[%c0_62, %c0_63] : memref<32x64xf32, #tpu.memory_space<vmem>>, vector<32x64xf32>
      tpu.vector_store %arg30[%c0_62, %c0_63], %165 {strides = array<i32>} : memref<32x64xf32, #tpu.memory_space<vmem>>, vector<32x64xf32>,
    } else {
    }
    %c2_i32 = arith.constant 2 : i32
    %6 = arith.cmpi eq, %arg1, %c2_i32 : i32
    %7 = arith.extui %6 : i1 to i32
    %c0_i32_3 = arith.constant 0 : i32
    %8 = arith.cmpi ne, %7, %c0_i32_3 : i32
    scf.if %8 {
      %c0 = arith.constant 0 : index
      %c0_4 = arith.constant 0 : index
      %9 = vector.load %arg30[%c0, %c0_4] : memref<32x64xf32, #tpu.memory_space<vmem>>, vector<32x64xf32>
      %10 = vector.shape_cast %9 : vector<32x64xf32> to vector<2x16x64xf32>
      %c0_5 = arith.constant 0 : index
      %c0_6 = arith.constant 0 : index
      %c0_7 = arith.constant 0 : index
      %11 = vector.load %arg29[%c0_5, %c0_6, %c0_7] : memref<2x16x64xf32, #tpu.memory_space<vmem>>, vector<2x16x64xf32>
      tpu.vector_store %arg29[%c0_5, %c0_6, %c0_7], %10 {strides = array<i32>} : memref<2x16x64xf32, #tpu.memory_space<vmem>>, vector<2x16x64xf32>,
    } else {
    }
    return
  }
  func.func @transform_0(%arg0: i32, %arg1: i32) -> (i32, i32) {
    %c0_i32 = arith.constant 0 : i32
    %c0_i32_0 = arith.constant 0 : i32
    %c0_i32_1 = arith.constant 0 : i32
    return %c0_i32, %c0_i32_0 : i32, i32
  }
  func.func @transform_1(%arg0: i32, %arg1: i32) -> (i32, i32, i32) {
    %c0_i32 = arith.constant 0 : i32
    %c0_i32_0 = arith.constant 0 : i32
    %c0_i32_1 = arith.constant 0 : i32
    return %arg0, %c0_i32, %c0_i32_0 : i32, i32, i32
  }
  func.func @transform_2(%arg0: i32, %arg1: i32) -> (i32, i32) {
    %c0_i32 = arith.constant 0 : i32
    %c0_i32_0 = arith.constant 0 : i32
    %c0_i32_1 = arith.constant 0 : i32
    return %c0_i32, %c0_i32_0 : i32, i32
  }
  func.func @transform_3(%arg0: i32, %arg1: i32) -> (i32, i32) {
    %c0_i32 = arith.constant 0 : i32
    %c0_i32_0 = arith.constant 0 : i32
    %c0_i32_1 = arith.constant 0 : i32
    return %c0_i32, %c0_i32_0 : i32, i32
  }
  func.func @transform_4(%arg0: i32, %arg1: i32) -> (i32, i32) {
    %c0_i32 = arith.constant 0 : i32
    %c0_i32_0 = arith.constant 0 : i32
    %c0_i32_1 = arith.constant 0 : i32
    return %c0_i32, %c0_i32_0 : i32, i32
  }
  func.func @transform_5(%arg0: i32, %arg1: i32) -> (i32, i32) {
    %c0_i32 = arith.constant 0 : i32
    %c0_i32_0 = arith.constant 0 : i32
    %c0_i32_1 = arith.constant 0 : i32
    return %c0_i32, %c0_i32_0 : i32, i32
  }
  func.func @transform_6(%arg0: i32, %arg1: i32) -> (i32, i32) {
    %c0_i32 = arith.constant 0 : i32
    %c0_i32_0 = arith.constant 0 : i32
    %c0_i32_1 = arith.constant 0 : i32
    return %c0_i32, %c0_i32_0 : i32, i32
  }
  func.func @transform_7(%arg0: i32, %arg1: i32) -> (i32, i32) {
    %c0_i32 = arith.constant 0 : i32
    %c0_i32_0 = arith.constant 0 : i32
    %c0_i32_1 = arith.constant 0 : i32
    return %c0_i32, %c0_i32_0 : i32, i32
  }
  func.func @transform_8(%arg0: i32, %arg1: i32) -> (i32, i32) {
    %c0_i32 = arith.constant 0 : i32
    %c0_i32_0 = arith.constant 0 : i32
    %c0_i32_1 = arith.constant 0 : i32
    return %c0_i32, %c0_i32_0 : i32, i32
  }
  func.func @transform_9(%arg0: i32, %arg1: i32) -> (i32, i32) {
    %c0_i32 = arith.constant 0 : i32
    %c0_i32_0 = arith.constant 0 : i32
    %c0_i32_1 = arith.constant 0 : i32
    return %c0_i32, %c0_i32_0 : i32, i32
  }
  func.func @transform_10(%arg0: i32, %arg1: i32) -> (i32, i32) {
    %c0_i32 = arith.constant 0 : i32
    %c0_i32_0 = arith.constant 0 : i32
    %c0_i32_1 = arith.constant 0 : i32
    return %c0_i32, %c0_i32_0 : i32, i32
  }
  func.func @transform_11(%arg0: i32, %arg1: i32) -> (i32, i32) {
    %c0_i32 = arith.constant 0 : i32
    %c0_i32_0 = arith.constant 0 : i32
    %c0_i32_1 = arith.constant 0 : i32
    return %c0_i32, %c0_i32_0 : i32, i32
  }
  func.func @transform_12(%arg0: i32, %arg1: i32) -> (i32, i32) {
    %c0_i32 = arith.constant 0 : i32
    %c0_i32_0 = arith.constant 0 : i32
    %c0_i32_1 = arith.constant 0 : i32
    return %c0_i32, %c0_i32_0 : i32, i32
  }
  func.func @transform_13(%arg0: i32, %arg1: i32) -> (i32, i32) {
    %c0_i32 = arith.constant 0 : i32
    %c0_i32_0 = arith.constant 0 : i32
    %c0_i32_1 = arith.constant 0 : i32
    return %c0_i32, %c0_i32_0 : i32, i32
  }
  func.func @transform_14(%arg0: i32, %arg1: i32) -> (i32, i32) {
    %c0_i32 = arith.constant 0 : i32
    %c0_i32_0 = arith.constant 0 : i32
    %c0_i32_1 = arith.constant 0 : i32
    return %c0_i32, %c0_i32_0 : i32, i32
  }
  func.func @transform_15(%arg0: i32, %arg1: i32) -> (i32, i32) {
    %c0_i32 = arith.constant 0 : i32
    %c0_i32_0 = arith.constant 0 : i32
    %c0_i32_1 = arith.constant 0 : i32
    return %c0_i32, %c0_i32_0 : i32, i32
  }
  func.func @transform_16(%arg0: i32, %arg1: i32) -> (i32, i32, i32) {
    %c0_i32 = arith.constant 0 : i32
    %c0_i32_0 = arith.constant 0 : i32
    %c0_i32_1 = arith.constant 0 : i32
    %c0_i32_2 = arith.constant 0 : i32
    return %c0_i32, %c0_i32_0, %c0_i32_1 : i32, i32, i32
  }
  func.func @transform_17(%arg0: i32, %arg1: i32) -> (i32, i32, i32) {
    %c0_i32 = arith.constant 0 : i32
    %c0_i32_0 = arith.constant 0 : i32
    %c0_i32_1 = arith.constant 0 : i32
    %c0_i32_2 = arith.constant 0 : i32
    return %c0_i32, %c0_i32_0, %c0_i32_1 : i32, i32, i32
  }
  func.func @transform_18(%arg0: i32, %arg1: i32) -> (i32, i32, i32) {
    %c0_i32 = arith.constant 0 : i32
    %c0_i32_0 = arith.constant 0 : i32
    %c0_i32_1 = arith.constant 0 : i32
    %c0_i32_2 = arith.constant 0 : i32
    return %c0_i32, %c0_i32_0, %c0_i32_1 : i32, i32, i32
  }
  func.func @transform_19(%arg0: i32, %arg1: i32) -> (i32, i32, i32) {
    %c0_i32 = arith.constant 0 : i32
    %c0_i32_0 = arith.constant 0 : i32
    %c0_i32_1 = arith.constant 0 : i32
    %c0_i32_2 = arith.constant 0 : i32
    return %c0_i32, %c0_i32_0, %c0_i32_1 : i32, i32, i32
  }
  func.func @transform_20(%arg0: i32, %arg1: i32) -> (i32, i32, i32) {
    %c0_i32 = arith.constant 0 : i32
    %c0_i32_0 = arith.constant 0 : i32
    %c0_i32_1 = arith.constant 0 : i32
    %c0_i32_2 = arith.constant 0 : i32
    return %c0_i32, %c0_i32_0, %c0_i32_1 : i32, i32, i32
  }
  func.func @transform_21(%arg0: i32, %arg1: i32) -> (i32, i32, i32) {
    %c0_i32 = arith.constant 0 : i32
    %c0_i32_0 = arith.constant 0 : i32
    %c0_i32_1 = arith.constant 0 : i32
    %c0_i32_2 = arith.constant 0 : i32
    return %c0_i32, %c0_i32_0, %c0_i32_1 : i32, i32, i32
  }
  func.func @transform_22(%arg0: i32, %arg1: i32) -> (i32, i32, i32) {
    %c0_i32 = arith.constant 0 : i32
    %c0_i32_0 = arith.constant 0 : i32
    %c0_i32_1 = arith.constant 0 : i32
    %c0_i32_2 = arith.constant 0 : i32
    return %c0_i32, %c0_i32_0, %c0_i32_1 : i32, i32, i32
  }
  func.func @transform_23(%arg0: i32, %arg1: i32) -> (i32, i32, i32) {
    %c0_i32 = arith.constant 0 : i32
    %c0_i32_0 = arith.constant 0 : i32
    %c0_i32_1 = arith.constant 0 : i32
    %c0_i32_2 = arith.constant 0 : i32
    return %c0_i32, %c0_i32_0, %c0_i32_1 : i32, i32, i32
  }
  func.func @transform_24(%arg0: i32, %arg1: i32) -> (i32, i32, i32) {
    %c0_i32 = arith.constant 0 : i32
    %c0_i32_0 = arith.constant 0 : i32
    %c0_i32_1 = arith.constant 0 : i32
    %c0_i32_2 = arith.constant 0 : i32
    return %c0_i32, %c0_i32_0, %c0_i32_1 : i32, i32, i32
  }
  func.func @transform_25(%arg0: i32, %arg1: i32) -> (i32, i32, i32) {
    %c0_i32 = arith.constant 0 : i32
    %c0_i32_0 = arith.constant 0 : i32
    %c0_i32_1 = arith.constant 0 : i32
    %c0_i32_2 = arith.constant 0 : i32
    return %c0_i32, %c0_i32_0, %c0_i32_1 : i32, i32, i32
  }
  func.func @transform_26(%arg0: i32, %arg1: i32) -> (i32, i32, i32) {
    %c0_i32 = arith.constant 0 : i32
    %c0_i32_0 = arith.constant 0 : i32
    %c0_i32_1 = arith.constant 0 : i32
    %c0_i32_2 = arith.constant 0 : i32
    return %c0_i32, %c0_i32_0, %c0_i32_1 : i32, i32, i32
  }
  func.func @transform_27(%arg0: i32, %arg1: i32) -> (i32, i32, i32) {
    %c0_i32 = arith.constant 0 : i32
    %c0_i32_0 = arith.constant 0 : i32
    %c0_i32_1 = arith.constant 0 : i32
    return %arg0, %c0_i32, %c0_i32_0 : i32, i32, i32
  }
}

</mosaic_0001>

<bundles_post_ra>
// kernel: tpu_custom_call.1
= control target key start
LH: loop header
LB: loop body
LE: loop exit
PB: predicated region body
PF: predicated region fallthrough
CT: control target
= control target key end

     0   :  { %s5505_s0 = inlined_call_operand.vmem [shape: f32[16,64], index: 0, kind: input, shape index: {}]   ;;  %s5506_s1 = inlined_call_operand.vmem [shape: bf16[2,32,16], index: 1, kind: input, shape index: {}]   ;;  %s5507_s2 = inlined_call_operand.hbm [shape: f32[1,64], index: 2, kind: input, shape index: {}]   ;;  %s5508_s3 = inlined_call_operand.hbm [shape: f32[1,64], index: 3, kind: input, shape index: {}]   ;;  %s5509_s4 = inlined_call_operand.vmem [shape: f32[32,1], index: 4, kind: input, shape index: {}]   ;;  %s5510_s5 = inlined_call_operand.vmem [shape: f32[32,1], index: 5, kind: input, shape index: {}]   ;;  %s5511_s6 = inlined_call_operand.vmem [shape: bf16[64,16], index: 6, kind: input, shape index: {}]   ;;  %s5512_s7 = inlined_call_operand.vmem [shape: bf16[32,32], index: 7, kind: input, shape index: {}]   ;;  %s5513_s8 = inlined_call_operand.vmem [shape: bf16[16,64], index: 8, kind: input, shape index: {}]   ;;  %s5514_s9 = inlined_call_operand.vmem [shape: f32[1,64], index: 9, kind: input, shape index: {}]   ;;  %s5515_s10 = inlined_call_operand.vmem [shape: f32[1,64], index: 10, kind: input, shape index: {}]   ;;  %s5516_s11 = inlined_call_operand.vmem [shape: f32[1,64], index: 11, kind: input, shape index: {}]   ;;  %s5517_s12 = inlined_call_operand.vmem [shape: bf16[64,512], index: 12, kind: input, shape index: {}]   ;;  %s5518_s13 = inlined_call_operand.vmem [shape: f32[1,512], index: 13, kind: input, shape index: {}]   ;;  %s5519_s14 = inlined_call_operand.vmem [shape: bf16[256,64], index: 14, kind: input, shape index: {}]   ;;  %s5520_s15 = inlined_call_operand.vmem [shape: f32[1,64], index: 15, kind: input, shape index: {}]   ;;  %s5521_s16 = inlined_call_operand.vmem [shape: f32[2,1,64], index: 16, kind: input, shape index: {}]   ;;  %s5522_s17 = inlined_call_operand.vmem [shape: f32[2,1,64], index: 17, kind: input, shape index: {}]   ;;  %s5523_s18 = inlined_call_operand.vmem [shape: bf16[2,64,96], index: 18, kind: input, shape index: {}]   ;;  %s5524_s19 = inlined_call_operand.vmem [shape: bf16[2,32,64], index: 19, kind: input, shape index: {}]   ;;  %s5525_s20 = inlined_call_operand.vmem [shape: f32[2,1,64], index: 20, kind: input, shape index: {}]   ;;  %s5526_s21 = inlined_call_operand.vmem [shape: f32[2,1,64], index: 21, kind: input, shape index: {}]   ;;  %s5527_s22 = inlined_call_operand.vmem [shape: f32[2,1,64], index: 22, kind: input, shape index: {}]   ;;  %s5528_s23 = inlined_call_operand.vmem [shape: bf16[2,64,512], index: 23, kind: input, shape index: {}]   ;;  %s5529_s24 = inlined_call_operand.vmem [shape: f32[2,1,512], index: 24, kind: input, shape index: {}]   ;;  %s5530_s25 = inlined_call_operand.vmem [shape: bf16[2,256,64], index: 25, kind: input, shape index: {}]   ;;  %s5531_s26 = inlined_call_operand.vmem [shape: f32[2,1,64], index: 26, kind: input, shape index: {}]   ;;  %s5532_s27 = inlined_call_operand.hbm [shape: f32[2,16,64], index: 27, kind: output, shape index: {}]  }
   0x1   :  { %5552 = sst [smem:[#allocation16_spill]] %s5505_s0 }
   0x2   :  { %5553 = sst [smem:[#allocation17_spill]] %s5506_s1 }
   0x3   :  { %5554 = sst [smem:[#allocation18_spill]] %s5507_s2 }
   0x4   :  { %5555 = sst [smem:[#allocation19_spill]] %s5508_s3 }
   0x5   :  { %5556 = sst [smem:[#allocation20_spill]] %s5509_s4 }
   0x6   :  { %5557 = sst [smem:[#allocation21_spill]] %s5510_s5 }
   0x7   :  { %5558 = sst [smem:[#allocation22_spill]] %s5511_s6 }
   0x8   :  { %5559 = sst [smem:[#allocation23_spill]] %s5512_s7 }
   0x9   :  { %5560 = sst [smem:[#allocation24_spill]] %s5513_s8 }
   0xa   :  { %5561 = sst [smem:[#allocation25_spill]] %s5514_s9 }
   0xb   :  { %5562 = sst [smem:[#allocation26_spill]] %s5515_s10 }
   0xc   :  { %5563 = sst [smem:[#allocation27_spill]] %s5516_s11 }
   0xd   :  { %5564 = sst [smem:[#allocation28_spill]] %s5531_s26 }
   0xe   :  { %5565 = sst [smem:[#allocation29_spill]] %s5532_s27 }
   0xf   :  { %32 = vsyncpa [#allocation5], 0 }
  0x10   :  { %33 = vsyncpa [#allocation8], 0 }
  0x11   :  { %34 = vsyncpa [#allocation6], 0  ;;  %s4617_s7 = smov 0   ;;  %s4619_s4 = smov 0  }
  0x12   :  { %s4621_s8 = smov 0  }
  0x13 LB: > { %5566 = sst [smem:[#allocation13_spill]] %s4454_s4  ;;  %s5541_s30 = sadd.s32 4294967295, %s4458_s8   ;;  %s4458_s8 = sphi %s4621_s8, %s40_s8   ;;  %s4454_s4 = sphi %s4619_s4, %s5596_s4   ;;  %s4450_s7 = sphi %s4617_s7, %s5595_s7  }
  0x14   : > { %5567 = sst [smem:[#allocation14_spill]] %s4458_s8  ;;  %s49_s9 = sadd.s32 1, %s4454_s4 }
  0x15   : > { %p50_p0 = scmp.ge.s32.totalorder %s49_s9, 3  ;;  %p3672_p1 = scmp.ge.s32.totalorder %s4458_s8, 1 }
  0x16   : > { %p655_p2 = scmp.lt.s32.totalorder %s4458_s8, 4  ;;  %p4644_p4 = scmp.eq.s32.totalorder %s5541_s30, 0 }
  0x17   : > { %s5598_s9 = smov (%p50_p0, %s49_s9), 0  ;;  %s4460_s0 = smov [#allocation4]  }
  0x18   : > { %5568 = sst [smem:[#allocation15_spill]] %s5598_s9  ;;  %p4638_p3 = pnand %p3672_p1, %p655_p2 }
  0x19   : > { %s5570_s28 = scalar_select %p4644_p4, 1, 0 }
  0x1a   : > { %s5569_s5 = scalar_select %p4638_p3, 1, 0 }
  0x1b   : > { %p4081_p5 = pneg %p4638_p3  ;;  %s681_s10 = sshll.u32 %s4460_s0, 4  ;;  %s682_s10 = int_to_ptr.vmem [resolvable:$true] %s681_s10 }
  0x1c   : > { %s4461_s29 = smov [#allocation7]   ;;  %s5572_s3 = sld [smem:[#allocation18_spill]] }
  0x1d   : > { %s692_s1 = sshll.u32 %s4461_s29, 4  ;;  %p4652_p6 = pnand %p4644_p4, %p4081_p5  ;;  %s4656_s1 = int_to_ptr.vmem [resolvable:$true] %s692_s1 }
  0x1f   : > { %p4344_p8 = pneg %p4652_p6 }
  0x22   : > { %s4342_s30 = scalar_lea.hbm %s5572_s3, 16 }
  0x23   : > { %p4343_p7 = scmp.ne.s32.totalorder %s5572_s3, %s4342_s30  ;;  %p4349_p11 = scmp.lt.u32.totalorder %s4342_s30, %s5572_s3 }
  0x25   : > { %p4345_p9 = pnand %p4344_p8, %p4343_p7 }
  0x27   : > { %p4346_p10 = pneg %p4345_p9 }
  0x29   : > { %p4351_p12 = pnand %p4349_p11, %p4346_p10 }
  0x2b   : > { %4354 = shalt.err (!%p4351_p12)
}
  0x2c   : > { %s4355_s27 = scalar_lea.vmem %s682_s10, 16  ;;  %s4362_s4 = scalar_lea.vmem %s682_s10, 32 }
  0x2d   : > { %p4356_p13 = scmp.ne.s32.totalorder %s682_s10, %s4355_s27  ;;  %p4363_p2 = scmp.lt.s32.totalorder %s682_s10, %s682_s10 }
  0x2e   : > { %p4364_p5 = scmp.lt.s32.totalorder %s4362_s4, %s4355_s27 }
  0x2f   : > { %p4358_p0 = pnand %p4356_p13, %p4344_p8 }
  0x30   : > { %p4365_p4 = por %p4364_p5, %p4363_p2 }
  0x31   : > { %p4359_p1 = pneg %p4358_p0 }
  0x33   : > { %p4366_p3 = pnand %p4365_p4, %p4359_p1 }
  0x35   : > { %4369 = shalt.err (!%p4366_p3)
}
  0x36   : > { %4084 = dma.hbm_to_vmem [thread:$0]  (!%p4652_p6), %s5572_s3, 16, %s682_s10, [#allocation5]  }
  0x37   : > { %s5573_s0 = sld [smem:[#allocation19_spill]] }
  0x3d   : > { %s4370_s29 = scalar_lea.hbm %s5573_s0, 16 }
  0x3e   : > { %p4371_p7 = scmp.ne.s32.totalorder %s5573_s0, %s4370_s29  ;;  %p4377_p3 = scmp.lt.u32.totalorder %s4370_s29, %s5573_s0 }
  0x40   : > { %p4373_p9 = pnand %p4371_p7, %p4344_p8 }
  0x42   : > { %p4374_p4 = pneg %p4373_p9 }
  0x44   : > { %p4379_p10 = pnand %p4377_p3, %p4374_p4 }
  0x46   : > { %4382 = shalt.err (!%p4379_p10)
}
  0x47   : > { %s4383_s10 = scalar_lea.vmem %s4656_s1, 16  ;;  %s4390_s26 = scalar_lea.vmem %s4656_s1, 32 }
  0x48   : > { %p4384_p11 = scmp.ne.s32.totalorder %s4656_s1, %s4383_s10  ;;  %p4391_p0 = scmp.lt.s32.totalorder %s4656_s1, %s4656_s1 }
  0x49   : > { %p4392_p1 = scmp.lt.s32.totalorder %s4390_s26, %s4383_s10 }
  0x4a   : > { %p4386_p12 = pnand %p4384_p11, %p4344_p8 }
  0x4b   : > { %p4393_p2 = por %p4392_p1, %p4391_p0 }
  0x4c   : > { %p4387_p13 = pneg %p4386_p12 }
  0x4e   : > { %p4394_p5 = pnand %p4393_p2, %p4387_p13 }
  0x50   : > { %4397 = shalt.err (!%p4394_p5)
}
  0x51   : > { %4087 = dma.hbm_to_vmem [thread:$0]  (!%p4652_p6), %s5573_s0, 16, %s4656_s1, [#allocation8]  }
  0x52   : > { %p5574_p7 = scmp.ne.s32.totalorder %s5569_s5, 0 }
  0x53   : > { %p5575_p8 = scmp.ne.s32.totalorder (!%p5574_p7), %s5570_s28, 0 }
  0x54   : > { %774 = sbr.rel (%p5574_p7) target bundleno = 5573 (0x15c5), region = 128 }
  0x5b   : > { %4437 = dma.done.wait (%p5575_p8), [#allocation5], 16  }
  0x5c   : > { %4439 = vsyncadd (%p5575_p8), [#allocation5], 4294967280 }
  0x5d   : > { %4441 = dma.done.wait (%p5575_p8), [#allocation8], 16  }
  0x5e   : > { %4443 = vsyncadd (%p5575_p8), [#allocation8], 4294967280  ;;  %p3679_p9 = scmp.ne.s32.totalorder %s4450_s7, 0 }
  0x5f   : > { %s5576_s11 = sld [smem:[#allocation16_spill]] (!%p3679_p9)  ;;  %vm863_vm0 = vcmask (!%p3679_p9), 523264   ;;  %s5577_s27 = sld [smem:[#allocation20_spill]] (!%p3679_p9)  ;;  %v4462_v4 = vmov (!%p3679_p9), 0   ;;  %vm1003_vm1 = vcmask (!%p3679_p9), 130048   ;;  %v4463_v47 = vmov (!%p3679_p9), 0.0  }
  0x60   : > { %858 = sbr.rel (%p3679_p9) target bundleno = 2420 (0x974), region = 140  ;;  %4136 = vset.pattern.permute.xlu1 (!%p3679_p9), %v4462_v4  ;;  %4135 = vset.pattern.permute.xlu0 (!%p3679_p9), %v4462_v4  ;;  %s5578_s10 = sld [smem:[#allocation21_spill]] (!%p3679_p9)  ;;  %vm1171_vm2 = vcmask (!%p3679_p9), 261120   ;;  %vm4464_vm3 = vmmov (!%p3679_p9), 0  }
  0x61   : > { %s5579_s8 = sld [smem:[#allocation17_spill]] (!%p3679_p9)  ;;  %s5581_s28 = sld [smem:[#allocation22_spill]] (!%p3679_p9)  ;;  %3943 = vmatprep.subr.bf16.mxu0 (!%p3679_p9), %v4463_v47  ;;  %3951 = vmatprep.mubr.msk.bf16.mxu0 (!%p3679_p9), %vm4464_vm3, %v4463_v47 }
  0x62   : > { %s5582_s4 = sld [smem:[#allocation23_spill]] (!%p3679_p9)  ;;  %s5584_s30 = sld [smem:[#allocation24_spill]] (!%p3679_p9) }
  0x63   : > { %s5585_s29 = sld [smem:[#allocation25_spill]] (!%p3679_p9)  ;;  %s5586_s5 = sld [smem:[#allocation26_spill]] (!%p3679_p9) }
  0x64   : > { %s5587_s0 = sld [smem:[#allocation27_spill]] (!%p3679_p9) }
  0x65   : > { %v4720_v0 = vld [vmem:[%s5576_s11] sm:$0xff] (!%p3679_p9)  ;;  %v4725_v1 = vld [vmem:[%s5576_s11 + $0x8] sm:$0xff] (!%p3679_p9)  ;;  %v1091_v8 = vld [vmem:[%s5577_s27 + $0x10] sm:$0xff] (!%p3679_p9) }
  0x66   : > { %v1090_v2 = vld [vmem:[%s5577_s27 + $0x8] sm:$0xff] (!%p3679_p9)  ;;  %v864_v3 = vsel (!%p3679_p9), %vm863_vm0, %v4720_v0, 0.0  ;;  %v867_v5 = vsel (!%p3679_p9), %vm863_vm0, %v4725_v1, 0.0  ;;  %v1121_v6 = vld [vmem:[%s5578_s10] sm:$0xff] (!%p3679_p9)  ;;  %v1092_v9 = vld [vmem:[%s5577_s27 + $0x18] sm:$0xff] (!%p3679_p9) }
  0x67   : > { %865 = vadd.xlane.f32.xlu0 %v864_v3  ;;  %1100 = vperm.xlu1 %4136, %v1090_v2   ;;  %v1122_v7 = vld [vmem:[%s5578_s10 + $0x8] sm:$0xff]  ;;  %v1123_v10 = vld [vmem:[%s5578_s10 + $0x10] sm:$0xff]  ;;  %v1089_v11 = vld [vmem:[%s5577_s27] sm:$0xff]  ;;  %s5580_s9 = smov %s5579_s8 }
  0x68   : > { %v3835_v12 = vld [vmem:[%s5579_s8 + $0x10] sm:$0xff]   ;;  %v3819_v13 = vld [vmem:[%s5580_s9] sm:$0xff]   ;;  %v3836_v18 = vld [vmem:[%s5580_s9 + $0x18] sm:$0xff]   ;;  %s5583_s26 = smov %s5582_s4 }
  0x69   : > { %v3828_v14 = vunpack.c.l.bf16 %v3835_v12  ;;  %v3829_v15 = vunpack.c.h.bf16 %v3835_v12  ;;  %v3820_v16 = vunpack.c.l.bf16 %v3819_v13  ;;  %v3821_v17 = vunpack.c.h.bf16 %v3819_v13  ;;  %v3834_v19 = vld [vmem:[%s5580_s9 + $0x8] sm:$0xff]   ;;  %v4137_v45 = vld [vmem:[%s5581_s28] sm:$0xff]   ;;  %v4139_v54 = vld [vmem:[%s5581_s28 + $0x10] sm:$0xff]  }
  0x6a   : > { %v3832_v20 = vunpack.c.l.bf16 %v3836_v18  ;;  %v3824_v23 = vunpack.c.l.bf16 %v3834_v19  ;;  %v3833_v27 = vunpack.c.h.bf16 %v3836_v18  ;;  %v3825_v30 = vunpack.c.h.bf16 %v3834_v19  ;;  %3944 = vmatpush3.bf16.msra.mxu0 %v4137_v45  ;;  %v4138_v49 = vld [vmem:[%s5581_s28 + $0x8] sm:$0xff]  }
  0x6b   : > { %868 = vadd.xlane.f32.xlu0 %v867_v5  ;;  %1127 = vperm.xlu1 %4136, %v1121_v6   ;;  %v1017_v21 = vsel %vm1003_vm1, %v3828_v14, 0.0  ;;  %v1018_v22 = vsel %vm1003_vm1, %v3829_v15, 0.0  ;;  %v1004_v24 = vsel %vm1003_vm1, %v3820_v16, 0.0  ;;  %v1005_v25 = vsel %vm1003_vm1, %v3821_v17, 0.0 }
  0x6c   : > { %v1019_v26 = vadd.f32 %v1018_v22, %v1017_v21  ;;  %v1006_v28 = vadd.f32 %v1005_v25, %v1004_v24  ;;  %v1020_v29 = vsel %vm1003_vm1, %v3832_v20, 0.0  ;;  %v1007_v31 = vsel %vm1003_vm1, %v3824_v23, 0.0  ;;  %3945 = vmatprep.subr.bf16.mxu0 %v4463_v47 }
  0x6d   : > { %v1022_v34 = vsel %vm1003_vm1, %v3833_v27, 0.0  ;;  %v1009_v35 = vsel %vm1003_vm1, %v3825_v30, 0.0 }
  0x6e   : > { %v1021_v32 = vadd.f32 %v1020_v29, %v1019_v26  ;;  %v1008_v33 = vadd.f32 %v1007_v31, %v1006_v28  ;;  %3946 = vmatpush3.bf16.msra.mxu0 %v4138_v49 }
  0x6f   : > { %1132 = vperm.xlu1 %4136, %v1122_v7   ;;  %3947 = vmatprep.subr.bf16.mxu0 %v4463_v47  ;;  %v4140_v7 = vld [vmem:[%s5581_s28 + $0x18] sm:$0xff]  }
  0x70   : > { %v1023_v36 = vadd.f32 %v1022_v34, %v1021_v32  ;;  %v1010_v37 = vadd.f32 %v1009_v35, %v1008_v33 }
  0x72   : > { %v1024_v38 = vrot.slane %v1023_v36, 4  ;;  %v1011_v39 = vrot.slane %v1010_v37, 4  ;;  %3948 = vmatpush3.bf16.msra.mxu0 %v4139_v54 }
  0x73   : > { %1105 = vperm.xlu1 %4136, %v1091_v8   ;;  %3949 = vmatprep.subr.bf16.mxu0 %v4463_v47 }
  0x74   : > { %v1025_v40 = vadd.f32 %v1024_v38, %v1023_v36  ;;  %v1012_v41 = vadd.f32 %v1011_v39, %v1010_v37 }
  0x76   : > { %v1026_v42 = vrot.slane %v1025_v40, 2  ;;  %v1013_v43 = vrot.slane %v1012_v41, 2  ;;  %3950 = vmatpush3.bf16.msra.mxu0 %v4140_v7 }
  0x77   : > { %1110 = vperm.xlu1 %4136, %v1092_v9  }
  0x78   : > { %v1027_v44 = vadd.f32 %v1026_v42, %v1025_v40  ;;  %v1014_v46 = vadd.f32 %v1013_v43, %v1012_v41 }
  0x7a   : > { %v1028_v48 = vrot.slane %v1027_v44, 1  ;;  %v1015_v50 = vrot.slane %v1014_v46, 1 }
  0x7b   : > { %1137 = vperm.xlu1 %4136, %v1123_v10  }
  0x7c   : > { %v1029_v51 = vadd.f32 %v1028_v48, %v1027_v44  ;;  %v1016_v52 = vadd.f32 %v1015_v50, %v1014_v46 }
  0x7e   : > { %v1032_v53 = vmul.f32 0.03125, %v1029_v51  ;;  %v1031_v55 = vmul.f32 0.03125, %v1016_v52 }
  0x80   : > { %v4786_v56 = vsub.f32 %v3828_v14, %v1032_v53  ;;  %v4788_v57 = vsub.f32 %v3829_v15, %v1032_v53  ;;  %v1039_v58 = vsub.f32 %v3832_v20, %v1032_v53  ;;  %v1040_v59 = vsub.f32 %v3833_v27, %v1032_v53 }
  0x81   : > { %1095 = vperm.xlu0 %4135, %v1089_v11   ;;  %v4790_v60 = vsub.f32 %v3820_v16, %v1031_v55  ;;  %v1034_v61 = vsub.f32 %v3821_v17, %v1031_v55  ;;  %v1035_v62 = vsub.f32 %v3824_v23, %v1031_v55  ;;  %v1036_v63 = vsub.f32 %v3825_v30, %v1031_v55 }
  0x82   : > { %v1045_v2 = vmul.f32 %v4786_v56, %v4786_v56  ;;  %v1046_v3 = vmul.f32 %v4788_v57, %v4788_v57  ;;  %v1047_v5 = vmul.f32 %v1039_v58, %v1039_v58  ;;  %v1048_v6 = vmul.f32 %v1040_v59, %v1040_v59 }
  0x83   : > { %v1041_v8 = vmul.f32 %v4790_v60, %v4790_v60  ;;  %v1042_v9 = vmul.f32 %v1034_v61, %v1034_v61  ;;  %v1043_v10 = vmul.f32 %v1035_v62, %v1035_v62  ;;  %v1044_v11 = vmul.f32 %v1036_v63, %v1036_v63 }
  0x84   : > { %v1062_v12 = vsel %vm1003_vm1, %v1045_v2, 0.0  ;;  %v1063_v13 = vsel %vm1003_vm1, %v1046_v3, 0.0  ;;  %v1065_v17 = vsel %vm1003_vm1, %v1047_v5, 0.0  ;;  %v1067_v21 = vsel %vm1003_vm1, %v1048_v6, 0.0 }
  0x85   : > { %v1049_v14 = vsel %vm1003_vm1, %v1041_v8, 0.0  ;;  %v1050_v15 = vsel %vm1003_vm1, %v1042_v9, 0.0  ;;  %v1052_v16 = vsel %vm1003_vm1, %v1043_v10, 0.0  ;;  %v1064_v19 = vadd.f32 %v1063_v13, %v1062_v12 }
  0x86   : > { %v1051_v18 = vadd.f32 %v1050_v15, %v1049_v14  ;;  %v1054_v20 = vsel %vm1003_vm1, %v1044_v11, 0.0 }
  0x87   : > { %v1066_v23 = vadd.f32 %v1065_v17, %v1064_v19 }
  0x88   : > { %v1053_v22 = vadd.f32 %v1052_v16, %v1051_v18 }
  0x89   : > { %v1068_v25 = vadd.f32 %v1067_v21, %v1066_v23 }
  0x8a   : > { %v1055_v24 = vadd.f32 %v1054_v20, %v1053_v22 }
  0x8b   : > { %v1069_v27 = vrot.slane %v1068_v25, 4 }
  0x8c   : > { %v1056_v26 = vrot.slane %v1055_v24, 4 }
  0x8d   : > { %v1070_v29 = vadd.f32 %v1069_v27, %v1068_v25 }
  0x8e   : > { %v1057_v28 = vadd.f32 %v1056_v26, %v1055_v24 }
  0x8f   : > { %v1071_v31 = vrot.slane %v1070_v29, 2 }
  0x90   : > { %v1058_v30 = vrot.slane %v1057_v28, 2 }
  0x91   : > { %v1072_v33 = vadd.f32 %v1071_v31, %v1070_v29 }
  0x92   : > { %v1059_v32 = vadd.f32 %v1058_v30, %v1057_v28 }
  0x93   : > { %v1073_v35 = vrot.slane %v1072_v33, 1 }
  0x94   : > { %v1060_v34 = vrot.slane %v1059_v32, 1 }
  0x95   : > { %v1074_v37 = vadd.f32 %v1073_v35, %v1072_v33 }
  0x96   : > { %v1061_v36 = vadd.f32 %v1060_v34, %v1059_v32 }
  0x97   : > { %v1076_v39 = vmul.f32 0.03125, %v1074_v37 }
  0x98   : > { %v1075_v38 = vmul.f32 0.03125, %v1061_v36 }
  0x99   : > { %v1078_v41 = vadd.f32 1e-05, %v1076_v39 }
  0x9a   : > { %v1077_v40 = vadd.f32 1e-05, %v1075_v38  ;;  %v4142_v38 = vld [vmem:[%s5583_s26 + $0x8] sm:$0xff]  }
  0x9c   : > { %4184 = vrsqrt.f32 %v1077_v40 }
  0x9d   : > { %4186 = vrsqrt.f32 %v1078_v41  ;;  %v3680_v41 = vld [vmem:[#allocation4] ss:$0 sm:$0xff] }
  0xa6   : > { %v4185_v42 = vpop.eup %4184 }
  0xa7   : > { %v4187_v43 = vpop.eup %4186  ;;  %v1083_v44 = vmul.f32 %v4185_v42, %v1035_v62  ;;  %v1084_v45 = vmul.f32 %v4185_v42, %v1036_v63  ;;  %v1082_v2 = vmul.f32 %v4185_v42, %v1034_v61 }
  0xa8   : > { %v1087_v46 = vmul.f32 %v4187_v43, %v1039_v58  ;;  %v1088_v48 = vmul.f32 %v4187_v43, %v1040_v59  ;;  %v1086_v3 = vmul.f32 %v4187_v43, %v4788_v57  ;;  %v1081_v59 = vmul.f32 %v4185_v42, %v4790_v60  ;;  %v4141_v60 = vld [vmem:[%s5582_s4] sm:$0xff]  }
  0xa9   : > { %v1085_v8 = vmul.f32 %v4187_v43, %v4786_v56  ;;  %v1124_v56 = vld [vmem:[%s5578_s10 + $0x18] sm:$0xff]  ;;  %3967 = vmatprep.mubr.msk.bf16.mxu1 %vm1171_vm2, %v4141_v60 }
  0xe6   : > { %v1101_v50 = vpop.permute.xlu1 %1100 }
  0xe7   : > { %v1114_v6 = vmul.f32 %v1101_v50, %v1082_v2  ;;  %v1118_v7 = vmul.f32 %v1101_v50, %v1086_v3 }
  0xea   : > { %v1128_v5 = vpop.permute.xlu1 %1127 }
  0xee   : > { %v1133_v10 = vpop.permute.xlu1 %1132 }
  0xef   : > { %v1146_v11 = vadd.f32 %v1133_v10, %v1114_v6  ;;  %v1150_v57 = vadd.f32 %v1133_v10, %v1118_v7 }
  0xf2   : > { %v1106_v18 = vpop.permute.xlu1 %1105 }
  0xf3   : > { %v1115_v24 = vmul.f32 %v1106_v18, %v1083_v44  ;;  %v1119_v26 = vmul.f32 %v1106_v18, %v1087_v46 }
  0xf4   : > { %v866_v49 = vpop.xlane.xlu0 %865 }
  0xf5   : > { %v871_v51 = vmul.f32 0.015625, %v866_v49 }
  0xf6   : > { %v1111_v19 = vpop.permute.xlu1 %1110 }
  0xf7   : > { %v4811_v52 = vsub.f32 %v4720_v0, %v871_v51  ;;  %v1116_v28 = vmul.f32 %v1111_v19, %v1084_v45  ;;  %v1120_v29 = vmul.f32 %v1111_v19, %v1088_v48  ;;  %v3681_v45 = vld [vmem:[#allocation7] ss:$0 sm:$0xff] }
  0xf8   : > { %v869_v53 = vpop.xlane.xlu0 %868 }
  0xf9   : > { %v872_v54 = vmul.f32 0.015625, %v869_v53  ;;  %v875_v55 = vmul.f32 %v4811_v52, %v4811_v52 }
  0xfa   : > { %v1138_v20 = vpop.permute.xlu1 %1137 }
  0xfb   : > { %v874_v62 = vsub.f32 %v4725_v1, %v872_v54  ;;  %v877_v58 = vsel %vm863_vm0, %v875_v55, 0.0  ;;  %v1147_v31 = vadd.f32 %v1138_v20, %v1115_v24  ;;  %v1151_v33 = vadd.f32 %v1138_v20, %v1119_v26 }
  0xfc   : > { %878 = vadd.xlane.f32.xlu1 %v877_v58 }
  0xfd   : > { %v876_v63 = vmul.f32 %v874_v62, %v874_v62 }
  0xff   : > { %v880_v9 = vsel %vm863_vm0, %v876_v63, 0.0 }
 0x100   : > { %881 = vadd.xlane.f32.xlu1 %v880_v9  ;;  %v1096_v61 = vpop.permute.xlu0 %1095 }
 0x101   : > { %v1113_v12 = vmul.f32 %v1096_v61, %v1081_v59  ;;  %v1117_v13 = vmul.f32 %v1096_v61, %v1085_v8 }
 0x103   : > { %v1145_v14 = vadd.f32 %v1128_v5, %v1113_v12  ;;  %v1149_v15 = vadd.f32 %v1128_v5, %v1117_v13 }
 0x105   : > { %v1159_v16 = vpack.c.bf16 %v1150_v57, %v1149_v15  ;;  %v1157_v17 = vpack.c.bf16 %v1146_v11, %v1145_v14 }
 0x107   : > { %3963 = vmatprep.subr.bf16.mxu1 %v1159_v16  ;;  %3955 = vmatprep.subr.bf16.mxu0 %v1157_v17 }
 0x108   : > { %3964 = vmatpush3.bf16.msra.mxu1 %v1159_v16 }
 0x111   : > { %1142 = vperm.xlu1 %4136, %v1124_v56  }
 0x189   : > { %v879_v21 = vpop.xlane.xlu1 %878 }
 0x18a   : > { %v883_v22 = vmul.f32 0.015625, %v879_v21 }
 0x18c   : > { %v885_v23 = vadd.f32 1e-05, %v883_v22 }
 0x18d   : > { %v882_v25 = vpop.xlane.xlu1 %881 }
 0x18e   : > { %4188 = vrsqrt.f32 %v885_v23  ;;  %v884_v27 = vmul.f32 0.015625, %v882_v25 }
 0x190   : > { %v886_v30 = vadd.f32 1e-05, %v884_v27 }
 0x191   : > { %v1143_v32 = vpop.permute.xlu1 %1142 }
 0x192   : > { %4190 = vrsqrt.f32 %v886_v30  ;;  %v1148_v34 = vadd.f32 %v1143_v32, %v1116_v28  ;;  %v1152_v35 = vadd.f32 %v1143_v32, %v1120_v29 }
 0x194   : > { %v1158_v36 = vpack.c.bf16 %v1148_v34, %v1147_v31  ;;  %v1160_v37 = vpack.c.bf16 %v1152_v35, %v1151_v33 }
 0x196   : > { %3965 = vmatprep.subr.bf16.mxu1 %v1160_v37 }
 0x197   : > { %3966 = vmatpush3.bf16.msra.mxu1 %v1160_v37 }
 0x198   : > { %v4189_v39 = vpop.eup %4188  ;;  %3977 = vmatprep.subr.bf16.mxu1 %v4463_v47 }
 0x199   : > { %v889_v40 = vmul.f32 %v4189_v39, %v4811_v52 }
 0x19a   : > { %3968 = vmatmul.mubr.msk.bf16.vlgmr.msra.gmra.mrb[0].mxu1 %vm1171_vm2, %v4142_v38 }
 0x19b   : > { %3979 = vmatprep.mubr.msk.bf16.mxu1 %vm4464_vm3, %v4463_v47  ;;  %v897_v44 = vmul.f32 %v3680_v41, %v889_v40 }
 0x19c   : > { %v4191_v42 = vpop.eup %4190 }
 0x19d   : > { %v890_v43 = vmul.f32 %v4191_v42, %v874_v62  ;;  %v905_v48 = vadd.f32 %v3681_v45, %v897_v44 }
 0x19f   : > { %v898_v46 = vmul.f32 %v3680_v41, %v890_v43 }
 0x1a1   : > { %v906_v49 = vadd.f32 %v3681_v45, %v898_v46 }
 0x1a3   : > { %v907_v50 = vpack.c.bf16 %v906_v49, %v905_v48 }
 0x1a5   : > { %3952 = vmatmul.mubr.msk.bf16.vlgmr.msra.gmra.mrb[0].mxu0 %vm863_vm0, %v907_v50 }
 0x1a6   : > { %3956 = vmatpush3.bf16.msra.mxu0 %v1157_v17  ;;  %3959 = vmatprep.mubr.msk.bf16.mxu0 %vm1171_vm2, %v4141_v60 }
 0x1a7   : > { %3957 = vmatprep.subr.bf16.mxu0 %v1158_v36 }
 0x1aa   : > { %3958 = vmatpush3.bf16.msra.mxu0 %v1158_v36 }
 0x1ab   : > { %3971 = vmatprep.subr.bf16.mxu0 %v4463_v47 }
 0x1ad   : > { %3960 = vmatmul.mubr.msk.bf16.vlgmr.msra.gmra.mrb[4].mxu0 %vm1171_vm2, %v4142_v38 }
 0x1ae   : > { %3973 = vmatprep.mubr.msk.bf16.mxu0 %vm4464_vm3, %v4463_v47 }
 0x26d   : > { %v3969_v51 = vpop.f32.mrb[0].mxu1 }
 0x26e   : > { %v1261_v52 = vpop.f32.mrb[1].mxu1 }
 0x26f   : > { %v3970_v53 = vpop.f32.mrb[2].mxu1 }
 0x270   : > { %v1279_v54 = vpack.c.bf16 %v3970_v53, %v3969_v51  ;;  %v1264_v55 = vpop.f32.mrb[3].mxu1 }
 0x271   : > { %v1277_v2 = vpack.c.bf16 %v1264_v55, %v1261_v52 }
 0x272   : > { %v1462_v6 = vsel %vm1003_vm1, %v1279_v54, 0 }
 0x273   : > { %3978 = vmatpush3.bf16.msra.mxu1 %v1277_v2 }
 0x274   : > { %3989 = vmatprep.subr.bf16.mxu1 %v4463_v47 }
 0x278   : > { %v977_v3 = vpop.f32.mrb[0].mxu0 }
 0x279   : > { %v3953_v5 = vpop.f32.mrb[1].mxu0  ;;  %v984_v58 = vmul.f32 0.25, %v977_v3  ;;  %v4143_v3 = vld [vmem:[%s5584_s30] sm:$0xff]  }
 0x27a   : > { %v980_v62 = vpop.f32.mrb[2].mxu0 }
 0x27b   : > { %v985_v59 = vmul.f32 0.25, %v980_v62  ;;  %v3954_v63 = vpop.f32.mrb[3].mxu0 }
 0x27d   : > { %v986_v7 = vpack.c.bf16 %v985_v59, %v984_v58 }
 0x27f   : > { %3980 = vmatmul.mubr.msk.bf16.vlgmr.msra.gmra.mrb[4].mxu1 %vm1003_vm1, %v986_v7 }
 0x280   : > { %v3961_v8 = vpop.f32.mrb[4].mxu0  ;;  %3990 = vmatpush3.bf16.xpose.msra.mxu1 %v1462_v6  ;;  %3991 = vmatprep.mubr.msk.bf16.mxu1 %vm4464_vm3, %v4463_v47 }
 0x281   : > { %v1212_v9 = vpop.f32.mrb[5].mxu0 }
 0x282   : > { %v3962_v10 = vpop.f32.mrb[6].mxu0 }
 0x283   : > { %v1278_v61 = vpack.c.bf16 %v3962_v10, %v3961_v8  ;;  %v1215_v11 = vpop.f32.mrb[7].mxu0 }
 0x284   : > { %v1276_v57 = vpack.c.bf16 %v1215_v11, %v1212_v9 }
 0x285   : > { %v1415_v12 = vsel %vm1003_vm1, %v1278_v61, 0 }
 0x286   : > { %3972 = vmatpush3.bf16.msra.mxu0 %v1276_v57 }
 0x287   : > { %3983 = vmatprep.subr.bf16.mxu0 %v4463_v47 }
 0x289   : > { %3974 = vmatmul.mubr.msk.bf16.vlgmr.msra.gmra.mrb[8].mxu0 %vm1003_vm1, %v986_v7 }
 0x28a   : > { %3985 = vmatprep.mubr.msk.bf16.mxu0 %vm4464_vm3, %v4463_v47 }
 0x28f   : > { %3984 = vmatpush3.bf16.xpose.msra.mxu0 %v1415_v12 }
 0x290   : > { %3995 = vmatprep.subr.bf16.mxu0 %v4143_v3 }
 0x352   : > { %v1358_v13 = vpop.f32.mrb[4].mxu1 }
 0x353   : > { %v3981_v14 = vpop.f32.mrb[5].mxu1  ;;  %v1371_v47 = vsel %vm1003_vm1, %v1358_v13, -inf }
 0x354   : > { %v1361_v15 = vpop.f32.mrb[6].mxu1 }
 0x355   : > { %v3982_v16 = vpop.f32.mrb[7].mxu1  ;;  %v1374_v21 = vsel %vm1003_vm1, %v1361_v15, -inf }
 0x35c   : > { %v1317_v17 = vpop.f32.mrb[8].mxu0 }
 0x35d   : > { %v3975_v56 = vpop.f32.mrb[9].mxu0  ;;  %v1365_v60 = vsel %vm1003_vm1, %v1317_v17, -inf }
 0x35e   : > { %1366 = vmax.xlane.f32.xlu1 %v1365_v60  ;;  %v1320_v18 = vpop.f32.mrb[10].mxu0 }
 0x35f   : > { %v3976_v19 = vpop.f32.mrb[11].mxu0  ;;  %v1368_v20 = vsel %vm1003_vm1, %v1320_v18, -inf }
 0x360   : > { %1369 = vmax.xlane.f32.xlu0 %v1368_v20 }
 0x362   : > { %1375 = vmax.xlane.f32.xlu1 %v1374_v21 }
 0x364   : > { %1372 = vmax.xlane.f32.xlu0 %v1371_v47 }
 0x3eb   : > { %v1367_v22 = vpop.xlane.xlu1 %1366 }
 0x3ec   : > { %v1377_v23 = vsub.f32 %v1317_v17, %v1367_v22 }
 0x3ed   : > { %v1370_v24 = vpop.xlane.xlu0 %1369 }
 0x3ee   : > { %v1381_v25 = vmul.f32 1.442695, %v1377_v23  ;;  %v1378_v26 = vsub.f32 %v1320_v18, %v1370_v24 }
 0x3ef   : > { %v1376_v27 = vpop.xlane.xlu1 %1375 }
 0x3f0   : > { %4192 = vpow2.f32 %v1381_v25  ;;  %v1383_v28 = vmul.f32 1.442695, %v1378_v26  ;;  %v1380_v29 = vsub.f32 %v1361_v15, %v1376_v27 }
 0x3f1   : > { %v1373_v30 = vpop.xlane.xlu0 %1372 }
 0x3f2   : > { %4194 = vpow2.f32 %v1383_v28  ;;  %v1387_v31 = vmul.f32 1.442695, %v1380_v29  ;;  %v1379_v32 = vsub.f32 %v1358_v13, %v1373_v30  ;;  %v3697_v13 = vld [vmem:[%s5585_s29] ss:$0 sm:$0xff] }
 0x3f4   : > { %4196 = vpow2.f32 %v1387_v31  ;;  %v1385_v33 = vmul.f32 1.442695, %v1379_v32 }
 0x3f6   : > { %4198 = vpow2.f32 %v1385_v33 }
 0x3fa   : > { %v4193_v34 = vpop.eup %4192 }
 0x3fb   : > { %v1389_v35 = vsel %vm1003_vm1, %v4193_v34, 0.0 }
 0x3fc   : > { %v4195_v36 = vpop.eup %4194  ;;  %1390 = vadd.xlane.f32.xlu0 %v1389_v35 }
 0x3fd   : > { %v1392_v37 = vsel %vm1003_vm1, %v4195_v36, 0.0 }
 0x3fe   : > { %v4197_v38 = vpop.eup %4196  ;;  %1393 = vadd.xlane.f32.xlu1 %v1392_v37 }
 0x3ff   : > { %v1398_v40 = vsel %vm1003_vm1, %v4197_v38, 0.0 }
 0x400   : > { %v4199_v39 = vpop.eup %4198 }
 0x401   : > { %v1395_v41 = vsel %vm1003_vm1, %v4199_v39, 0.0 }
 0x402   : > { %1399 = vadd.xlane.f32.xlu1 %v1398_v40  ;;  %1396 = vadd.xlane.f32.xlu0 %v1395_v41 }
 0x489   : > { %v1391_v42 = vpop.xlane.xlu0 %1390 }
 0x48a   : > { %4200 = vrcp.f32 %v1391_v42 }
 0x48b   : > { %v1394_v43 = vpop.xlane.xlu1 %1393 }
 0x48c   : > { %4202 = vrcp.f32 %v1394_v43 }
 0x48f   : > { %v1400_v44 = vpop.xlane.xlu1 %1399  ;;  %v1397_v45 = vpop.xlane.xlu0 %1396 }
 0x490   : > { %4204 = vrcp.f32 %v1400_v44 }
 0x491   : > { %4206 = vrcp.f32 %v1397_v45  ;;  %v4146_v45 = vld [vmem:[%s5517_s12 + $0x4] ss:$16 sps:$4 sm:$0xff]  }
 0x492   : > { %1822 = vmatprep.subr.bf16.mxu1 %v4146_v45  ;;  %v4180_v45 = vld [vmem:[%s5519_s14 + $0x70] sm:$0xff]  }
 0x494   : > { %v4201_v46 = vpop.eup %4200 }
 0x495   : > { %v1405_v49 = vmul.f32 %v4201_v46, %v4193_v34  ;;  %v4149_v46 = vld [vmem:[%s5517_s12 + $0xc] ss:$16 sps:$4 sm:$0xff]  }
 0x496   : > { %v4203_v48 = vpop.eup %4202 }
 0x497   : > { %v1406_v50 = vmul.f32 %v4203_v48, %v4195_v36  ;;  %v4144_v48 = vld [vmem:[%s5517_s12] ss:$16 sps:$4 sm:$0xff]  }
 0x499   : > { %v1409_v51 = vpack.c.bf16 %v1406_v50, %v1405_v49  ;;  %v4147_v49 = vld [vmem:[%s5517_s12 + $0x8] ss:$16 sps:$4 sm:$0xff]   ;;  %v4152_v50 = vld [vmem:[%s5517_s12 + $0x24] ss:$16 sps:$4 sm:$0xff]  }
 0x49a   : > { %v4205_v52 = vpop.eup %4204 }
 0x49b   : > { %v4207_v53 = vpop.eup %4206  ;;  %v1408_v54 = vmul.f32 %v4205_v52, %v4197_v38  ;;  %3986 = vmatmul.mubr.msk.bf16.vlgmr.msra.gmra.mrb[12].mxu0 %vm1003_vm1, %v1409_v51  ;;  %v4155_v51 = vld [vmem:[%s5517_s12 + $0x2c] ss:$16 sps:$4 sm:$0xff]   ;;  %v4150_v52 = vld [vmem:[%s5517_s12 + $0x20] ss:$16 sps:$4 sm:$0xff]  }
 0x49c   : > { %v1407_v55 = vmul.f32 %v4207_v53, %v4199_v39  ;;  %3996 = vmatpush3.bf16.msra.mxu0 %v4143_v3  ;;  %v4153_v53 = vld [vmem:[%s5517_s12 + $0x28] ss:$16 sps:$4 sm:$0xff]  }
 0x49d   : > { %1875 = vmatprep.subr.bf16.mxu0 %v4149_v46  ;;  %v4159_v3 = vld [vmem:[%s5517_s12 + $0x48] ss:$16 sps:$4 sm:$0xff]   ;;  %v4181_v46 = vld [vmem:[%s5519_s14 + $0x30] sm:$0xff]  }
 0x49e   : > { %v1410_v2 = vpack.c.bf16 %v1408_v54, %v1407_v55  ;;  %v4158_v54 = vld [vmem:[%s5517_s12 + $0x44] ss:$16 sps:$4 sm:$0xff]   ;;  %v4161_v55 = vld [vmem:[%s5517_s12 + $0x4c] ss:$16 sps:$4 sm:$0xff]  }
 0x4a0   : > { %3992 = vmatmul.mubr.msk.bf16.vlgmr.msra.gmra.mrb[8].mxu1 %vm1003_vm1, %v1410_v2  ;;  %v4156_v2 = vld [vmem:[%s5517_s12 + $0x40] ss:$16 sps:$4 sm:$0xff]  }
 0x4a1   : > { %1854 = vmatprep.mubr.bf16.mxu1 %v4462_v4  ;;  %1823 = vmatpush1.bf16.msra.mxu1 %v4144_v48  ;;  %v4182_v48 = vld [vmem:[%s5519_s14 + $0x78] sm:$0xff]  }
 0x4a2   : > { %1824 = vmatprep.subr.bf16.mxu1 %v4152_v50  ;;  %v1716_v50 = vlaneseq }
 0x4a5   : > { %1825 = vmatpush1.bf16.msra.mxu1 %v4150_v52 }
 0x4a6   : > { %1826 = vmatprep.subr.bf16.mxu1 %v4158_v54 }
 0x4a9   : > { %1827 = vmatpush1.bf16.msra.mxu1 %v4156_v2 }
 0x56e   : > { %v1451_v5 = vpop.f32.mrb[12].mxu0 }
 0x56f   : > { %1505 = vst.msk [vmem:[#allocation3] sm:$0xff] %vm1003_vm1, %v1451_v5  ;;  %v3987_v62 = vpop.f32.mrb[13].mxu0  ;;  %v4164_v5 = vld [vmem:[%s5517_s12 + $0x64] ss:$16 sps:$4 sm:$0xff]  }
 0x570   : > { %v1454_v58 = vpop.f32.mrb[14].mxu0  ;;  %v4167_v62 = vld [vmem:[%s5517_s12 + $0x6c] ss:$16 sps:$4 sm:$0xff]   ;;  %1828 = vmatprep.subr.bf16.mxu1 %v4164_v5 }
 0x571   : > { %1506 = vst.msk [vmem:[#allocation3 + $0x8] sm:$0xff] %vm1003_vm1, %v1454_v58  ;;  %v3988_v59 = vpop.f32.mrb[15].mxu0  ;;  %v4162_v58 = vld [vmem:[%s5517_s12 + $0x60] ss:$16 sps:$4 sm:$0xff]  }
 0x572   : > { %v4165_v59 = vld [vmem:[%s5517_s12 + $0x68] ss:$16 sps:$4 sm:$0xff]   ;;  %1829 = vmatpush1.bf16.msra.mxu1 %v4162_v58 }
 0x573   : > { %v1498_v63 = vpop.f32.mrb[8].mxu1 }
 0x574   : > { %1507 = vst.msk [vmem:[#allocation3 + $0x10] sm:$0xff] %vm1003_vm1, %v1498_v63  ;;  %v3993_v6 = vpop.f32.mrb[9].mxu1 }
 0x575   : > { %v1501_v7 = vpop.f32.mrb[10].mxu1 }
 0x576   : > { %1508 = vst.msk [vmem:[#allocation3 + $0x18] sm:$0xff] %vm1003_vm1, %v1501_v7  ;;  %v3994_v8 = vpop.f32.mrb[11].mxu1  ;;  %v1509_v9 = vld [vmem:[#allocation3] sm:$0xff] }
 0x578   : > { %v1510_v10 = vld [vmem:[#allocation3 + $0x8] sm:$0xff] }
 0x579   : > { %v1513_v61 = vpack.c.bf16 %v1510_v10, %v1509_v9 }
 0x57b   : > { %3997 = vmatprep.mubr.msk.bf16.mxu0 %vm1003_vm1, %v1513_v61  ;;  %v1511_v11 = vld [vmem:[#allocation3 + $0x10] sm:$0xff] }
 0x57d   : > { %v1512_v57 = vld [vmem:[#allocation3 + $0x18] sm:$0xff] }
 0x57e   : > { %v1514_v12 = vpack.c.bf16 %v1512_v57, %v1511_v11 }
 0x580   : > { %3998 = vmatmul.mubr.msk.bf16.vlgmr.msra.gmra.mrb[16].mxu0 %vm1003_vm1, %v1514_v12 }
 0x581   : > { %1907 = vmatprep.mubr.bf16.mxu0 %v4462_v4  ;;  %1876 = vmatpush1.bf16.msra.mxu0 %v4147_v49  ;;  %v4183_v49 = vld [vmem:[%s5519_s14 + $0x38] sm:$0xff]  }
 0x582   : > { %1877 = vmatprep.subr.bf16.mxu0 %v4155_v51  ;;  %v5034_v51 = vshrl.u32 %v1716_v50, 7 }
 0x584   : > { %v1726_v52 = vsub.s32 2, %v5034_v51  ;;  %v1730_v54 = vsub.s32 3, %v5034_v51 }
 0x585   : > { %1878 = vmatpush1.bf16.msra.mxu0 %v4153_v53  ;;  %v5040_v53 = vld [vmem:[%s5518_s13] sm:$0xf] }
 0x586   : > { %1879 = vmatprep.subr.bf16.mxu0 %v4161_v55  ;;  %v1727_v55 = vrot.slane %v5040_v53, %v1726_v52  ;;  %v1731_v2 = vrot.slane %v5040_v53, %v1730_v54  ;;  %v1718_v54 = vsub.s32 0, %v5034_v51 }
 0x589   : > { %1880 = vmatpush1.bf16.msra.mxu0 %v4159_v3 }
 0x58a   : > { %1881 = vmatprep.subr.bf16.mxu0 %v4167_v62 }
 0x58d   : > { %1882 = vmatpush1.bf16.msra.mxu0 %v4165_v59 }
 0x653   : > { %v3999_v14 = vpop.f32.mrb[16].mxu0 }
 0x654   : > { %v1570_v15 = vpop.f32.mrb[17].mxu0  ;;  %v1579_v16 = vadd.f32 %v3999_v14, %v3697_v13 }
 0x655   : > { %v1571_v17 = vadd.f32 %v3697_v13, %v1570_v15  ;;  %v4000_v56 = vpop.f32.mrb[18].mxu0 }
 0x656   : > { %v1573_v60 = vpop.f32.mrb[19].mxu0  ;;  %v1582_v19 = vadd.f32 %v4000_v56, %v3697_v13  ;;  %v4882_v21 = vadd.f32 %v1579_v16, %v4720_v0  ;;  %v3701_v16 = vld [vmem:[%s5586_s5] ss:$0 sm:$0xff] }
 0x657   : > { %v4879_v18 = vadd.f32 %v1571_v17, %v4720_v0  ;;  %v1574_v20 = vadd.f32 %v3697_v13, %v1573_v60 }
 0x658   : > { %v4890_v23 = vadd.f32 %v1582_v19, %v4725_v1  ;;  %v1647_v25 = vsel %vm863_vm0, %v4882_v21, 0.0 }
 0x659   : > { %v4885_v47 = vadd.f32 %v1574_v20, %v4725_v1  ;;  %v1641_v22 = vsel %vm863_vm0, %v4879_v18, 0.0 }
 0x65a   : > { %1642 = vadd.xlane.f32.xlu0 %v1641_v22  ;;  %v1650_v0 = vsel %vm863_vm0, %v4890_v23, 0.0  ;;  %v3702_v22 = vld [vmem:[%s5587_s0] ss:$0 sm:$0xff] }
 0x65b   : > { %v1644_v24 = vsel %vm863_vm0, %v4885_v47, 0.0 }
 0x65c   : > { %1645 = vadd.xlane.f32.xlu1 %v1644_v24 }
 0x65e   : > { %1648 = vadd.xlane.f32.xlu0 %v1647_v25 }
 0x660   : > { %1651 = vadd.xlane.f32.xlu1 %v1650_v0 }
 0x6e7   : > { %v1643_v26 = vpop.xlane.xlu0 %1642 }
 0x6e8   : > { %v1653_v27 = vmul.f32 0.015625, %v1643_v26 }
 0x6e9   : > { %v1646_v28 = vpop.xlane.xlu1 %1645 }
 0x6ea   : > { %v4899_v29 = vsub.f32 %v4879_v18, %v1653_v27  ;;  %v1654_v1 = vmul.f32 0.015625, %v1646_v28 }
 0x6eb   : > { %v1649_v30 = vpop.xlane.xlu0 %1648 }
 0x6ec   : > { %v4902_v31 = vsub.f32 %v4885_v47, %v1654_v1  ;;  %v1655_v32 = vmul.f32 0.015625, %v1649_v30  ;;  %v1661_v33 = vmul.f32 %v4899_v29, %v4899_v29 }
 0x6ed   : > { %v1652_v34 = vpop.xlane.xlu1 %1651 }
 0x6ee   : > { %v4907_v35 = vsub.f32 %v4882_v21, %v1655_v32  ;;  %v1656_v36 = vmul.f32 0.015625, %v1652_v34  ;;  %v1665_v37 = vsel %vm863_vm0, %v1661_v33, 0.0  ;;  %v1662_v38 = vmul.f32 %v4902_v31, %v4902_v31  ;;  %v4168_v34 = vld [vmem:[%s5519_s14 + $0x40] sm:$0xff]  }
 0x6ef   : > { %1666 = vadd.xlane.f32.xlu0 %v1665_v37  ;;  %3861 = vmatprep.subr.bf16.mxu1 %v4168_v34  ;;  %v4172_v37 = vld [vmem:[%s5519_s14 + $0x50] sm:$0xff]  }
 0x6f0   : > { %v4913_v39 = vsub.f32 %v4890_v23, %v1656_v36  ;;  %v1668_v40 = vsel %vm863_vm0, %v1662_v38, 0.0  ;;  %v1663_v41 = vmul.f32 %v4907_v35, %v4907_v35  ;;  %v4171_v36 = vld [vmem:[%s5519_s14 + $0x8] sm:$0xff]   ;;  %v4173_v38 = vld [vmem:[%s5519_s14 + $0x10] sm:$0xff]  }
 0x6f1   : > { %1669 = vadd.xlane.f32.xlu1 %v1668_v40  ;;  %v4175_v40 = vld [vmem:[%s5519_s14 + $0x18] sm:$0xff]  }
 0x6f2   : > { %v1671_v42 = vsel %vm863_vm0, %v1663_v41, 0.0  ;;  %v1664_v43 = vmul.f32 %v4913_v39, %v4913_v39  ;;  %v4176_v41 = vld [vmem:[%s5519_s14 + $0x60] sm:$0xff]  }
 0x6f3   : > { %1672 = vadd.xlane.f32.xlu0 %v1671_v42  ;;  %v4177_v42 = vld [vmem:[%s5519_s14 + $0x20] sm:$0xff]  }
 0x6f4   : > { %v1674_v44 = vsel %vm863_vm0, %v1664_v43, 0.0  ;;  %v4178_v43 = vld [vmem:[%s5519_s14 + $0x68] sm:$0xff]  }
 0x6f5   : > { %1675 = vadd.xlane.f32.xlu1 %v1674_v44  ;;  %v4179_v44 = vld [vmem:[%s5519_s14 + $0x28] sm:$0xff]  }
 0x77c   : > { %v1667_v63 = vpop.xlane.xlu0 %1666 }
 0x77d   : > { %v1677_v6 = vmul.f32 0.015625, %v1667_v63 }
 0x77e   : > { %v1670_v7 = vpop.xlane.xlu1 %1669 }
 0x77f   : > { %v1681_v8 = vadd.f32 1e-05, %v1677_v6  ;;  %v1678_v9 = vmul.f32 0.015625, %v1670_v7 }
 0x780   : > { %v1673_v10 = vpop.xlane.xlu0 %1672 }
 0x781   : > { %4208 = vrsqrt.f32 %v1681_v8  ;;  %v1682_v61 = vadd.f32 1e-05, %v1678_v9  ;;  %v1679_v11 = vmul.f32 0.015625, %v1673_v10 }
 0x782   : > { %v1676_v57 = vpop.xlane.xlu1 %1675 }
 0x783   : > { %4210 = vrsqrt.f32 %v1682_v61  ;;  %v1683_v12 = vadd.f32 1e-05, %v1679_v11  ;;  %v1680_v13 = vmul.f32 0.015625, %v1676_v57 }
 0x785   : > { %4212 = vrsqrt.f32 %v1683_v12  ;;  %v1684_v14 = vadd.f32 1e-05, %v1680_v13 }
 0x787   : > { %4214 = vrsqrt.f32 %v1684_v14 }
 0x78b   : > { %v4209_v15 = vpop.eup %4208 }
 0x78c   : > { %v1689_v17 = vmul.f32 %v4209_v15, %v4899_v29 }
 0x78d   : > { %v4211_v56 = vpop.eup %4210 }
 0x78e   : > { %v1699_v60 = vmul.f32 %v3701_v16, %v1689_v17  ;;  %v1690_v19 = vmul.f32 %v4211_v56, %v4902_v31 }
 0x78f   : > { %v4213_v20 = vpop.eup %4212 }
 0x790   : > { %v1700_v24 = vmul.f32 %v3701_v16, %v1690_v19  ;;  %v1691_v0 = vmul.f32 %v4213_v20, %v4907_v35  ;;  %v1709_v27 = vadd.f32 %v3702_v22, %v1699_v60  ;;  %v4169_v35 = vld [vmem:[%s5519_s14] sm:$0xff]  }
 0x791   : > { %v4215_v25 = vpop.eup %4214 }
 0x792   : > { %v1692_v26 = vmul.f32 %v4215_v25, %v4913_v39  ;;  %v1710_v28 = vadd.f32 %v3702_v22, %v1700_v24  ;;  %v1701_v29 = vmul.f32 %v3701_v16, %v1691_v0  ;;  %v4174_v39 = vld [vmem:[%s5519_s14 + $0x58] sm:$0xff]  }
 0x794   : > { %v1713_v1 = vpack.c.bf16 %v1710_v28, %v1709_v27  ;;  %v1702_v30 = vmul.f32 %v3701_v16, %v1692_v26  ;;  %v1711_v32 = vadd.f32 %v3702_v22, %v1701_v29 }
 0x796   : > { %3719 = vmatmul.mubr.msk.bf16.vlgmr.msra.gmra.mrb[12].mxu1 %vm863_vm0, %v1713_v1  ;;  %3721 = vmatmul.mubr.msk.bf16.vlgmr.msra.gmra.mrb[20].mxu0 %vm863_vm0, %v1713_v1  ;;  %v1712_v31 = vadd.f32 %v3702_v22, %v1702_v30 }
 0x797   : > { %1864 = vmatprep.mubr.bf16.mxu1 %v4462_v4  ;;  %1917 = vmatprep.mubr.bf16.mxu0 %v4462_v4  ;;  %v4170_v4 = vld [vmem:[%s5519_s14 + $0x48] sm:$0xff]  }
 0x798   : > { %v1714_v33 = vpack.c.bf16 %v1712_v31, %v1711_v32  ;;  %3862 = vmatpush3.bf16.msra.mxu1 %v4169_v35 }
 0x799   : > { %3863 = vmatprep.subr.bf16.mxu1 %v4170_v4 }
 0x79c   : > { %3864 = vmatpush3.bf16.msra.mxu1 %v4171_v36 }
 0x79d   : > { %3865 = vmatprep.subr.bf16.mxu1 %v4172_v37 }
 0x79e   : > { %3720 = vmatmul.mubr.msk.bf16.gmra.mrb[16].mxu1 %vm863_vm0, %v1714_v33  ;;  %3722 = vmatmul.mubr.msk.bf16.gmra.mrb[24].mxu0 %vm863_vm0, %v1714_v33 }
 0x7a0   : > { %3866 = vmatpush3.bf16.msra.mxu1 %v4173_v38 }
 0x7a1   : > { %3867 = vmatprep.subr.bf16.mxu1 %v4174_v39 }
 0x7a4   : > { %3868 = vmatpush3.bf16.msra.mxu1 %v4175_v40 }
 0x7a5   : > { %3869 = vmatprep.subr.bf16.mxu1 %v4176_v41 }
 0x7a8   : > { %3870 = vmatpush3.bf16.msra.mxu1 %v4177_v42 }
 0x7a9   : > { %3871 = vmatprep.subr.bf16.mxu1 %v4178_v43 }
 0x7ac   : > { %3872 = vmatpush3.bf16.msra.mxu1 %v4179_v44 }
 0x7ad   : > { %3873 = vmatprep.subr.bf16.mxu1 %v4180_v45 }
 0x7b0   : > { %3874 = vmatpush3.bf16.msra.mxu1 %v4181_v46 }
 0x7b1   : > { %3875 = vmatprep.subr.bf16.mxu1 %v4182_v48 }
 0x7b4   : > { %3876 = vmatpush3.bf16.msra.mxu1 %v4183_v49 }
 0x869   : > { %v5045_v3 = vpop.f32.mrb[12].mxu1  ;;  %v1909_v5 = vpop.f32.mrb[20].mxu0 }
 0x86a   : > { %v5047_v62 = vadd.f32 %v1909_v5, %v1727_v55  ;;  %v5049_v58 = vpop.f32.mrb[13].mxu1  ;;  %v1911_v59 = vpop.f32.mrb[21].mxu0 }
 0x86b   : > { %v5051_v63 = vadd.f32 %v1911_v59, %v1731_v2  ;;  %v5053_v6 = vpop.f32.mrb[14].mxu1  ;;  %v1913_v7 = vpop.f32.mrb[22].mxu0 }
 0x86c   : > { %v1936_v8 = vmul.f32 0.044715, %v5047_v62  ;;  %v5056_v9 = vadd.f32 %v1913_v7, %v1727_v55  ;;  %v5058_v10 = vpop.f32.mrb[15].mxu1  ;;  %v1915_v61 = vpop.f32.mrb[23].mxu0 }
 0x86d   : > { %v1937_v11 = vmul.f32 0.044715, %v5051_v63  ;;  %v5061_v57 = vadd.f32 %v1915_v61, %v1731_v2  ;;  %v1722_v61 = vsub.s32 1, %v5034_v51 }
 0x86e   : > { %v1944_v12 = vmul.f32 %v1936_v8, %v5047_v62  ;;  %v1938_v13 = vmul.f32 0.044715, %v5056_v9 }
 0x86f   : > { %v1945_v14 = vmul.f32 %v1937_v11, %v5051_v63  ;;  %v1939_v15 = vmul.f32 0.044715, %v5061_v57 }
 0x870   : > { %v1952_v16 = vmul.f32 %v1944_v12, %v5047_v62  ;;  %v1946_v17 = vmul.f32 %v1938_v13, %v5056_v9  ;;  %v1719_v12 = vrot.slane %v5040_v53, %v1718_v54 }
 0x871   : > { %v1953_v56 = vmul.f32 %v1945_v14, %v5051_v63  ;;  %v1947_v60 = vmul.f32 %v1939_v15, %v5061_v57  ;;  %v5071_v19 = vpop.f32.mrb[16].mxu1  ;;  %v1919_v20 = vpop.f32.mrb[24].mxu0 }
 0x872   : > { %v1960_v22 = vadd.f32 %v1952_v16, %v5047_v62  ;;  %v1954_v24 = vmul.f32 %v1946_v17, %v5056_v9  ;;  %v5075_v25 = vadd.f32 %v1919_v20, %v1727_v55  ;;  %v5077_v0 = vpop.f32.mrb[17].mxu1  ;;  %v1921_v26 = vpop.f32.mrb[25].mxu0  ;;  %v1928_v16 = vmul.f32 0.5, %v5047_v62 }
 0x873   : > { %v1961_v27 = vadd.f32 %v1953_v56, %v5051_v63  ;;  %v1955_v28 = vmul.f32 %v1947_v60, %v5061_v57  ;;  %v5081_v1 = vadd.f32 %v1921_v26, %v1731_v2  ;;  %v5083_v30 = vpop.f32.mrb[18].mxu1  ;;  %v1923_v29 = vpop.f32.mrb[26].mxu0  ;;  %v1723_v60 = vrot.slane %v5040_v53, %v1722_v61 }
 0x874   : > { %v1968_v31 = vmul.f32 0.7978846, %v1960_v22  ;;  %v1962_v32 = vadd.f32 %v1954_v24, %v5056_v9  ;;  %v1940_v33 = vmul.f32 0.044715, %v5075_v25  ;;  %v5087_v34 = vpop.f32.mrb[19].mxu1  ;;  %v1925_v35 = vpop.f32.mrb[27].mxu0  ;;  %v5091_v37 = vadd.f32 %v1923_v29, %v1727_v55 }
 0x875   : > { %v1963_v4 = vadd.f32 %v1955_v28, %v5061_v57  ;;  %v1941_v36 = vmul.f32 0.044715, %v5081_v1  ;;  %v5094_v40 = vadd.f32 %v1925_v35, %v1731_v2  ;;  %v1969_v43 = vmul.f32 0.7978846, %v1961_v27 }
 0x876   : > { %4216 = vtanh.f32 %v1968_v31  ;;  %v1970_v38 = vmul.f32 0.7978846, %v1962_v32  ;;  %v1948_v39 = vmul.f32 %v1940_v33, %v5075_v25  ;;  %v1942_v42 = vmul.f32 0.044715, %v5091_v37 }
 0x877   : > { %v1949_v41 = vmul.f32 %v1941_v36, %v5081_v1  ;;  %v1971_v44 = vmul.f32 0.7978846, %v1963_v4  ;;  %v1943_v46 = vmul.f32 0.044715, %v5094_v40  ;;  %v1857_v51 = vadd.f32 %v5045_v3, %v1719_v12 }
 0x878   : > { %4218 = vtanh.f32 %v1970_v38  ;;  %v1956_v45 = vmul.f32 %v1948_v39, %v5075_v25  ;;  %v1950_v49 = vmul.f32 %v1942_v42, %v5091_v37  ;;  %v1930_v24 = vmul.f32 0.5, %v5056_v9 }
 0x879   : > { %v1957_v48 = vmul.f32 %v1949_v41, %v5081_v1  ;;  %4220 = vtanh.f32 %v1969_v43  ;;  %v1951_v52 = vmul.f32 %v1943_v46, %v5094_v40  ;;  %v1861_v28 = vadd.f32 %v5053_v6, %v1719_v12 }
 0x87a   : > { %v1964_v50 = vadd.f32 %v1956_v45, %v5075_v25  ;;  %4222 = vtanh.f32 %v1971_v44  ;;  %v1958_v2 = vmul.f32 %v1950_v49, %v5091_v37  ;;  %v1929_v29 = vmul.f32 0.5, %v5051_v63 }
 0x87b   : > { %v1965_v55 = vadd.f32 %v1957_v48, %v5081_v1  ;;  %v1959_v5 = vmul.f32 %v1951_v52, %v5094_v40  ;;  %v1931_v32 = vmul.f32 0.5, %v5061_v57  ;;  %v1859_v53 = vadd.f32 %v5049_v58, %v1723_v60 }
 0x87c   : > { %v1972_v59 = vmul.f32 0.7978846, %v1964_v50  ;;  %v1966_v7 = vadd.f32 %v1958_v2, %v5091_v37  ;;  %v1863_v3 = vadd.f32 %v5058_v10, %v1723_v60  ;;  %v1932_v63 = vmul.f32 0.5, %v5075_v25 }
 0x87d   : > { %v1973_v8 = vmul.f32 0.7978846, %v1965_v55  ;;  %v1967_v11 = vadd.f32 %v1959_v5, %v5094_v40  ;;  %v1933_v44 = vmul.f32 0.5, %v5081_v1  ;;  %v1867_v46 = vadd.f32 %v5071_v19, %v1719_v12 }
 0x87e   : > { %4224 = vtanh.f32 %v1972_v59  ;;  %v1974_v13 = vmul.f32 0.7978846, %v1966_v7  ;;  %v1869_v10 = vadd.f32 %v5077_v0, %v1723_v60  ;;  %v1934_v52 = vmul.f32 0.5, %v5091_v37 }
 0x87f   : > { %4226 = vtanh.f32 %v1973_v8  ;;  %v1975_v15 = vmul.f32 0.7978846, %v1967_v11  ;;  %v1935_v55 = vmul.f32 0.5, %v5094_v40  ;;  %v1871_v1 = vadd.f32 %v5083_v30, %v1719_v12  ;;  %v3723_v40 = vld [vmem:[%s5520_s15] ss:$0 sm:$0xff] }
 0x880   : > { %v4217_v14 = vpop.eup %4216  ;;  %4228 = vtanh.f32 %v1974_v13  ;;  %v1873_v19 = vadd.f32 %v5087_v34, %v1723_v60 }
 0x881   : > { %v1984_v17 = vadd.f32 1.0, %v4217_v14  ;;  %4230 = vtanh.f32 %v1975_v15 }
 0x882   : > { %v4219_v56 = vpop.eup %4218 }
 0x883   : > { %v4221_v20 = vpop.eup %4220  ;;  %v1992_v22 = vmul.f32 %v1984_v17, %v1928_v16  ;;  %v1986_v26 = vadd.f32 1.0, %v4219_v56 }
 0x884   : > { %v4223_v27 = vpop.eup %4222  ;;  %v1985_v31 = vadd.f32 1.0, %v4221_v20 }
 0x885   : > { %v1994_v62 = vmul.f32 %v1986_v26, %v1930_v24  ;;  %v1987_v33 = vadd.f32 1.0, %v4223_v27  ;;  %v2000_v35 = vmul.f32 %v1992_v22, %v1857_v51 }
 0x886   : > { %v1993_v4 = vmul.f32 %v1985_v31, %v1929_v29 }
 0x887   : > { %v1995_v36 = vmul.f32 %v1987_v33, %v1931_v32  ;;  %v2002_v38 = vmul.f32 %v1994_v62, %v1861_v28 }
 0x888   : > { %v4225_v9 = vpop.eup %4224  ;;  %v2001_v39 = vmul.f32 %v1993_v4, %v1859_v53 }
 0x889   : > { %v4227_v41 = vpop.eup %4226  ;;  %v2003_v42 = vmul.f32 %v1995_v36, %v1863_v3  ;;  %v2008_v6 = vpack.c.bf16 %v2002_v38, %v2000_v35  ;;  %v1988_v43 = vadd.f32 1.0, %v4225_v9 }
 0x88a   : > { %v1989_v57 = vadd.f32 1.0, %v4227_v41  ;;  %v4229_v45 = vpop.eup %4228 }
 0x88b   : > { %v2009_v58 = vpack.c.bf16 %v2003_v42, %v2001_v39  ;;  %v1996_v48 = vmul.f32 %v1988_v43, %v1932_v63  ;;  %v4231_v49 = vpop.eup %4230  ;;  %v1990_v54 = vadd.f32 1.0, %v4229_v45 }
 0x88c   : > { %v1997_v50 = vmul.f32 %v1989_v57, %v1933_v44  ;;  %v1991_v25 = vadd.f32 1.0, %v4231_v49 }
 0x88d   : > { %2146 = vmatprep.mubr.bf16.mxu1 %v2009_v58  ;;  %v2004_v2 = vmul.f32 %v1996_v48, %v1867_v46  ;;  %v1998_v59 = vmul.f32 %v1990_v54, %v1934_v52 }
 0x88e   : > { %2147 = vmatmul.mubr.bf16.vlgmr.msra.gmra.mrb[20].mxu1 %v2008_v6  ;;  %v2005_v5 = vmul.f32 %v1997_v50, %v1869_v10  ;;  %v1999_v7 = vmul.f32 %v1991_v25, %v1935_v55 }
 0x88f   : > { %v2006_v8 = vmul.f32 %v1998_v59, %v1871_v1 }
 0x890   : > { %v2007_v61 = vmul.f32 %v1999_v7, %v1873_v19 }
 0x891   : > { %v2010_v0 = vpack.c.bf16 %v2006_v8, %v2004_v2 }
 0x892   : > { %v2011_v11 = vpack.c.bf16 %v2007_v61, %v2005_v5 }
 0x894   : > { %2154 = vmatprep.mubr.bf16.mxu1 %v2011_v11 }
 0x896   : > { %2155 = vmatmul.mubr.bf16.gmra.mrb[24].mxu1 %v2010_v0 }
 0x961   : > { %v3877_v37 = vpop.f32.mrb[20].mxu1 }
 0x962   : > { %v3878_v13 = vpop.f32.mrb[21].mxu1 }
 0x963   : > { %v3879_v14 = vadd.f32 %v3878_v13, %v3877_v37  ;;  %v3880_v30 = vpop.f32.mrb[22].mxu1 }
 0x964   : > { %v3881_v12 = vpop.f32.mrb[23].mxu1 }
 0x965   : > { %v2149_v15 = vadd.f32 %v3879_v14, %v3723_v40  ;;  %v3882_v16 = vadd.f32 %v3881_v12, %v3880_v30 }
 0x967   : > { %v2163_v34 = vadd.f32 %v2149_v15, %v4879_v18  ;;  %v2152_v17 = vadd.f32 %v3882_v16, %v3723_v40 }
 0x969   : > { %2167 = vst.msk [vmem:[#allocation2] sm:$0xff] %vm863_vm0, %v2163_v34  ;;  %v2164_v56 = vadd.f32 %v2152_v17, %v4885_v47  ;;  %v3883_v60 = vpop.f32.mrb[24].mxu1 }
 0x96a   : > { %v3884_v20 = vpop.f32.mrb[25].mxu1 }
 0x96b   : > { %2168 = vst.msk [vmem:[#allocation2 + $0x8] sm:$0xff] %vm863_vm0, %v2164_v56  ;;  %v3885_v51 = vadd.f32 %v3884_v20, %v3883_v60  ;;  %v3886_v22 = vpop.f32.mrb[26].mxu1 }
 0x96c   : > { %v3887_v24 = vpop.f32.mrb[27].mxu1 }
 0x96d   : > { %v2157_v26 = vadd.f32 %v3885_v51, %v3723_v40  ;;  %v3888_v27 = vadd.f32 %v3887_v24, %v3886_v22 }
 0x96f   : > { %v2165_v28 = vadd.f32 %v2157_v26, %v4882_v21  ;;  %v2160_v29 = vadd.f32 %v3888_v27, %v3723_v40 }
 0x971   : > { %2169 = vst.msk [vmem:[#allocation2 + $0x10] sm:$0xff] %vm863_vm0, %v2165_v28  ;;  %v2166_v18 = vadd.f32 %v2160_v29, %v4890_v23 }
 0x973   : > { %2170 = vst.msk [vmem:[#allocation2 + $0x18] sm:$0xff] %vm863_vm0, %v2166_v18 }
 0x974 PF: > { %p3740_p6 = scmp.le.s32.totalorder %s4450_s7, 0 }
 0x975   : > { %v5141_v47 = vld [vmem:[#allocation2] sm:$0xff] (!%p3740_p6)  ;;  %vm2186_vm4 = vcmask (!%p3740_p6), 523264   ;;  %v5145_v62 = vld [vmem:[#allocation2 + $0x8] sm:$0xff] (!%p3740_p6)  ;;  %s3741_s5 = sadd.s32 (!%p3740_p6), 4294967295, %s4450_s7  ;;  %vm4466_vm5 = vmmov (!%p3740_p6), 0   ;;  %s4467_s2 = smov (!%p3740_p6), 96  }
 0x976   : > { %2174 = sbr.rel (%p3740_p6) target bundleno = 5528 (0x1598), region = 144  ;;  %v2187_v21 = vsel (!%p3740_p6), %vm2186_vm4, %v5141_v47, 0.0  ;;  %v2190_v33 = vsel (!%p3740_p6), %vm2186_vm4, %v5145_v62, 0.0  ;;  %p2176_p4 = scmp.gt.s32.totalorder (!%p3740_p6), %s3741_s5, 0  ;;  %vm2363_vm6 = vcmask (!%p3740_p6), 130048   ;;  %vm2865_vm7 = vcmask (!%p3740_p6), 261248  }
 0x977   : > { %2188 = vadd.xlane.f32.xlu0 (!%p3740_p6), %v2187_v21  ;;  %v4465_v21 = vmov (!%p3740_p6), 0.0   ;;  %s4468_s0 = smov (!%p3740_p6), 64   ;;  %s4470_s29 = smov (!%p3740_p6), 112   ;;  %vm2903_vm8 = vcmask (!%p3740_p6), 261120  }
 0x978   : > { %v5143_v31 = vld [vmem:[#allocation2 + $0x10] sm:$0xff] (!%p3740_p6)  ;;  %4019 = vmatprep.subr.bf16.mxu1 (!%p3740_p6), %v4465_v21  ;;  %4021 = vmatprep.mubr.msk.bf16.mxu1 (!%p3740_p6), %vm4466_vm5, %v4465_v21  ;;  %s4471_s4 = smov (!%p3740_p6), 48  }
 0x979   : > { %v2193_v32 = vsel (!%p3740_p6), %vm2186_vm4, %v5143_v31, 0.0 }
 0x97a   : > { %v5151_v23 = vld [vmem:[#allocation2 + $0x18] sm:$0xff] (!%p3740_p6)  ;;  %2194 = vadd.xlane.f32.xlu1 (!%p3740_p6), %v2193_v32 }
 0x97b   : > { %v2196_v35 = vsel (!%p3740_p6), %vm2186_vm4, %v5151_v23, 0.0  ;;  %2191 = vadd.xlane.f32.xlu0 (!%p3740_p6), %v2190_v33 }
 0x97d   : > { %s5600_s5 = smov (!%p2176_p4, %s3741_s5), 0 }
 0x97e   : > { %2197 = vadd.xlane.f32.xlu1 %v2196_v35  ;;  %s3814_s30 = sshll.u32 %s5600_s5, 5  ;;  %s2182_s8 = scalar_lea.vmem %s5521_s16, %s5600_s5 }
 0x97f   : > { %s2264_s3 = scalar_lea.vmem %s5523_s18, %s3814_s30  ;;  %v3742_v14 = vld [vmem:[%s2182_s8] ss:$0 sm:$0xff]  ;;  %s2184_s30 = scalar_lea.vmem %s5522_s17, %s5600_s5 }
 0x980   : > { %v4232_v50 = vld [vmem:[%s2264_s3] sm:$0xff]   ;;  %v4233_v52 = vld [vmem:[%s2264_s3 + $0x8] sm:$0xff]   ;;  %v4234_v54 = vld [vmem:[%s2264_s3 + $0x10] sm:$0xff]   ;;  %s3815_s8 = sshll.u32 %s5600_s5, 4 }
 0x981   : > { %4001 = vmatprep.subr.bf16.mxu0 %v4232_v50  ;;  %v4235_v55 = vld [vmem:[%s2264_s3 + $0x18] sm:$0xff]   ;;  %v3743_v17 = vld [vmem:[%s2184_s30] ss:$0 sm:$0xff]  ;;  %s4469_s3 = smov 80   ;;  %s2878_s30 = scalar_lea.vmem %s5524_s19, %s3815_s8 }
 0x982   : > { %4002 = vmatpush3.bf16.msra.mxu0 %v4232_v50  ;;  %s5588_s8 = sld [smem:[#allocation28_spill]] }
 0x983   : > { %4003 = vmatprep.subr.bf16.mxu0 %v4233_v52 }
 0x986   : > { %4004 = vmatpush3.bf16.msra.mxu0 %v4233_v52 }
 0x987   : > { %4005 = vmatprep.subr.bf16.mxu0 %v4234_v54 }
 0x988   : > { %s3022_s6 = scalar_lea.vmem %s5588_s8, %s5600_s5 }
 0x98a   : > { %4006 = vmatpush3.bf16.msra.mxu0 %v4234_v54 }
 0x98b   : > { %4007 = vmatprep.subr.bf16.mxu0 %v4235_v55 }
 0x98e   : > { %4008 = vmatpush3.bf16.msra.mxu0 %v4235_v55 }
 0x98f   : > { %4013 = vmatprep.subr.bf16.mxu0 %v4465_v21 }
 0xa04   : > { %v2189_v53 = vpop.xlane.xlu0 %2188 }
 0xa05   : > { %v2200_v3 = vmul.f32 0.015625, %v2189_v53 }
 0xa07   : > { %v2195_v4 = vpop.xlane.xlu1 %2194  ;;  %v2204_v38 = vsub.f32 %v5141_v47, %v2200_v3 }
 0xa08   : > { %v2202_v36 = vmul.f32 0.015625, %v2195_v4  ;;  %v2192_v39 = vpop.xlane.xlu0 %2191 }
 0xa09   : > { %v2201_v42 = vmul.f32 0.015625, %v2192_v39  ;;  %v2208_v63 = vmul.f32 %v2204_v38, %v2204_v38 }
 0xa0a   : > { %v2206_v9 = vsub.f32 %v5143_v31, %v2202_v36 }
 0xa0b   : > { %v2198_v41 = vpop.xlane.xlu1 %2197  ;;  %v2205_v44 = vsub.f32 %v5145_v62, %v2201_v42  ;;  %v2212_v45 = vsel %vm2186_vm4, %v2208_v63, 0.0 }
 0xa0c   : > { %v2203_v6 = vmul.f32 0.015625, %v2198_v41  ;;  %v2210_v43 = vmul.f32 %v2206_v9, %v2206_v9  ;;  %2213 = vadd.xlane.f32.xlu0 %v2212_v45 }
 0xa0d   : > { %v2209_v58 = vmul.f32 %v2205_v44, %v2205_v44 }
 0xa0e   : > { %v2207_v57 = vsub.f32 %v5151_v23, %v2203_v6  ;;  %v2218_v46 = vsel %vm2186_vm4, %v2210_v43, 0.0 }
 0xa0f   : > { %v2215_v49 = vsel %vm2186_vm4, %v2209_v58, 0.0 }
 0xa10   : > { %v2211_v48 = vmul.f32 %v2207_v57, %v2207_v57  ;;  %2219 = vadd.xlane.f32.xlu0 %v2218_v46  ;;  %2216 = vadd.xlane.f32.xlu1 %v2215_v49 }
 0xa12   : > { %v2221_v10 = vsel %vm2186_vm4, %v2211_v48, 0.0 }
 0xa14   : > { %2222 = vadd.xlane.f32.xlu1 %v2221_v10 }
 0xa99   : > { %v2214_v25 = vpop.xlane.xlu0 %2213 }
 0xa9a   : > { %v2224_v2 = vmul.f32 0.015625, %v2214_v25 }
 0xa9c   : > { %v2228_v1 = vadd.f32 1e-05, %v2224_v2 }
 0xa9d   : > { %v2217_v5 = vpop.xlane.xlu1 %2216  ;;  %v2220_v59 = vpop.xlane.xlu0 %2219 }
 0xa9e   : > { %4278 = vrsqrt.f32 %v2228_v1  ;;  %v2225_v19 = vmul.f32 0.015625, %v2217_v5  ;;  %v2226_v7 = vmul.f32 0.015625, %v2220_v59 }
 0xaa0   : > { %v2229_v8 = vadd.f32 1e-05, %v2225_v19  ;;  %v2230_v61 = vadd.f32 1e-05, %v2226_v7 }
 0xaa1   : > { %v2223_v0 = vpop.xlane.xlu1 %2222 }
 0xaa2   : > { %4280 = vrsqrt.f32 %v2229_v8  ;;  %v2227_v11 = vmul.f32 0.015625, %v2223_v0 }
 0xaa3   : > { %4282 = vrsqrt.f32 %v2230_v61 }
 0xaa4   : > { %v2231_v37 = vadd.f32 1e-05, %v2227_v11 }
 0xaa6   : > { %4284 = vrsqrt.f32 %v2231_v37 }
 0xaa8   : > { %v4279_v40 = vpop.eup %4278 }
 0xaa9   : > { %v2236_v13 = vmul.f32 %v4279_v40, %v2204_v38 }
 0xaab   : > { %v2246_v16 = vmul.f32 %v3742_v14, %v2236_v13 }
 0xaac   : > { %v4281_v30 = vpop.eup %4280 }
 0xaad   : > { %v4283_v12 = vpop.eup %4282  ;;  %v2237_v15 = vmul.f32 %v4281_v30, %v2205_v44  ;;  %v2256_v51 = vadd.f32 %v3743_v17, %v2246_v16 }
 0xaae   : > { %v2238_v34 = vmul.f32 %v4283_v12, %v2206_v9 }
 0xaaf   : > { %v2247_v56 = vmul.f32 %v3742_v14, %v2237_v15 }
 0xab0   : > { %v4285_v60 = vpop.eup %4284  ;;  %v2248_v24 = vmul.f32 %v3742_v14, %v2238_v34 }
 0xab1   : > { %v2239_v20 = vmul.f32 %v4285_v60, %v2207_v57  ;;  %v2257_v22 = vadd.f32 %v3743_v17, %v2247_v56 }
 0xab2   : > { %v2258_v28 = vadd.f32 %v3743_v17, %v2248_v24 }
 0xab3   : > { %v2260_v26 = vpack.c.bf16 %v2257_v22, %v2256_v51  ;;  %v2249_v27 = vmul.f32 %v3742_v14, %v2239_v20 }
 0xab5   : > { %4009 = vmatprep.mubr.msk.bf16.mxu0 %vm2186_vm4, %v2260_v26  ;;  %v2259_v29 = vadd.f32 %v3743_v17, %v2249_v27 }
 0xab7   : > { %v2261_v18 = vpack.c.bf16 %v2259_v29, %v2258_v28 }
 0xab9   : > { %4010 = vmatmul.mubr.msk.bf16.vlgmr.msra.gmra.mrb[0].mxu0 %vm2186_vm4, %v2261_v18 }
 0xaba   : > { %4015 = vmatprep.mubr.msk.bf16.mxu0 %vm4466_vm5, %v4465_v21 }
 0xb8c   : > { %v4011_v32 = vpop.f32.mrb[0].mxu0 }
 0xb8d   : > { %v2337_v33 = vpop.f32.mrb[1].mxu0  ;;  %v2354_v53 = vmul.f32 0.25, %v4011_v32 }
 0xb8e   : > { %v4012_v35 = vpop.f32.mrb[2].mxu0  ;;  %v2352_v38 = vmul.f32 0.25, %v2337_v33 }
 0xb8f   : > { %v2355_v4 = vmul.f32 0.25, %v4012_v35  ;;  %v5188_v3 = vpack.c.bf16 %v4012_v35, %v4011_v32  ;;  %v2340_v36 = vpop.f32.mrb[3].mxu0 }
 0xb90   : > { %v2353_v9 = vmul.f32 0.25, %v2340_v36  ;;  %v5190_v39 = vpack.c.bf16 %v2340_v36, %v2337_v33 }
 0xb91   : > { %v5192_v41 = vpack.c.bf16 %v2355_v4, %v2354_v53  ;;  %2412 = vrot.lane.b32.xlu1 %v5188_v3, %s4467_s2 }
 0xb92   : > { %v5195_v42 = vpack.c.bf16 %v2353_v9, %v2352_v38  ;;  %2361 = vrot.lane.b32.xlu0 %v5190_v39, %s4467_s2  ;;  %s4472_s2 = smov 16  }
 0xc03   : > { %v2413_v6 = vpop.permute.xlu1 %2412 }
 0xc04   : > { %v2362_v63 = vpop.permute.xlu0 %2361  ;;  %v2418_v43 = vsel %vm2363_vm6, %v2413_v6, 0 }
 0xc05   : > { %v2368_v44 = vsel %vm2363_vm6, %v2362_v63, 0  ;;  %4020 = vmatpush3.bf16.xpose.msra.mxu1 %v2418_v43 }
 0xc06   : > { %4014 = vmatpush3.bf16.xpose.msra.mxu0 %v2368_v44  ;;  %4031 = vmatprep.subr.bf16.mxu1 %v4465_v21 }
 0xc07   : > { %4025 = vmatprep.subr.bf16.mxu0 %v4465_v21 }
 0xc0c   : > { %4022 = vmatmul.mubr.msk.bf16.vlgmr.msra.gmra.mrb[0].mxu1 %vm2363_vm6, %v5192_v41 }
 0xc0d   : > { %4016 = vmatmul.mubr.msk.bf16.vlgmr.msra.gmra.mrb[4].mxu0 %vm2363_vm6, %v5195_v42  ;;  %4033 = vmatprep.mubr.msk.bf16.mxu1 %vm4466_vm5, %v4465_v21 }
 0xc0e   : > { %4027 = vmatprep.mubr.msk.bf16.mxu0 %vm4466_vm5, %v4465_v21 }
 0xcdf   : > { %v2454_v57 = vpop.f32.mrb[0].mxu1 }
 0xce0   : > { %v2404_v45 = vpop.f32.mrb[4].mxu0  ;;  %v4023_v46 = vpop.f32.mrb[1].mxu1  ;;  %v2467_v25 = vsel %vm2363_vm6, %v2454_v57, -inf }
 0xce1   : > { %v4017_v58 = vpop.f32.mrb[5].mxu0  ;;  %v2457_v48 = vpop.f32.mrb[2].mxu1  ;;  %v2461_v49 = vsel %vm2363_vm6, %v2404_v45, -inf }
 0xce2   : > { %v4024_v10 = vpop.f32.mrb[3].mxu1  ;;  %2462 = vmax.xlane.f32.xlu1 %v2461_v49  ;;  %v2407_v50 = vpop.f32.mrb[6].mxu0  ;;  %v2470_v55 = vsel %vm2363_vm6, %v2457_v48, -inf }
 0xce3   : > { %v4018_v52 = vpop.f32.mrb[7].mxu0  ;;  %v2464_v54 = vsel %vm2363_vm6, %v2407_v50, -inf }
 0xce4   : > { %2465 = vmax.xlane.f32.xlu0 %v2464_v54 }
 0xce6   : > { %2471 = vmax.xlane.f32.xlu1 %v2470_v55 }
 0xce8   : > { %2468 = vmax.xlane.f32.xlu0 %v2467_v25 }
 0xcf7   : > { %2554 = vrot.lane.b32.xlu1 %v5188_v3, %s4468_s0 }
 0xcfb   : > { %2608 = vrot.lane.b32.xlu1 %v5190_v39, %s4469_s3 }
 0xd6f   : > { %v2463_v2 = vpop.xlane.xlu1 %2462 }
 0xd70   : > { %v2473_v19 = vsub.f32 %v2404_v45, %v2463_v2 }
 0xd71   : > { %v2466_v1 = vpop.xlane.xlu0 %2465 }
 0xd72   : > { %v2474_v5 = vsub.f32 %v2407_v50, %v2466_v1  ;;  %v2477_v40 = vmul.f32 1.442695, %v2473_v19 }
 0xd73   : > { %v2472_v59 = vpop.xlane.xlu1 %2471 }
 0xd74   : > { %v2476_v7 = vsub.f32 %v2457_v48, %v2472_v59  ;;  %v2479_v8 = vmul.f32 1.442695, %v2474_v5 }
 0xd75   : > { %v2469_v61 = vpop.xlane.xlu0 %2468 }
 0xd76   : > { %v2483_v0 = vmul.f32 1.442695, %v2476_v7  ;;  %v2475_v11 = vsub.f32 %v2454_v57, %v2469_v61 }
 0xd77   : > { %v2555_v37 = vpop.permute.xlu1 %2554 }
 0xd78   : > { %4286 = vpow2.f32 %v2483_v0  ;;  %v2481_v13 = vmul.f32 1.442695, %v2475_v11  ;;  %4032 = vmatpush3.bf16.msra.mxu1 %v2555_v37 }
 0xd79   : > { %4288 = vpow2.f32 %v2479_v8  ;;  %4043 = vmatprep.subr.bf16.mxu1 %v4465_v21 }
 0xd7a   : > { %4290 = vpow2.f32 %v2481_v13 }
 0xd7b   : > { %4292 = vpow2.f32 %v2477_v40  ;;  %v2609_v60 = vpop.permute.xlu1 %2608 }
 0xd82   : > { %v4287_v14 = vpop.eup %4286 }
 0xd83   : > { %v4289_v30 = vpop.eup %4288  ;;  %v2494_v12 = vsel %vm2363_vm6, %v4287_v14, 0.0 }
 0xd84   : > { %v4291_v15 = vpop.eup %4290  ;;  %2495 = vadd.xlane.f32.xlu1 %v2494_v12  ;;  %v2488_v17 = vsel %vm2363_vm6, %v4289_v30, 0.0 }
 0xd85   : > { %v2491_v16 = vsel %vm2363_vm6, %v4291_v15, 0.0  ;;  %v4293_v34 = vpop.eup %4292 }
 0xd86   : > { %2492 = vadd.xlane.f32.xlu0 %v2491_v16  ;;  %v2485_v56 = vsel %vm2363_vm6, %v4293_v34, 0.0 }
 0xd88   : > { %2489 = vadd.xlane.f32.xlu1 %v2488_v17 }
 0xd8a   : > { %2486 = vadd.xlane.f32.xlu0 %v2485_v56 }
 0xd99   : > { %2660 = vrot.lane.b32.xlu1 %v5188_v3, %s4469_s3 }
 0xd9d   : > { %2658 = vrot.lane.b32.xlu1 %v5192_v41, %s4470_s29  ;;  %v2614_v41 = vsel %vm2363_vm6, %v2609_v60, 0 }
 0xda0   : > { %2507 = vrot.lane.b32.xlu0 %v5190_v39, %s4468_s0 }
 0xda4   : > { %2606 = vrot.lane.b32.xlu0 %v5195_v42, %s4470_s29  ;;  %s2883_s29 = scalar_lea.vmem %s5525_s20, %s5600_s5 }
 0xe11   : > { %v2496_v20 = vpop.xlane.xlu1 %2495 }
 0xe12   : > { %4294 = vrcp.f32 %v2496_v20 }
 0xe13   : > { %v2493_v51 = vpop.xlane.xlu0 %2492 }
 0xe14   : > { %4296 = vrcp.f32 %v2493_v51 }
 0xe15   : > { %v2490_v22 = vpop.xlane.xlu1 %2489 }
 0xe16   : > { %4298 = vrcp.f32 %v2490_v22 }
 0xe17   : > { %v2487_v24 = vpop.xlane.xlu0 %2486 }
 0xe18   : > { %4300 = vrcp.f32 %v2487_v24 }
 0xe19   : > { %v2661_v33 = vpop.permute.xlu1 %2660 }
 0xe1a   : > { %v2666_v38 = vsel %vm2363_vm6, %v2661_v33, 0 }
 0xe1b   : > { %v2508_v26 = vpop.permute.xlu0 %2507 }
 0xe1c   : > { %v4295_v27 = vpop.eup %4294  ;;  %4026 = vmatpush3.bf16.msra.mxu0 %v2508_v26 }
 0xe1d   : > { %4037 = vmatprep.subr.bf16.mxu0 %v4465_v21  ;;  %v2504_v29 = vmul.f32 %v4295_v27, %v4287_v14  ;;  %v2659_v42 = vpop.permute.xlu1 %2658 }
 0xe1e   : > { %v4297_v28 = vpop.eup %4296 }
 0xe1f   : > { %v2503_v18 = vmul.f32 %v4297_v28, %v4291_v15  ;;  %v2607_v6 = vpop.permute.xlu0 %2606 }
 0xe20   : > { %v4299_v32 = vpop.eup %4298 }
 0xe21   : > { %v2506_v35 = vpack.c.bf16 %v2504_v29, %v2503_v18  ;;  %v2502_v4 = vmul.f32 %v4299_v32, %v4289_v30 }
 0xe22   : > { %v4301_v53 = vpop.eup %4300 }
 0xe23   : > { %v2501_v36 = vmul.f32 %v4301_v53, %v4293_v34  ;;  %4034 = vmatmul.mubr.msk.bf16.vlgmr.msra.gmra.mrb[4].mxu1 %vm2363_vm6, %v2506_v35 }
 0xe24   : > { %4044 = vmatpush3.bf16.xpose.msra.mxu1 %v2666_v38  ;;  %4045 = vmatprep.mubr.msk.bf16.mxu1 %vm4466_vm5, %v4465_v21 }
 0xe25   : > { %v2505_v9 = vpack.c.bf16 %v2502_v4, %v2501_v36  ;;  %4055 = vmatprep.subr.bf16.mxu1 %v4465_v21 }
 0xe27   : > { %4028 = vmatmul.mubr.msk.bf16.vlgmr.msra.gmra.mrb[8].mxu0 %vm2363_vm6, %v2505_v9 }
 0xe28   : > { %4038 = vmatpush3.bf16.xpose.msra.mxu0 %v2614_v41  ;;  %4039 = vmatprep.mubr.msk.bf16.mxu0 %vm4466_vm5, %v4465_v21  ;;  %v4236_v41 = vld [vmem:[%s2878_s30] sm:$0xff]  }
 0xe29   : > { %4049 = vmatprep.subr.bf16.mxu0 %v4465_v21 }
 0xe2b   : > { %4046 = vmatmul.mubr.msk.bf16.vlgmr.msra.gmra.mrb[8].mxu1 %vm2363_vm6, %v2659_v42 }
 0xe2c   : > { %4057 = vmatprep.mubr.msk.bf16.mxu1 %vm4466_vm5, %v4465_v21 }
 0xe2f   : > { %4040 = vmatmul.mubr.msk.bf16.vlgmr.msra.gmra.mrb[12].mxu0 %vm2363_vm6, %v2607_v6  ;;  %v4237_v6 = vld [vmem:[%s2878_s30 + $0x8] sm:$0xff]   ;;  %s3760_s30 = sshll.u32 %s5600_s5, 2 }
 0xe30   : > { %4051 = vmatprep.mubr.msk.bf16.mxu0 %vm4466_vm5, %v4465_v21 }
 0xef6   : > { %v2594_v63 = vpop.f32.mrb[4].mxu1 }
 0xef7   : > { %2603 = vst.msk [vmem:[#allocation3 + $0x10] sm:$0xff] %vm2363_vm6, %v2594_v63  ;;  %v4035_v43 = vpop.f32.mrb[5].mxu1 }
 0xef8   : > { %v2597_v44 = vpop.f32.mrb[6].mxu1 }
 0xef9   : > { %2604 = vst.msk [vmem:[#allocation3 + $0x18] sm:$0xff] %vm2363_vm6, %v2597_v44  ;;  %v4036_v57 = vpop.f32.mrb[7].mxu1 }
 0xefa   : > { %v2547_v45 = vpop.f32.mrb[8].mxu0 }
 0xefb   : > { %2601 = vst.msk [vmem:[#allocation3] sm:$0xff] %vm2363_vm6, %v2547_v45  ;;  %v4029_v46 = vpop.f32.mrb[9].mxu0 }
 0xefc   : > { %v2550_v58 = vpop.f32.mrb[10].mxu0 }
 0xefd   : > { %2602 = vst.msk [vmem:[#allocation3 + $0x8] sm:$0xff] %vm2363_vm6, %v2550_v58  ;;  %v4030_v48 = vpop.f32.mrb[11].mxu0 }
 0xefe   : > { %v2702_v49 = vpop.f32.mrb[8].mxu1 }
 0xeff   : > { %v4047_v10 = vpop.f32.mrb[9].mxu1  ;;  %v2715_v5 = vsel %vm2363_vm6, %v2702_v49, -inf }
 0xf00   : > { %v2705_v50 = vpop.f32.mrb[10].mxu1 }
 0xf01   : > { %v4048_v21 = vpop.f32.mrb[11].mxu1  ;;  %v2718_v59 = vsel %vm2363_vm6, %v2705_v50, -inf }
 0xf02   : > { %v2650_v52 = vpop.f32.mrb[12].mxu0 }
 0xf03   : > { %v4041_v54 = vpop.f32.mrb[13].mxu0  ;;  %v2709_v55 = vsel %vm2363_vm6, %v2650_v52, -inf }
 0xf04   : > { %2710 = vmax.xlane.f32.xlu0 %v2709_v55  ;;  %v2653_v25 = vpop.f32.mrb[14].mxu0 }
 0xf05   : > { %v4042_v2 = vpop.f32.mrb[15].mxu0  ;;  %v2712_v1 = vsel %vm2363_vm6, %v2653_v25, -inf }
 0xf06   : > { %2713 = vmax.xlane.f32.xlu1 %v2712_v1  ;;  %v3762_v2 = vld [vmem:[%s2883_s29] ss:$0 sm:$0xff]  ;;  %s2986_s29 = scalar_lea.vmem %s5529_s24, %s3760_s30 }
 0xf08   : > { %2716 = vmax.xlane.f32.xlu0 %v2715_v5 }
 0xf0c   : > { %2719 = vmax.xlane.f32.xlu0 %v2718_v59 }
 0xf91   : > { %v2711_v19 = vpop.xlane.xlu0 %2710 }
 0xf92   : > { %v2721_v7 = vsub.f32 %v2650_v52, %v2711_v19 }
 0xf93   : > { %v2714_v8 = vpop.xlane.xlu1 %2713 }
 0xf94   : > { %v2725_v11 = vmul.f32 1.442695, %v2721_v7  ;;  %v2722_v37 = vsub.f32 %v2653_v25, %v2714_v8 }
 0xf95   : > { %v2717_v61 = vpop.xlane.xlu0 %2716 }
 0xf96   : > { %v2723_v0 = vsub.f32 %v2702_v49, %v2717_v61  ;;  %v2727_v30 = vmul.f32 1.442695, %v2722_v37 }
 0xf98   : > { %v2729_v40 = vmul.f32 1.442695, %v2723_v0 }
 0xf99   : > { %v2720_v13 = vpop.xlane.xlu0 %2719 }
 0xf9a   : > { %4302 = vpow2.f32 %v2729_v40  ;;  %v2724_v14 = vsub.f32 %v2705_v50, %v2720_v13 }
 0xf9b   : > { %4304 = vpow2.f32 %v2725_v11 }
 0xf9c   : > { %v2731_v12 = vmul.f32 1.442695, %v2724_v14 }
 0xf9e   : > { %4306 = vpow2.f32 %v2731_v12 }
 0xf9f   : > { %4308 = vpow2.f32 %v2727_v30 }
 0xfa4   : > { %v4303_v15 = vpop.eup %4302 }
 0xfa5   : > { %v2739_v16 = vsel %vm2363_vm6, %v4303_v15, 0.0  ;;  %v4305_v34 = vpop.eup %4304 }
 0xfa6   : > { %2740 = vadd.xlane.f32.xlu0 %v2739_v16  ;;  %v2733_v56 = vsel %vm2363_vm6, %v4305_v34, 0.0 }
 0xfa8   : > { %v4307_v17 = vpop.eup %4306 }
 0xfa9   : > { %v2742_v60 = vsel %vm2363_vm6, %v4307_v17, 0.0  ;;  %v4309_v20 = vpop.eup %4308 }
 0xfaa   : > { %2734 = vadd.xlane.f32.xlu0 %v2733_v56  ;;  %2743 = vadd.xlane.f32.xlu1 %v2742_v60  ;;  %v2736_v51 = vsel %vm2363_vm6, %v4309_v20, 0.0 }
 0xfae   : > { %2737 = vadd.xlane.f32.xlu1 %v2736_v51 }
 0xfbf   : > { %2802 = vrot.lane.b32.xlu1 %v5188_v3, %s4471_s4 }
 0xfc0   : > { %2755 = vrot.lane.b32.xlu0 %v5190_v39, %s4471_s4  ;;  %s3816_s4 = sshll.u32 %s5600_s5, 7 }
 0xfc1   : > { %s2969_s1 = scalar_lea.vmem %s5528_s23, %s3816_s4  ;;  %s5325_s0 = scalar_lea.vmem %s5530_s25, %s3816_s4 }
 0xfc2   : > { %s2963_s4 = scalar_lea.vmem %s5526_s21, %s5600_s5 }
0x1033   : > { %v2741_v22 = vpop.xlane.xlu0 %2740 }
0x1034   : > { %4310 = vrcp.f32 %v2741_v22 }
0x1037   : > { %v2735_v24 = vpop.xlane.xlu0 %2734  ;;  %v2744_v26 = vpop.xlane.xlu1 %2743 }
0x1038   : > { %4312 = vrcp.f32 %v2744_v26 }
0x1039   : > { %4314 = vrcp.f32 %v2735_v24 }
0x103b   : > { %v2756_v27 = vpop.permute.xlu0 %2755  ;;  %v2738_v28 = vpop.xlane.xlu1 %2737 }
0x103c   : > { %4316 = vrcp.f32 %v2738_v28  ;;  %4050 = vmatpush3.bf16.msra.mxu0 %v2756_v27 }
0x103d   : > { %4061 = vmatprep.subr.bf16.mxu0 %v4236_v41 }
0x103e   : > { %v4311_v18 = vpop.eup %4310 }
0x103f   : > { %v2803_v29 = vpop.permute.xlu1 %2802  ;;  %v2751_v35 = vmul.f32 %v4311_v18, %v4303_v15 }
0x1040   : > { %4056 = vmatpush3.bf16.msra.mxu1 %v2803_v29 }
0x1042   : > { %v4313_v32 = vpop.eup %4312 }
0x1043   : > { %v4315_v33 = vpop.eup %4314  ;;  %v2752_v3 = vmul.f32 %v4313_v32, %v4307_v17 }
0x1044   : > { %v2749_v4 = vmul.f32 %v4315_v33, %v4305_v34 }
0x1045   : > { %v2754_v39 = vpack.c.bf16 %v2752_v3, %v2751_v35  ;;  %v4240_v35 = vld [vmem:[%s2969_s1 + $0x4] ss:$16 sps:$4 sm:$0xff]   ;;  %v4238_v3 = vld [vmem:[%s2969_s1] ss:$16 sps:$4 sm:$0xff]  }
0x1046   : > { %v4317_v53 = vpop.eup %4316  ;;  %3205 = vmatprep.subr.bf16.mxu1 %v4240_v35  ;;  %v4273_v35 = vld [vmem:[%s5325_s0 + $0x28] sm:$0xff]  }
0x1047   : > { %v2750_v36 = vmul.f32 %v4317_v53, %v4309_v20  ;;  %4058 = vmatmul.mubr.msk.bf16.vlgmr.msra.gmra.mrb[12].mxu1 %vm2363_vm6, %v2754_v39  ;;  %v4241_v53 = vld [vmem:[%s2969_s1 + $0x8] ss:$16 sps:$4 sm:$0xff]   ;;  %v4243_v39 = vld [vmem:[%s2969_s1 + $0xc] ss:$16 sps:$4 sm:$0xff]  }
0x1048   : > { %3206 = vmatpush1.bf16.msra.mxu1 %v4238_v3  ;;  %v4274_v3 = vld [vmem:[%s5325_s0 + $0x70] sm:$0xff]  }
0x1049   : > { %v2753_v38 = vpack.c.bf16 %v2750_v36, %v2749_v4  ;;  %v4246_v4 = vld [vmem:[%s2969_s1 + $0x24] ss:$16 sps:$4 sm:$0xff]   ;;  %v4249_v36 = vld [vmem:[%s2969_s1 + $0x2c] ss:$16 sps:$4 sm:$0xff]  }
0x104a   : > { %3207 = vmatprep.subr.bf16.mxu1 %v4246_v4  ;;  %v4277_v4 = vld [vmem:[%s5325_s0 + $0x38] sm:$0xff]  }
0x104b   : > { %4052 = vmatmul.mubr.msk.bf16.vlgmr.msra.gmra.mrb[16].mxu0 %vm2363_vm6, %v2753_v38  ;;  %v4244_v38 = vld [vmem:[%s2969_s1 + $0x20] ss:$16 sps:$4 sm:$0xff]  }
0x104c   : > { %4062 = vmatpush3.bf16.msra.mxu0 %v4236_v41  ;;  %3208 = vmatpush1.bf16.msra.mxu1 %v4244_v38  ;;  %v4252_v41 = vld [vmem:[%s2969_s1 + $0x44] ss:$16 sps:$4 sm:$0xff]  }
0x104d   : > { %4063 = vmatprep.subr.bf16.mxu0 %v4237_v6  ;;  %3209 = vmatprep.subr.bf16.mxu1 %v4252_v41  ;;  %v5366_v41 = vld [vmem:[%s2986_s29] sm:$0xf] }
0x1050   : > { %4064 = vmatpush3.bf16.msra.mxu0 %v4237_v6  ;;  %v4250_v6 = vld [vmem:[%s2969_s1 + $0x40] ss:$16 sps:$4 sm:$0xff]  }
0x1051   : > { %3258 = vmatprep.subr.bf16.mxu0 %v4243_v39  ;;  %3210 = vmatpush1.bf16.msra.mxu1 %v4250_v6  ;;  %v4276_v39 = vld [vmem:[%s5325_s0 + $0x78] sm:$0xff]  }
0x111a   : > { %v2842_v9 = vpop.f32.mrb[12].mxu1 }
0x111b   : > { %2857 = vrot.lane.b32.xlu0 %v2842_v9, %s4472_s2  ;;  %v4059_v42 = vpop.f32.mrb[13].mxu1  ;;  %v4247_v9 = vld [vmem:[%s2969_s1 + $0x28] ss:$16 sps:$4 sm:$0xff]  }
0x111c   : > { %v2845_v63 = vpop.f32.mrb[14].mxu1  ;;  %v4255_v42 = vld [vmem:[%s2969_s1 + $0x4c] ss:$16 sps:$4 sm:$0xff]  }
0x111d   : > { %v4060_v43 = vpop.f32.mrb[15].mxu1 }
0x111e   : > { %v2795_v44 = vpop.f32.mrb[16].mxu0  ;;  %v4258_v43 = vld [vmem:[%s2969_s1 + $0x64] ss:$16 sps:$4 sm:$0xff]  }
0x111f   : > { %2853 = vrot.lane.b32.xlu1 %v2795_v44, %s4472_s2  ;;  %v4053_v57 = vpop.f32.mrb[17].mxu0  ;;  %v4261_v44 = vld [vmem:[%s2969_s1 + $0x6c] ss:$16 sps:$4 sm:$0xff]   ;;  %3211 = vmatprep.subr.bf16.mxu1 %v4258_v43 }
0x1120   : > { %v2798_v45 = vpop.f32.mrb[18].mxu0  ;;  %v4256_v57 = vld [vmem:[%s2969_s1 + $0x60] ss:$16 sps:$4 sm:$0xff]  }
0x1121   : > { %v4054_v46 = vpop.f32.mrb[19].mxu0  ;;  %3212 = vmatpush1.bf16.msra.mxu1 %v4256_v57 }
0x1122   : > { %v4473_v46 = vmov 0  }
0x1123   : > { %2855 = vrot.lane.b32.xlu1 %v2798_v45, %s4472_s2  ;;  %v4259_v45 = vld [vmem:[%s2969_s1 + $0x68] ss:$16 sps:$4 sm:$0xff]   ;;  %3237 = vmatprep.mubr.bf16.mxu1 %v4473_v46 }
0x1127   : > { %2859 = vrot.lane.b32.xlu1 %v2845_v63, %s4472_s2  ;;  %v4253_v63 = vld [vmem:[%s2969_s1 + $0x48] ss:$16 sps:$4 sm:$0xff]   ;;  %s2965_s1 = scalar_lea.vmem %s5527_s22, %s5600_s5 }
0x118d   : > { %v2858_v58 = vpop.permute.xlu0 %2857 }
0x118e   : > { %2868 = vst.msk [vmem:[#allocation3 + $0x10] sm:$0xff] %vm2865_vm7, %v2858_v58 }
0x1191   : > { %v2854_v48 = vpop.permute.xlu1 %2853 }
0x1192   : > { %2866 = vst.msk [vmem:[#allocation3] sm:$0xff] %vm2865_vm7, %v2854_v48 }
0x1195   : > { %v2856_v49 = vpop.permute.xlu1 %2855  ;;  %v2872_v54 = vld [vmem:[#allocation3 + $0x10] sm:$0xff] }
0x1196   : > { %2867 = vst.msk [vmem:[#allocation3 + $0x8] sm:$0xff] %vm2865_vm7, %v2856_v49 }
0x1199   : > { %v2860_v10 = vpop.permute.xlu1 %2859  ;;  %v2870_v50 = vld [vmem:[#allocation3] sm:$0xff] }
0x119a   : > { %2869 = vst.msk [vmem:[#allocation3 + $0x18] sm:$0xff] %vm2865_vm7, %v2860_v10 }
0x119d   : > { %v2871_v21 = vld [vmem:[#allocation3 + $0x8] sm:$0xff] }
0x119e   : > { %v2874_v52 = vpack.c.bf16 %v2871_v21, %v2870_v50 }
0x11a0   : > { %4065 = vmatprep.mubr.msk.bf16.mxu0 %vm2903_vm8, %v2874_v52 }
0x11a1   : > { %v2873_v55 = vld [vmem:[#allocation3 + $0x18] sm:$0xff] }
0x11a2   : > { %v2875_v25 = vpack.c.bf16 %v2873_v55, %v2872_v54 }
0x11a4   : > { %4066 = vmatmul.mubr.msk.bf16.vlgmr.msra.gmra.mrb[20].mxu0 %vm2903_vm8, %v2875_v25 }
0x11a5   : > { %3259 = vmatpush1.bf16.msra.mxu0 %v4241_v53  ;;  %3290 = vmatprep.mubr.bf16.mxu0 %v4473_v46  ;;  %v4275_v53 = vld [vmem:[%s5325_s0 + $0x30] sm:$0xff]  }
0x11a6   : > { %3260 = vmatprep.subr.bf16.mxu0 %v4249_v36  ;;  %v3099_v36 = vlaneseq }
0x11a8   : > { %v5360_v38 = vshrl.u32 %v3099_v36, 7 }
0x11a9   : > { %3261 = vmatpush1.bf16.msra.mxu0 %v4247_v9 }
0x11aa   : > { %3262 = vmatprep.subr.bf16.mxu0 %v4255_v42  ;;  %v3109_v9 = vsub.s32 2, %v5360_v38  ;;  %v3113_v42 = vsub.s32 3, %v5360_v38 }
0x11ac   : > { %v3110_v6 = vrot.slane %v5366_v41, %v3109_v9 }
0x11ad   : > { %3263 = vmatpush1.bf16.msra.mxu0 %v4253_v63  ;;  %v3114_v63 = vrot.slane %v5366_v41, %v3113_v42  ;;  %v3101_v42 = vsub.s32 0, %v5360_v38 }
0x11ae   : > { %3264 = vmatprep.subr.bf16.mxu0 %v4261_v44 }
0x11b1   : > { %3265 = vmatpush1.bf16.msra.mxu0 %v4259_v45 }
0x1277   : > { %v4067_v1 = vpop.f32.mrb[20].mxu0 }
0x1278   : > { %v2944_v5 = vpop.f32.mrb[21].mxu0  ;;  %v2953_v59 = vadd.f32 %v4067_v1, %v3762_v2 }
0x1279   : > { %v2945_v19 = vadd.f32 %v3762_v2, %v2944_v5  ;;  %v4068_v7 = vpop.f32.mrb[22].mxu0 }
0x127a   : > { %v2947_v8 = vpop.f32.mrb[23].mxu0  ;;  %v5274_v11 = vadd.f32 %v2953_v59, %v5143_v31  ;;  %v2956_v37 = vadd.f32 %v4068_v7, %v3762_v2  ;;  %v3770_v59 = vld [vmem:[%s2963_s4] ss:$0 sm:$0xff] }
0x127b   : > { %v5271_v61 = vadd.f32 %v2945_v19, %v5141_v47  ;;  %v2948_v0 = vadd.f32 %v3762_v2, %v2947_v8 }
0x127c   : > { %v5284_v30 = vadd.f32 %v2956_v37, %v5151_v23  ;;  %v3030_v47 = vsel %vm2186_vm4, %v5274_v11, 0.0 }
0x127d   : > { %v5277_v40 = vadd.f32 %v2948_v0, %v5145_v62  ;;  %v3024_v13 = vsel %vm2186_vm4, %v5271_v61, 0.0 }
0x127e   : > { %3025 = vadd.xlane.f32.xlu0 %v3024_v13  ;;  %v3033_v31 = vsel %vm2186_vm4, %v5284_v30, 0.0  ;;  %v3771_v13 = vld [vmem:[%s2965_s1] ss:$0 sm:$0xff] }
0x127f   : > { %v3027_v14 = vsel %vm2186_vm4, %v5277_v40, 0.0 }
0x1280   : > { %3028 = vadd.xlane.f32.xlu1 %v3027_v14 }
0x1282   : > { %3031 = vadd.xlane.f32.xlu0 %v3030_v47 }
0x1286   : > { %3034 = vadd.xlane.f32.xlu0 %v3033_v31 }
0x130b   : > { %v3026_v62 = vpop.xlane.xlu0 %3025 }
0x130c   : > { %v3036_v12 = vmul.f32 0.015625, %v3026_v62 }
0x130d   : > { %v3029_v15 = vpop.xlane.xlu1 %3028 }
0x130e   : > { %v5291_v16 = vsub.f32 %v5271_v61, %v3036_v12  ;;  %v3037_v34 = vmul.f32 0.015625, %v3029_v15 }
0x130f   : > { %v3032_v17 = vpop.xlane.xlu0 %3031 }
0x1310   : > { %v5294_v56 = vsub.f32 %v5277_v40, %v3037_v34  ;;  %v3038_v23 = vmul.f32 0.015625, %v3032_v17  ;;  %v3044_v60 = vmul.f32 %v5291_v16, %v5291_v16 }
0x1312   : > { %v5299_v20 = vsub.f32 %v5274_v11, %v3038_v23  ;;  %v3048_v51 = vsel %vm2186_vm4, %v3044_v60, 0.0  ;;  %v3045_v22 = vmul.f32 %v5294_v56, %v5294_v56 }
0x1313   : > { %3049 = vadd.xlane.f32.xlu0 %v3048_v51  ;;  %v3035_v24 = vpop.xlane.xlu0 %3034  ;;  %v4263_v51 = vld [vmem:[%s5325_s0] sm:$0xff]  }
0x1314   : > { %v3039_v26 = vmul.f32 0.015625, %v3035_v24  ;;  %v3051_v27 = vsel %vm2186_vm4, %v3045_v22, 0.0  ;;  %v3046_v28 = vmul.f32 %v5299_v20, %v5299_v20  ;;  %v4264_v22 = vld [vmem:[%s5325_s0 + $0x48] sm:$0xff]  }
0x1315   : > { %3052 = vadd.xlane.f32.xlu1 %v3051_v27  ;;  %v4265_v24 = vld [vmem:[%s5325_s0 + $0x8] sm:$0xff]   ;;  %v4267_v27 = vld [vmem:[%s5325_s0 + $0x10] sm:$0xff]  }
0x1316   : > { %v5308_v29 = vsub.f32 %v5284_v30, %v3039_v26  ;;  %v3054_v18 = vsel %vm2186_vm4, %v3046_v28, 0.0  ;;  %v4266_v26 = vld [vmem:[%s5325_s0 + $0x50] sm:$0xff]   ;;  %v4268_v28 = vld [vmem:[%s5325_s0 + $0x58] sm:$0xff]  }
0x1317   : > { %3055 = vadd.xlane.f32.xlu0 %v3054_v18  ;;  %v4270_v18 = vld [vmem:[%s5325_s0 + $0x60] sm:$0xff]  }
0x1318   : > { %v3047_v32 = vmul.f32 %v5308_v29, %v5308_v29 }
0x131a   : > { %v3057_v33 = vsel %vm2186_vm4, %v3047_v32, 0.0  ;;  %v4271_v32 = vld [vmem:[%s5325_s0 + $0x20] sm:$0xff]  }
0x131b   : > { %3058 = vadd.xlane.f32.xlu1 %v3057_v33  ;;  %v4272_v33 = vld [vmem:[%s5325_s0 + $0x68] sm:$0xff]  }
0x13a0   : > { %v3050_v58 = vpop.xlane.xlu0 %3049 }
0x13a1   : > { %v3060_v48 = vmul.f32 0.015625, %v3050_v58 }
0x13a2   : > { %v3053_v49 = vpop.xlane.xlu1 %3052 }
0x13a3   : > { %v3064_v10 = vadd.f32 1e-05, %v3060_v48  ;;  %v3061_v50 = vmul.f32 0.015625, %v3053_v49 }
0x13a4   : > { %v3056_v21 = vpop.xlane.xlu0 %3055 }
0x13a5   : > { %4318 = vrsqrt.f32 %v3064_v10  ;;  %v3065_v52 = vadd.f32 1e-05, %v3061_v50  ;;  %v3062_v54 = vmul.f32 0.015625, %v3056_v21 }
0x13a7   : > { %4320 = vrsqrt.f32 %v3065_v52  ;;  %v3066_v55 = vadd.f32 1e-05, %v3062_v54 }
0x13a8   : > { %v3059_v25 = vpop.xlane.xlu1 %3058 }
0x13a9   : > { %4322 = vrsqrt.f32 %v3066_v55  ;;  %v3063_v2 = vmul.f32 0.015625, %v3059_v25 }
0x13ab   : > { %v3067_v1 = vadd.f32 1e-05, %v3063_v2 }
0x13ad   : > { %4324 = vrsqrt.f32 %v3067_v1 }
0x13af   : > { %v4319_v5 = vpop.eup %4318 }
0x13b0   : > { %v3072_v19 = vmul.f32 %v4319_v5, %v5291_v16 }
0x13b1   : > { %v4321_v7 = vpop.eup %4320 }
0x13b2   : > { %v3082_v8 = vmul.f32 %v3770_v59, %v3072_v19  ;;  %v3073_v0 = vmul.f32 %v4321_v7, %v5294_v56 }
0x13b3   : > { %v4323_v37 = vpop.eup %4322 }
0x13b4   : > { %v3083_v14 = vmul.f32 %v3770_v59, %v3073_v0  ;;  %v3074_v47 = vmul.f32 %v4323_v37, %v5299_v20  ;;  %v3092_v31 = vadd.f32 %v3771_v13, %v3082_v8  ;;  %v4262_v20 = vld [vmem:[%s5325_s0 + $0x40] sm:$0xff]  }
0x13b5   : > { %3915 = vmatprep.subr.bf16.mxu1 %v4262_v20 }
0x13b6   : > { %v3093_v62 = vadd.f32 %v3771_v13, %v3083_v14  ;;  %v3084_v34 = vmul.f32 %v3770_v59, %v3074_v47 }
0x13b7   : > { %v4325_v12 = vpop.eup %4324 }
0x13b8   : > { %v3075_v15 = vmul.f32 %v4325_v12, %v5308_v29  ;;  %v3096_v16 = vpack.c.bf16 %v3093_v62, %v3092_v31  ;;  %v3094_v23 = vadd.f32 %v3771_v13, %v3084_v34  ;;  %v4269_v29 = vld [vmem:[%s5325_s0 + $0x18] sm:$0xff]  }
0x13ba   : > { %3788 = vmatmul.mubr.msk.bf16.vlgmr.msra.gmra.mrb[16].mxu1 %vm2186_vm4, %v3096_v16  ;;  %3790 = vmatmul.mubr.msk.bf16.vlgmr.msra.gmra.mrb[24].mxu0 %vm2186_vm4, %v3096_v16  ;;  %v3085_v17 = vmul.f32 %v3770_v59, %v3075_v15 }
0x13bb   : > { %3247 = vmatprep.mubr.bf16.mxu1 %v4473_v46  ;;  %3300 = vmatprep.mubr.bf16.mxu0 %v4473_v46 }
0x13bc   : > { %v3095_v56 = vadd.f32 %v3771_v13, %v3085_v17  ;;  %3916 = vmatpush3.bf16.msra.mxu1 %v4263_v51 }
0x13bd   : > { %3917 = vmatprep.subr.bf16.mxu1 %v4264_v22 }
0x13be   : > { %v3097_v60 = vpack.c.bf16 %v3095_v56, %v3094_v23 }
0x13c0   : > { %3918 = vmatpush3.bf16.msra.mxu1 %v4265_v24 }
0x13c1   : > { %3919 = vmatprep.subr.bf16.mxu1 %v4266_v26 }
0x13c2   : > { %3789 = vmatmul.mubr.msk.bf16.gmra.mrb[20].mxu1 %vm2186_vm4, %v3097_v60  ;;  %3791 = vmatmul.mubr.msk.bf16.gmra.mrb[28].mxu0 %vm2186_vm4, %v3097_v60 }
0x13c4   : > { %3920 = vmatpush3.bf16.msra.mxu1 %v4267_v27 }
0x13c5   : > { %3921 = vmatprep.subr.bf16.mxu1 %v4268_v28 }
0x13c8   : > { %3922 = vmatpush3.bf16.msra.mxu1 %v4269_v29 }
0x13c9   : > { %3923 = vmatprep.subr.bf16.mxu1 %v4270_v18 }
0x13cc   : > { %3924 = vmatpush3.bf16.msra.mxu1 %v4271_v32 }
0x13cd   : > { %3925 = vmatprep.subr.bf16.mxu1 %v4272_v33 }
0x13d0   : > { %3926 = vmatpush3.bf16.msra.mxu1 %v4273_v35 }
0x13d1   : > { %3927 = vmatprep.subr.bf16.mxu1 %v4274_v3 }
0x13d4   : > { %3928 = vmatpush3.bf16.msra.mxu1 %v4275_v53 }
0x13d5   : > { %3929 = vmatprep.subr.bf16.mxu1 %v4276_v39 }
0x13d8   : > { %3930 = vmatpush3.bf16.msra.mxu1 %v4277_v4 }
0x148d   : > { %v5371_v43 = vpop.f32.mrb[16].mxu1  ;;  %v3292_v44 = vpop.f32.mrb[24].mxu0 }
0x148e   : > { %v5373_v57 = vadd.f32 %v3292_v44, %v3110_v6  ;;  %v5375_v45 = vpop.f32.mrb[17].mxu1  ;;  %v3294_v46 = vpop.f32.mrb[25].mxu0 }
0x148f   : > { %v5377_v58 = vadd.f32 %v3294_v46, %v3114_v63  ;;  %v5379_v48 = vpop.f32.mrb[18].mxu1  ;;  %v3296_v49 = vpop.f32.mrb[26].mxu0 }
0x1490   : > { %v3319_v10 = vmul.f32 0.044715, %v5373_v57  ;;  %v5382_v50 = vadd.f32 %v3296_v49, %v3110_v6  ;;  %v5384_v21 = vpop.f32.mrb[19].mxu1  ;;  %v3298_v52 = vpop.f32.mrb[27].mxu0 }
0x1491   : > { %v3320_v54 = vmul.f32 0.044715, %v5377_v58  ;;  %v5387_v55 = vadd.f32 %v3298_v52, %v3114_v63  ;;  %v3105_v52 = vsub.s32 1, %v5360_v38 }
0x1492   : > { %v3327_v25 = vmul.f32 %v3319_v10, %v5373_v57  ;;  %v3321_v2 = vmul.f32 0.044715, %v5382_v50 }
0x1493   : > { %v3328_v1 = vmul.f32 %v3320_v54, %v5377_v58  ;;  %v3322_v5 = vmul.f32 0.044715, %v5387_v55 }
0x1494   : > { %v3335_v59 = vmul.f32 %v3327_v25, %v5373_v57  ;;  %v3329_v19 = vmul.f32 %v3321_v2, %v5382_v50  ;;  %v3102_v25 = vrot.slane %v5366_v41, %v3101_v42 }
0x1495   : > { %v3336_v7 = vmul.f32 %v3328_v1, %v5377_v58  ;;  %v3330_v8 = vmul.f32 %v3322_v5, %v5387_v55  ;;  %v5397_v0 = vpop.f32.mrb[20].mxu1  ;;  %v3302_v37 = vpop.f32.mrb[28].mxu0 }
0x1496   : > { %v3343_v13 = vadd.f32 %v3335_v59, %v5373_v57  ;;  %v3337_v14 = vmul.f32 %v3329_v19, %v5382_v50  ;;  %v5401_v47 = vadd.f32 %v3302_v37, %v3110_v6  ;;  %v5403_v31 = vpop.f32.mrb[21].mxu1  ;;  %v3304_v62 = vpop.f32.mrb[29].mxu0  ;;  %v3311_v59 = vmul.f32 0.5, %v5373_v57 }
0x1497   : > { %v3344_v12 = vadd.f32 %v3336_v7, %v5377_v58  ;;  %v3338_v15 = vmul.f32 %v3330_v8, %v5387_v55  ;;  %v5407_v16 = vadd.f32 %v3304_v62, %v3114_v63  ;;  %v5409_v34 = vpop.f32.mrb[22].mxu1  ;;  %v3306_v17 = vpop.f32.mrb[30].mxu0  ;;  %v3106_v8 = vrot.slane %v5366_v41, %v3105_v52 }
0x1498   : > { %v3351_v56 = vmul.f32 0.7978846, %v3343_v13  ;;  %v3345_v23 = vadd.f32 %v3337_v14, %v5382_v50  ;;  %v3323_v60 = vmul.f32 0.044715, %v5401_v47  ;;  %v5413_v20 = vpop.f32.mrb[23].mxu1  ;;  %v3308_v51 = vpop.f32.mrb[31].mxu0  ;;  %v5417_v26 = vadd.f32 %v3306_v17, %v3110_v6 }
0x1499   : > { %v3346_v22 = vadd.f32 %v3338_v15, %v5387_v55  ;;  %v3324_v24 = vmul.f32 0.044715, %v5407_v16  ;;  %v5420_v29 = vadd.f32 %v3308_v51, %v3114_v63  ;;  %v3352_v33 = vmul.f32 0.7978846, %v3344_v12 }
0x149a   : > { %4326 = vtanh.f32 %v3351_v56  ;;  %v3353_v27 = vmul.f32 0.7978846, %v3345_v23  ;;  %v3331_v28 = vmul.f32 %v3323_v60, %v5401_v47  ;;  %v3325_v32 = vmul.f32 0.044715, %v5417_v26 }
0x149b   : > { %v3332_v18 = vmul.f32 %v3324_v24, %v5407_v16  ;;  %v3354_v35 = vmul.f32 0.7978846, %v3346_v22  ;;  %v3326_v53 = vmul.f32 0.044715, %v5420_v29  ;;  %v3240_v38 = vadd.f32 %v5371_v43, %v3102_v25 }
0x149c   : > { %4328 = vtanh.f32 %v3353_v27  ;;  %v3339_v3 = vmul.f32 %v3331_v28, %v5401_v47  ;;  %v3333_v4 = vmul.f32 %v3325_v32, %v5417_v26  ;;  %v3313_v14 = vmul.f32 0.5, %v5382_v50 }
0x149d   : > { %v3340_v39 = vmul.f32 %v3332_v18, %v5407_v16  ;;  %4330 = vtanh.f32 %v3352_v33  ;;  %v3334_v9 = vmul.f32 %v3326_v53, %v5420_v29  ;;  %v3244_v15 = vadd.f32 %v5379_v48, %v3102_v25 }
0x149e   : > { %v3347_v36 = vadd.f32 %v3339_v3, %v5401_v47  ;;  %4332 = vtanh.f32 %v3354_v35  ;;  %v3341_v63 = vmul.f32 %v3333_v4, %v5417_v26  ;;  %v3312_v17 = vmul.f32 0.5, %v5377_v58 }
0x149f   : > { %v3348_v6 = vadd.f32 %v3340_v39, %v5407_v16  ;;  %v3342_v44 = vmul.f32 %v3334_v9, %v5420_v29  ;;  %v3314_v23 = vmul.f32 0.5, %v5387_v55  ;;  %v3242_v41 = vadd.f32 %v5375_v45, %v3106_v8 }
0x14a0   : > { %v3355_v46 = vmul.f32 0.7978846, %v3347_v36  ;;  %v3349_v49 = vadd.f32 %v3341_v63, %v5417_v26  ;;  %v3246_v43 = vadd.f32 %v5384_v21, %v3106_v8  ;;  %v3315_v58 = vmul.f32 0.5, %v5401_v47 }
0x14a1   : > { %v3356_v10 = vmul.f32 0.7978846, %v3348_v6  ;;  %v3350_v54 = vadd.f32 %v3342_v44, %v5420_v29  ;;  %v3316_v35 = vmul.f32 0.5, %v5407_v16  ;;  %v3250_v53 = vadd.f32 %v5397_v0, %v3102_v25 }
0x14a2   : > { %4334 = vtanh.f32 %v3355_v46  ;;  %v3357_v2 = vmul.f32 0.7978846, %v3349_v49  ;;  %v3252_v21 = vadd.f32 %v5403_v31, %v3106_v8  ;;  %v3317_v9 = vmul.f32 0.5, %v5417_v26 }
0x14a3   : > { %4336 = vtanh.f32 %v3356_v10  ;;  %v3358_v5 = vmul.f32 0.7978846, %v3350_v54  ;;  %v3318_v47 = vmul.f32 0.5, %v5420_v29  ;;  %v3254_v16 = vadd.f32 %v5409_v34, %v3102_v25  ;;  %v3792_v29 = vld [vmem:[%s3022_s6] ss:$0 sm:$0xff] }
0x14a4   : > { %v4327_v1 = vpop.eup %4326  ;;  %4338 = vtanh.f32 %v3357_v2  ;;  %v3256_v46 = vadd.f32 %v5413_v20, %v3106_v8 }
0x14a5   : > { %v3367_v19 = vadd.f32 1.0, %v4327_v1  ;;  %4340 = vtanh.f32 %v3358_v5 }
0x14a6   : > { %v4329_v7 = vpop.eup %4328 }
0x14a7   : > { %v4331_v37 = vpop.eup %4330  ;;  %v3375_v13 = vmul.f32 %v3367_v19, %v3311_v59  ;;  %v3369_v62 = vadd.f32 1.0, %v4329_v7 }
0x14a8   : > { %v4333_v12 = vpop.eup %4332  ;;  %v3368_v56 = vadd.f32 1.0, %v4331_v37 }
0x14a9   : > { %v3377_v57 = vmul.f32 %v3369_v62, %v3313_v14  ;;  %v3370_v60 = vadd.f32 1.0, %v4333_v12  ;;  %v3383_v51 = vmul.f32 %v3375_v13, %v3240_v38 }
0x14aa   : > { %v3376_v22 = vmul.f32 %v3368_v56, %v3312_v17 }
0x14ab   : > { %v3378_v24 = vmul.f32 %v3370_v60, %v3314_v23  ;;  %v3385_v27 = vmul.f32 %v3377_v57, %v3244_v15 }
0x14ac   : > { %v4335_v50 = vpop.eup %4334  ;;  %v3384_v28 = vmul.f32 %v3376_v22, %v3242_v41 }
0x14ad   : > { %v4337_v18 = vpop.eup %4336  ;;  %v3386_v32 = vmul.f32 %v3378_v24, %v3246_v43  ;;  %v3391_v48 = vpack.c.bf16 %v3385_v27, %v3383_v51  ;;  %v3371_v33 = vadd.f32 1.0, %v4335_v50 }
0x14ae   : > { %v3372_v55 = vadd.f32 1.0, %v4337_v18  ;;  %v4339_v3 = vpop.eup %4338 }
0x14af   : > { %v3392_v45 = vpack.c.bf16 %v3386_v32, %v3384_v28  ;;  %v3379_v39 = vmul.f32 %v3371_v33, %v3315_v58  ;;  %v4341_v4 = vpop.eup %4340  ;;  %v3373_v42 = vadd.f32 1.0, %v4339_v3 }
0x14b0   : > { %v3380_v36 = vmul.f32 %v3372_v55, %v3316_v35  ;;  %v3374_v6 = vadd.f32 1.0, %v4341_v4 }
0x14b1   : > { %3529 = vmatprep.mubr.bf16.mxu1 %v3392_v45  ;;  %v3387_v63 = vmul.f32 %v3379_v39, %v3250_v53  ;;  %v3381_v0 = vmul.f32 %v3373_v42, %v3317_v9 }
0x14b2   : > { %3530 = vmatmul.mubr.bf16.vlgmr.msra.gmra.mrb[24].mxu1 %v3391_v48  ;;  %v3388_v44 = vmul.f32 %v3380_v36, %v3252_v21  ;;  %v3382_v49 = vmul.f32 %v3374_v6, %v3318_v47 }
0x14b3   : > { %v3389_v10 = vmul.f32 %v3381_v0, %v3254_v16 }
0x14b4   : > { %v3390_v31 = vmul.f32 %v3382_v49, %v3256_v46 }
0x14b5   : > { %v3393_v52 = vpack.c.bf16 %v3389_v10, %v3387_v63 }
0x14b6   : > { %v3394_v54 = vpack.c.bf16 %v3390_v31, %v3388_v44 }
0x14b8   : > { %3537 = vmatprep.mubr.bf16.mxu1 %v3394_v54 }
0x14ba   : > { %3538 = vmatmul.mubr.bf16.gmra.mrb[28].mxu1 %v3393_v52 }
0x1585   : > { %v3931_v26 = vpop.f32.mrb[24].mxu1 }
0x1586   : > { %v3932_v2 = vpop.f32.mrb[25].mxu1 }
0x1587   : > { %v3933_v34 = vadd.f32 %v3932_v2, %v3931_v26  ;;  %v3934_v25 = vpop.f32.mrb[26].mxu1 }
0x1588   : > { %v3935_v1 = vpop.f32.mrb[27].mxu1 }
0x1589   : > { %v3532_v5 = vadd.f32 %v3933_v34, %v3792_v29  ;;  %v3936_v59 = vadd.f32 %v3935_v1, %v3934_v25 }
0x158b   : > { %v3546_v20 = vadd.f32 %v3532_v5, %v5271_v61  ;;  %v3535_v19 = vadd.f32 %v3936_v59, %v3792_v29 }
0x158d   : > { %3550 = vst.msk [vmem:[#allocation2] sm:$0xff] %vm2186_vm4, %v3546_v20  ;;  %v3547_v7 = vadd.f32 %v3535_v19, %v5277_v40  ;;  %v3937_v8 = vpop.f32.mrb[28].mxu1 }
0x158e   : > { %v3938_v37 = vpop.f32.mrb[29].mxu1 }
0x158f   : > { %3551 = vst.msk [vmem:[#allocation2 + $0x8] sm:$0xff] %vm2186_vm4, %v3547_v7  ;;  %v3939_v38 = vadd.f32 %v3938_v37, %v3937_v8  ;;  %v3940_v13 = vpop.f32.mrb[30].mxu1 }
0x1590   : > { %v3941_v14 = vpop.f32.mrb[31].mxu1 }
0x1591   : > { %v3540_v62 = vadd.f32 %v3939_v38, %v3792_v29  ;;  %v3942_v12 = vadd.f32 %v3941_v14, %v3940_v13 }
0x1593   : > { %v3548_v15 = vadd.f32 %v3540_v62, %v5274_v11  ;;  %v3543_v17 = vadd.f32 %v3942_v12, %v3792_v29 }
0x1595   : > { %3552 = vst.msk [vmem:[#allocation2 + $0x10] sm:$0xff] %vm2186_vm4, %v3548_v15  ;;  %v3549_v61 = vadd.f32 %v3543_v17, %v5284_v30 }
0x1597   : > { %3553 = vst.msk [vmem:[#allocation2 + $0x18] sm:$0xff] %vm2186_vm4, %v3549_v61 }
0x1598 PF: > { %p3809_p3 = scmp.ne.s32.totalorder %s4450_s7, 2 }
0x1599   : > { %v3558_v40 = vld [vmem:[#allocation2] sm:$0xff] (!%p3809_p3)  ;;  %vm3562_vm9 = vcmask (!%p3809_p3), 523264   ;;  %v3559_v56 = vld [vmem:[#allocation2 + $0x8] sm:$0xff] (!%p3809_p3) }
0x159a   : > { %3557 = sbr.rel (%p3809_p3) target bundleno = 5537 (0x15a1), region = 148  ;;  %3563 = vst.msk [vmem:[#allocation9] sm:$0xff] (!%p3809_p3), %vm3562_vm9, %v3558_v40  ;;  %3564 = vst.msk [vmem:[#allocation9 + $0x8] sm:$0xff] (!%p3809_p3), %vm3562_vm9, %v3559_v56 }
0x159c   : > { %v3560_v57 = vld [vmem:[#allocation2 + $0x10] sm:$0xff] (!%p3809_p3) }
0x159d   : > { %3565 = vst.msk [vmem:[#allocation9 + $0x10] sm:$0xff] (!%p3809_p3), %vm3562_vm9, %v3560_v57 }
0x159e   : > { %v3561_v23 = vld [vmem:[#allocation2 + $0x18] sm:$0xff] (!%p3809_p3) }
0x159f   : > { %3566 = vst.msk [vmem:[#allocation9 + $0x18] sm:$0xff] (!%p3809_p3), %vm3562_vm9, %v3561_v23 }
0x15a1 PF: > { %s5589_s5 = sld [smem:[#allocation14_spill]]  ;;  %s4474_s2 = smov [#allocation9]  }
0x15a2   : > { %s3577_s7 = sshll.u32 %s4474_s2, 4  ;;  %s3578_s7 = int_to_ptr.vmem [resolvable:$true] %s3577_s7 }
0x15a3   : > { %s4398_s3 = scalar_lea.vmem %s3578_s7, 512  ;;  %p4405_p0 = scmp.lt.s32.totalorder %s3578_s7, %s3578_s7 }
0x15a4   : > { %p4399_p11 = scmp.ne.s32.totalorder %s3578_s7, %s4398_s3  ;;  %p4406_p1 = scmp.lt.s32.totalorder %s4398_s3, %s4398_s3 }
0x15a6   : > { %p4407_p2 = por %p4406_p1, %p4405_p0 }
0x15a7   : > { %s5590_s1 = sadd.s32 4294967295, %s5589_s5  }
0x15a8   : > { %p5470_p10 = scmp.eq.s32.totalorder %s5590_s1, 2 }
0x15aa   : > { %p4400_p12 = pnand %p4399_p11, %p5470_p10 }
0x15ac   : > { %p4401_p13 = pneg %p4400_p12 }
0x15ae   : > { %p4408_p5 = pnand %p4407_p2, %p4401_p13 }
0x15b0   : > { %4411 = shalt.err (!%p4408_p5)
}
0x15b1   : > { %s5592_s4 = sld [smem:[#allocation29_spill]] }
0x15b7   : > { %s5593_s6 = smov %s5592_s4  ;;  %s4412_s8 = scalar_lea.hbm %s5592_s4, 512 }
0x15b8   : > { %p4413_p7 = scmp.ne.s32.totalorder %s5593_s6, %s4412_s8  ;;  %p4418_p6 = scmp.lt.u32.totalorder %s4412_s8, %s5593_s6 }
0x15ba   : > { %p4414_p8 = pnand %p4413_p7, %p5470_p10 }
0x15bc   : > { %p4415_p9 = pneg %p4414_p8 }
0x15be   : > { %p4420_p4 = pnand %p4418_p6, %p4415_p9 }
0x15c0   : > { %4423 = shalt.err (!%p4420_p4)
}
0x15c1   : > { %s4475_s3 = smov 128   ;;  %s4476_s10 = smov 8  }
0x15c2   : > { %4078 = dma.vmem_to_hbm [thread:$0]  (%p5470_p10), %s3578_s7, 512, %s5593_s6, [#allocation6], %s4475_s3, %s4475_s3, %s4476_s10  }
0x15c3   : > { %4445 = dma.done.wait (%p5470_p10), [#allocation6], 512  }
0x15c4   : > { %4447 = vsyncadd (%p5470_p10), [#allocation6], 4294966784 }
0x15c5 PF: > { %s5594_s4 = sld [smem:[#allocation14_spill]]  ;;  %s5595_s7 = sld [smem:[#allocation13_spill]] }
0x15cb   : > { %s40_s8 = sadd.s32 1, %s5594_s4   ;;  %s5596_s4 = sld [smem:[#allocation15_spill]] }
0x15cc   : > { %p37_p3 = scmp.ge.s32.totalorder %s40_s8, 5  }
0x15ce   :  { %39 = sbr.rel (!%p37_p3) target bundleno = 19 (0x13), region = 188 }
0x15d5   :  { %3593 = vsyncpa [#allocation5], 1 }
0x15d6   :  { %3595 = vsyncpa [#allocation5 + $0x1], 1 }
0x15d7   :  { %3596 = vsyncpa [#allocation8], 1 }
0x15d8   :  { %3597 = vsyncpa [#allocation6], 1 }
0x15d9   :  { %3599 = vsyncpa [#allocation6 + $0x1], 1 }

</bundles_post_ra>
